<compile_context>
chip_gen: v5e
topology: v5e:2x2
jax: 0.10.0
libtpu: 0.0.40
codegen_flags: <defaults>
</compile_context>

<pallas_src>
import jax
import jax.numpy as jnp
from jax.experimental import pallas as pl
from jax.experimental.pallas import tpu as pltpu


def _cnn_fused_kernel(x_ref, cw_ref, cb_ref, fcw_ref, fcb_ref, o_ref):
    """x: (B, C_in, L), cw: (K, C_out, C_in), cb: (C_out, 1),
    fcw: (N, C_out, L_out), fcb: (1, N)  ->  o: (B, N)."""
    B = x_ref.shape[0]
    K, C_out, C_in = cw_ref.shape
    L_out = fcw_ref.shape[2]

    fcw = fcw_ref[...]                        # (N, C_out, L_out) -- resident in VMEM
    fcb = fcb_ref[...]                        # (1, N)
    cb = cb_ref[...]                          # (C_out, 1)

    for b in range(B):                        # B is tiny; static unroll
        # ---- Conv1d(kernel_size=K) + bias + ReLU on the VPU ----
        # h[co, l] = sum_{k, ci} cw[k, co, ci] * x[b, ci, l + k]
        acc = None
        for k in range(K):
            wk = cw_ref[k]                    # (C_out, C_in)
            xk = x_ref[b, :, k:k + L_out]     # (C_in, L_out) shifted window (in-kernel im2col)
            for ci in range(C_in):
                term = wk[:, ci:ci + 1] * xk[ci:ci + 1, :]   # (C_out, L_out)
                acc = term if acc is None else acc + term
        h = jnp.maximum(acc + cb, 0.0)        # (C_out, L_out) conv activation, VMEM only

        # ---- Linear(C_out*L_out -> N); flatten folded into the (N, C_out, L_out) weight view ----
        prod = fcw * h[None, :, :]            # (N, C_out, L_out)  VPU broadcast multiply
        s = jnp.sum(prod, axis=-1)            # (N, C_out)         reduce over L_out
        logits = jnp.sum(s, axis=-1)          # (N,)               reduce over C_out
        o_ref[b:b + 1, :] = fcb + logits[None, :]


def cnn_forward(x, params):
    """Forward pass matching the PyTorch CNN module.

    x: (B, C_in, L) float32  (NCL, same as PyTorch NCW)
    params:
      conv_w: (64, C_in, 2), conv_b: (64,)              # nn.Conv1d(C_in, 64, kernel_size=2)
      fc_w:   (num_classes, 6400), fc_b: (num_classes,) # nn.Linear(6400, num_classes)
    """
    conv_w, conv_b, fc_w, fc_b = (
        params["conv_w"], params["conv_b"], params["fc_w"], params["fc_b"])
    B, C_in, L = x.shape
    C_out, _, K = conv_w.shape
    L_out = L - K + 1
    N = fc_w.shape[0]
    assert fc_w.shape[1] == C_out * L_out

    # Tiny weight-side reshuffles only (no activation glue, no fc_w transpose):
    cwt = jnp.transpose(conv_w, (2, 0, 1))        # (K, C_out, C_in), ~2 KB
    cb2 = conv_b.reshape(C_out, 1)                # (C_out, 1)
    fcw3 = fc_w.reshape(N, C_out, L_out)          # free view: folds torch.flatten into the weight
    fcb2 = fc_b.reshape(1, N)

    return pl.pallas_call(
        _cnn_fused_kernel,
        out_shape=jax.ShapeDtypeStruct((B, N), jnp.float32),
        grid=(),
        in_specs=[
            pl.BlockSpec((B, C_in, L), lambda: (0, 0, 0)),
            pl.BlockSpec((K, C_out, C_in), lambda: (0, 0, 0)),
            pl.BlockSpec((C_out, 1), lambda: (0, 0)),
            pl.BlockSpec((N, C_out, L_out), lambda: (0, 0, 0)),
            pl.BlockSpec((1, N), lambda: (0, 0)),
        ],
        out_specs=pl.BlockSpec((B, N), lambda: (0, 0)),
        compiler_params=pltpu.CompilerParams(),
    )(x, cwt, cb2, fcw3, fcb2)


def reference_forward(x, params):
    """Pure-JAX reference (explicit conv, near-exact f32) for the correctness check."""
    conv_w, conv_b, fc_w, fc_b = (
        params["conv_w"], params["conv_b"], params["fc_w"], params["fc_b"])
    B, C_in, L = x.shape
    L_out = L - 1
    y = (jnp.einsum("oi,bil->bol", conv_w[:, :, 0], x[:, :, :L_out], precision="highest")
         + jnp.einsum("oi,bil->bol", conv_w[:, :, 1], x[:, :, 1:L_out + 1], precision="highest")
         + conv_b[None, :, None])
    y = jnp.maximum(y, 0.0)                       # (B, 64, L_out)
    flat = y.reshape(B, -1)                       # channel-major flatten == torch.flatten(x, 1)
    return jnp.dot(flat, fc_w.T, precision="highest") + fc_b[None, :]


def init_params(key, in_channels, num_classes):
    k1, k2, k3, k4 = jax.random.split(key, 4)
    conv_w = jax.random.normal(k1, (64, in_channels, 2), jnp.float32) * 0.1
    conv_b = jax.random.normal(k2, (64,), jnp.float32) * 0.1
    fc_w = jax.random.normal(k3, (num_classes, 6400), jnp.float32) * 0.01
    fc_b = jax.random.normal(k4, (num_classes,), jnp.float32) * 0.01
    return {"conv_w": conv_w, "conv_b": conv_b, "fc_w": fc_w, "fc_b": fc_b}


if __name__ == "__main__":
    # Linear(6400, num_classes) with 64 conv channels forces L_out = 100 -> L = 101.
    B, C_in, L, NUM_CLASSES = 2, 4, 101, 10

    key = jax.random.PRNGKey(0)
    kx, kp = jax.random.split(key)
    x = jax.random.normal(kx, (B, C_in, L), jnp.float32)
    params = init_params(kp, C_in, NUM_CLASSES)

    out = jax.jit(cnn_forward)(x, params)
    out = jax.block_until_ready(out)
    assert out.shape == (B, NUM_CLASSES)

    ref = reference_forward(x, params)
    assert jnp.allclose(out, ref, atol=1e-4, rtol=1e-4), (out, ref)

    print("KERNEL_OK")
</pallas_src>

<mosaic_0001>
module attributes {stable_mosaic.version = 11 : i64} {
  func.func @_cnn_fused_kernel(%arg0: memref<2x4x101xf32, #tpu.memory_space<vmem>>, %arg1: memref<2x64x4xf32, #tpu.memory_space<vmem>>, %arg2: memref<64x1xf32, #tpu.memory_space<vmem>>, %arg3: memref<10x64x100xf32, #tpu.memory_space<vmem>>, %arg4: memref<1x10xf32, #tpu.memory_space<vmem>>, %arg5: memref<2x10xf32, #tpu.memory_space<vmem>>) attributes {dimension_semantics = [], scalar_prefetch = 0 : i64, scratch_operands = 0 : i64, tpu.core_type = #tpu.core_type<tc>} {
    %c0 = arith.constant 0 : index
    %c0_0 = arith.constant 0 : index
    %c0_1 = arith.constant 0 : index
    %0 = vector.load %arg3[%c0, %c0_0, %c0_1] : memref<10x64x100xf32, #tpu.memory_space<vmem>>, vector<10x64x100xf32>
    %c0_2 = arith.constant 0 : index
    %c0_3 = arith.constant 0 : index
    %1 = vector.load %arg4[%c0_2, %c0_3] : memref<1x10xf32, #tpu.memory_space<vmem>>, vector<1x10xf32>
    %c0_4 = arith.constant 0 : index
    %c0_5 = arith.constant 0 : index
    %2 = vector.load %arg2[%c0_4, %c0_5] : memref<64x1xf32, #tpu.memory_space<vmem>>, vector<64x1xf32>
    %c0_6 = arith.constant 0 : index
    %c0_7 = arith.constant 0 : index
    %c0_8 = arith.constant 0 : index
    %3 = vector.load %arg1[%c0_6, %c0_7, %c0_8] : memref<2x64x4xf32, #tpu.memory_space<vmem>>, vector<1x64x4xf32>
    %4 = vector.shape_cast %3 : vector<1x64x4xf32> to vector<64x4xf32>
    %c0_9 = arith.constant 0 : index
    %c0_10 = arith.constant 0 : index
    %c0_11 = arith.constant 0 : index
    %5 = vector.load %arg0[%c0_9, %c0_10, %c0_11] : memref<2x4x101xf32, #tpu.memory_space<vmem>>, vector<1x4x100xf32>
    %6 = vector.shape_cast %5 : vector<1x4x100xf32> to vector<4x100xf32>
    %7 = vector.extract_strided_slice %4 {offsets = [0, 0], sizes = [64, 1], strides = [1, 1]} : vector<64x4xf32> to vector<64x1xf32>
    %8 = vector.extract_strided_slice %6 {offsets = [0, 0], sizes = [1, 100], strides = [1, 1]} : vector<4x100xf32> to vector<1x100xf32>
    %9 = vector.broadcast %7 : vector<64x1xf32> to vector<64x100xf32>
    %10 = vector.broadcast %8 : vector<1x100xf32> to vector<64x100xf32>
    %11 = arith.mulf %9, %10 : vector<64x100xf32>
    %12 = vector.extract_strided_slice %4 {offsets = [0, 1], sizes = [64, 1], strides = [1, 1]} : vector<64x4xf32> to vector<64x1xf32>
    %13 = vector.extract_strided_slice %6 {offsets = [1, 0], sizes = [1, 100], strides = [1, 1]} : vector<4x100xf32> to vector<1x100xf32>
    %14 = vector.broadcast %12 : vector<64x1xf32> to vector<64x100xf32>
    %15 = vector.broadcast %13 : vector<1x100xf32> to vector<64x100xf32>
    %16 = arith.mulf %14, %15 : vector<64x100xf32>
    %17 = arith.addf %11, %16 : vector<64x100xf32>
    %18 = vector.extract_strided_slice %4 {offsets = [0, 2], sizes = [64, 1], strides = [1, 1]} : vector<64x4xf32> to vector<64x1xf32>
    %19 = vector.extract_strided_slice %6 {offsets = [2, 0], sizes = [1, 100], strides = [1, 1]} : vector<4x100xf32> to vector<1x100xf32>
    %20 = vector.broadcast %18 : vector<64x1xf32> to vector<64x100xf32>
    %21 = vector.broadcast %19 : vector<1x100xf32> to vector<64x100xf32>
    %22 = arith.mulf %20, %21 : vector<64x100xf32>
    %23 = arith.addf %17, %22 : vector<64x100xf32>
    %24 = vector.extract_strided_slice %4 {offsets = [0, 3], sizes = [64, 1], strides = [1, 1]} : vector<64x4xf32> to vector<64x1xf32>
    %25 = vector.extract_strided_slice %6 {offsets = [3, 0], sizes = [1, 100], strides = [1, 1]} : vector<4x100xf32> to vector<1x100xf32>
    %26 = vector.broadcast %24 : vector<64x1xf32> to vector<64x100xf32>
    %27 = vector.broadcast %25 : vector<1x100xf32> to vector<64x100xf32>
    %28 = arith.mulf %26, %27 : vector<64x100xf32>
    %29 = arith.addf %23, %28 : vector<64x100xf32>
    %c1 = arith.constant 1 : index
    %c0_12 = arith.constant 0 : index
    %c0_13 = arith.constant 0 : index
    %30 = vector.load %arg1[%c1, %c0_12, %c0_13] : memref<2x64x4xf32, #tpu.memory_space<vmem>>, vector<1x64x4xf32>
    %31 = vector.shape_cast %30 : vector<1x64x4xf32> to vector<64x4xf32>
    %c0_14 = arith.constant 0 : index
    %c0_15 = arith.constant 0 : index
    %c1_16 = arith.constant 1 : index
    %32 = vector.load %arg0[%c0_14, %c0_15, %c1_16] : memref<2x4x101xf32, #tpu.memory_space<vmem>>, vector<1x4x100xf32>
    %33 = vector.shape_cast %32 : vector<1x4x100xf32> to vector<4x100xf32>
    %34 = vector.extract_strided_slice %31 {offsets = [0, 0], sizes = [64, 1], strides = [1, 1]} : vector<64x4xf32> to vector<64x1xf32>
    %35 = vector.extract_strided_slice %33 {offsets = [0, 0], sizes = [1, 100], strides = [1, 1]} : vector<4x100xf32> to vector<1x100xf32>
    %36 = vector.broadcast %34 : vector<64x1xf32> to vector<64x100xf32>
    %37 = vector.broadcast %35 : vector<1x100xf32> to vector<64x100xf32>
    %38 = arith.mulf %36, %37 : vector<64x100xf32>
    %39 = arith.addf %29, %38 : vector<64x100xf32>
    %40 = vector.extract_strided_slice %31 {offsets = [0, 1], sizes = [64, 1], strides = [1, 1]} : vector<64x4xf32> to vector<64x1xf32>
    %41 = vector.extract_strided_slice %33 {offsets = [1, 0], sizes = [1, 100], strides = [1, 1]} : vector<4x100xf32> to vector<1x100xf32>
    %42 = vector.broadcast %40 : vector<64x1xf32> to vector<64x100xf32>
    %43 = vector.broadcast %41 : vector<1x100xf32> to vector<64x100xf32>
    %44 = arith.mulf %42, %43 : vector<64x100xf32>
    %45 = arith.addf %39, %44 : vector<64x100xf32>
    %46 = vector.extract_strided_slice %31 {offsets = [0, 2], sizes = [64, 1], strides = [1, 1]} : vector<64x4xf32> to vector<64x1xf32>
    %47 = vector.extract_strided_slice %33 {offsets = [2, 0], sizes = [1, 100], strides = [1, 1]} : vector<4x100xf32> to vector<1x100xf32>
    %48 = vector.broadcast %46 : vector<64x1xf32> to vector<64x100xf32>
    %49 = vector.broadcast %47 : vector<1x100xf32> to vector<64x100xf32>
    %50 = arith.mulf %48, %49 : vector<64x100xf32>
    %51 = arith.addf %45, %50 : vector<64x100xf32>
    %52 = vector.extract_strided_slice %31 {offsets = [0, 3], sizes = [64, 1], strides = [1, 1]} : vector<64x4xf32> to vector<64x1xf32>
    %53 = vector.extract_strided_slice %33 {offsets = [3, 0], sizes = [1, 100], strides = [1, 1]} : vector<4x100xf32> to vector<1x100xf32>
    %54 = vector.broadcast %52 : vector<64x1xf32> to vector<64x100xf32>
    %55 = vector.broadcast %53 : vector<1x100xf32> to vector<64x100xf32>
    %56 = arith.mulf %54, %55 : vector<64x100xf32>
    %57 = arith.addf %51, %56 : vector<64x100xf32>
    %58 = vector.broadcast %2 : vector<64x1xf32> to vector<64x100xf32>
    %59 = arith.addf %57, %58 : vector<64x100xf32>
    %cst = arith.constant 0.000000e+00 : f32
    %60 = vector.broadcast %cst : f32 to vector<64x100xf32>
    %61 = arith.maximumf %59, %60 : vector<64x100xf32>
    %62 = vector.shape_cast %61 : vector<64x100xf32> to vector<1x64x100xf32>
    %63 = vector.broadcast %62 : vector<1x64x100xf32> to vector<10x64x100xf32>
    %64 = arith.mulf %0, %63 : vector<10x64x100xf32>
    %cst_17 = arith.constant dense<0.000000e+00> : vector<10x64xf32>
    %65 = vector.multi_reduction <add>, %64, %cst_17 [2] : vector<10x64x100xf32> to vector<10x64xf32>
    %cst_18 = arith.constant dense<0.000000e+00> : vector<10xf32>
    %66 = vector.multi_reduction <add>, %65, %cst_18 [1] : vector<10x64xf32> to vector<10xf32>
    %67 = vector.shape_cast %66 : vector<10xf32> to vector<1x10xf32>
    %68 = arith.addf %1, %67 : vector<1x10xf32>
    %c0_19 = arith.constant 0 : index
    %c0_20 = arith.constant 0 : index
    %69 = vector.load %arg5[%c0_19, %c0_20] : memref<2x10xf32, #tpu.memory_space<vmem>>, vector<1x10xf32>
    tpu.vector_store %arg5[%c0_19, %c0_20], %68 {strides = array<i32>} : memref<2x10xf32, #tpu.memory_space<vmem>>, vector<1x10xf32>,
    %c0_21 = arith.constant 0 : index
    %c0_22 = arith.constant 0 : index
    %c0_23 = arith.constant 0 : index
    %70 = vector.load %arg1[%c0_21, %c0_22, %c0_23] : memref<2x64x4xf32, #tpu.memory_space<vmem>>, vector<1x64x4xf32>
    %71 = vector.shape_cast %70 : vector<1x64x4xf32> to vector<64x4xf32>
    %c1_24 = arith.constant 1 : index
    %c0_25 = arith.constant 0 : index
    %c0_26 = arith.constant 0 : index
    %72 = vector.load %arg0[%c1_24, %c0_25, %c0_26] : memref<2x4x101xf32, #tpu.memory_space<vmem>>, vector<1x4x100xf32>
    %73 = vector.shape_cast %72 : vector<1x4x100xf32> to vector<4x100xf32>
    %74 = vector.extract_strided_slice %71 {offsets = [0, 0], sizes = [64, 1], strides = [1, 1]} : vector<64x4xf32> to vector<64x1xf32>
    %75 = vector.extract_strided_slice %73 {offsets = [0, 0], sizes = [1, 100], strides = [1, 1]} : vector<4x100xf32> to vector<1x100xf32>
    %76 = vector.broadcast %74 : vector<64x1xf32> to vector<64x100xf32>
    %77 = vector.broadcast %75 : vector<1x100xf32> to vector<64x100xf32>
    %78 = arith.mulf %76, %77 : vector<64x100xf32>
    %79 = vector.extract_strided_slice %71 {offsets = [0, 1], sizes = [64, 1], strides = [1, 1]} : vector<64x4xf32> to vector<64x1xf32>
    %80 = vector.extract_strided_slice %73 {offsets = [1, 0], sizes = [1, 100], strides = [1, 1]} : vector<4x100xf32> to vector<1x100xf32>
    %81 = vector.broadcast %79 : vector<64x1xf32> to vector<64x100xf32>
    %82 = vector.broadcast %80 : vector<1x100xf32> to vector<64x100xf32>
    %83 = arith.mulf %81, %82 : vector<64x100xf32>
    %84 = arith.addf %78, %83 : vector<64x100xf32>
    %85 = vector.extract_strided_slice %71 {offsets = [0, 2], sizes = [64, 1], strides = [1, 1]} : vector<64x4xf32> to vector<64x1xf32>
    %86 = vector.extract_strided_slice %73 {offsets = [2, 0], sizes = [1, 100], strides = [1, 1]} : vector<4x100xf32> to vector<1x100xf32>
    %87 = vector.broadcast %85 : vector<64x1xf32> to vector<64x100xf32>
    %88 = vector.broadcast %86 : vector<1x100xf32> to vector<64x100xf32>
    %89 = arith.mulf %87, %88 : vector<64x100xf32>
    %90 = arith.addf %84, %89 : vector<64x100xf32>
    %91 = vector.extract_strided_slice %71 {offsets = [0, 3], sizes = [64, 1], strides = [1, 1]} : vector<64x4xf32> to vector<64x1xf32>
    %92 = vector.extract_strided_slice %73 {offsets = [3, 0], sizes = [1, 100], strides = [1, 1]} : vector<4x100xf32> to vector<1x100xf32>
    %93 = vector.broadcast %91 : vector<64x1xf32> to vector<64x100xf32>
    %94 = vector.broadcast %92 : vector<1x100xf32> to vector<64x100xf32>
    %95 = arith.mulf %93, %94 : vector<64x100xf32>
    %96 = arith.addf %90, %95 : vector<64x100xf32>
    %c1_27 = arith.constant 1 : index
    %c0_28 = arith.constant 0 : index
    %c0_29 = arith.constant 0 : index
    %97 = vector.load %arg1[%c1_27, %c0_28, %c0_29] : memref<2x64x4xf32, #tpu.memory_space<vmem>>, vector<1x64x4xf32>
    %98 = vector.shape_cast %97 : vector<1x64x4xf32> to vector<64x4xf32>
    %c1_30 = arith.constant 1 : index
    %c0_31 = arith.constant 0 : index
    %c1_32 = arith.constant 1 : index
    %99 = vector.load %arg0[%c1_30, %c0_31, %c1_32] : memref<2x4x101xf32, #tpu.memory_space<vmem>>, vector<1x4x100xf32>
    %100 = vector.shape_cast %99 : vector<1x4x100xf32> to vector<4x100xf32>
    %101 = vector.extract_strided_slice %98 {offsets = [0, 0], sizes = [64, 1], strides = [1, 1]} : vector<64x4xf32> to vector<64x1xf32>
    %102 = vector.extract_strided_slice %100 {offsets = [0, 0], sizes = [1, 100], strides = [1, 1]} : vector<4x100xf32> to vector<1x100xf32>
    %103 = vector.broadcast %101 : vector<64x1xf32> to vector<64x100xf32>
    %104 = vector.broadcast %102 : vector<1x100xf32> to vector<64x100xf32>
    %105 = arith.mulf %103, %104 : vector<64x100xf32>
    %106 = arith.addf %96, %105 : vector<64x100xf32>
    %107 = vector.extract_strided_slice %98 {offsets = [0, 1], sizes = [64, 1], strides = [1, 1]} : vector<64x4xf32> to vector<64x1xf32>
    %108 = vector.extract_strided_slice %100 {offsets = [1, 0], sizes = [1, 100], strides = [1, 1]} : vector<4x100xf32> to vector<1x100xf32>
    %109 = vector.broadcast %107 : vector<64x1xf32> to vector<64x100xf32>
    %110 = vector.broadcast %108 : vector<1x100xf32> to vector<64x100xf32>
    %111 = arith.mulf %109, %110 : vector<64x100xf32>
    %112 = arith.addf %106, %111 : vector<64x100xf32>
    %113 = vector.extract_strided_slice %98 {offsets = [0, 2], sizes = [64, 1], strides = [1, 1]} : vector<64x4xf32> to vector<64x1xf32>
    %114 = vector.extract_strided_slice %100 {offsets = [2, 0], sizes = [1, 100], strides = [1, 1]} : vector<4x100xf32> to vector<1x100xf32>
    %115 = vector.broadcast %113 : vector<64x1xf32> to vector<64x100xf32>
    %116 = vector.broadcast %114 : vector<1x100xf32> to vector<64x100xf32>
    %117 = arith.mulf %115, %116 : vector<64x100xf32>
    %118 = arith.addf %112, %117 : vector<64x100xf32>
    %119 = vector.extract_strided_slice %98 {offsets = [0, 3], sizes = [64, 1], strides = [1, 1]} : vector<64x4xf32> to vector<64x1xf32>
    %120 = vector.extract_strided_slice %100 {offsets = [3, 0], sizes = [1, 100], strides = [1, 1]} : vector<4x100xf32> to vector<1x100xf32>
    %121 = vector.broadcast %119 : vector<64x1xf32> to vector<64x100xf32>
    %122 = vector.broadcast %120 : vector<1x100xf32> to vector<64x100xf32>
    %123 = arith.mulf %121, %122 : vector<64x100xf32>
    %124 = arith.addf %118, %123 : vector<64x100xf32>
    %125 = vector.broadcast %2 : vector<64x1xf32> to vector<64x100xf32>
    %126 = arith.addf %124, %125 : vector<64x100xf32>
    %cst_33 = arith.constant 0.000000e+00 : f32
    %127 = vector.broadcast %cst_33 : f32 to vector<64x100xf32>
    %128 = arith.maximumf %126, %127 : vector<64x100xf32>
    %129 = vector.shape_cast %128 : vector<64x100xf32> to vector<1x64x100xf32>
    %130 = vector.broadcast %129 : vector<1x64x100xf32> to vector<10x64x100xf32>
    %131 = arith.mulf %0, %130 : vector<10x64x100xf32>
    %cst_34 = arith.constant dense<0.000000e+00> : vector<10x64xf32>
    %132 = vector.multi_reduction <add>, %131, %cst_34 [2] : vector<10x64x100xf32> to vector<10x64xf32>
    %cst_35 = arith.constant dense<0.000000e+00> : vector<10xf32>
    %133 = vector.multi_reduction <add>, %132, %cst_35 [1] : vector<10x64xf32> to vector<10xf32>
    %134 = vector.shape_cast %133 : vector<10xf32> to vector<1x10xf32>
    %135 = arith.addf %1, %134 : vector<1x10xf32>
    %c1_36 = arith.constant 1 : index
    %c0_37 = arith.constant 0 : index
    %136 = vector.load %arg5[%c1_36, %c0_37] : memref<2x10xf32, #tpu.memory_space<vmem>>, vector<1x10xf32>
    tpu.vector_store %arg5[%c1_36, %c0_37], %135 {strides = array<i32>} : memref<2x10xf32, #tpu.memory_space<vmem>>, vector<1x10xf32>,
    return
  }
}

</mosaic_0001>

<bundles_post_ra>
// kernel: cnn_forward.1
= control target key start
LH: loop header
LB: loop body
LE: loop exit
PB: predicated region body
PF: predicated region fallthrough
CT: control target
= control target key end

     0   :  { %v5016_v2 = vmov 0   ;;  %s5004_s0 = inlined_call_operand.vmem [shape: f32[2,4,101], index: 0, kind: input, shape index: {}]   ;;  %s5005_s1 = inlined_call_operand.vmem [shape: f32[2,64,4], index: 1, kind: input, shape index: {}]   ;;  %s5006_s2 = inlined_call_operand.vmem [shape: f32[64,1], index: 2, kind: input, shape index: {}]   ;;  %s5007_s3 = inlined_call_operand.vmem [shape: f32[10,64,100], index: 3, kind: input, shape index: {}]   ;;  %s5008_s4 = inlined_call_operand.vmem [shape: f32[1,10], index: 4, kind: input, shape index: {}]   ;;  %s5009_s5 = inlined_call_operand.hbm [shape: f32[2,10], index: 5, kind: output, shape index: {}]  }
   0x1   :  { %v114_v0 = vld [vmem:[%s5005_s1 + $0x20] sm:$0xff]  ;;  %v112_v1 = vld [vmem:[%s5005_s1 + $0x10] sm:$0xff]  ;;  %2552 = vset.pattern.permute.xlu2 %v5016_v2  ;;  %2551 = vset.pattern.permute.xlu1 %v5016_v2 }
   0x2   :  { %v110_v3 = vld [vmem:[%s5005_s1] sm:$0xff]  ;;  %141 = vperm.xlu2 %2552, %v114_v0   ;;  %131 = vperm.xlu1 %2551, %v112_v1  }
   0x3   :  { %10 = vsyncpa [#allocation3], 0  ;;  %2550 = vset.pattern.permute.xlu0 %v5016_v2  ;;  %v115_v4 = vld [vmem:[%s5005_s1 + $0x28] sm:$0xff]  ;;  %v113_v5 = vld [vmem:[%s5005_s1 + $0x18] sm:$0xff]  ;;  %v5014_v8 = vmov 1   ;;  %v5012_v12 = vmov 2  }
   0x4   :  { %121 = vperm.xlu0 %2550, %v110_v3   ;;  %v2756_v6 = vld [vmem:[%s5005_s1 + $0x8] sm:$0xff]  ;;  %v117_v7 = vld [vmem:[%s5005_s1 + $0x38] sm:$0xff]  ;;  %v2766_v9 = vld [vmem:[%s5005_s1 + $0x30] sm:$0xff]  ;;  %v5010_v13 = vmov 3   ;;  %s2703_s27 = smov 127   ;;  %vm788_vm0 = vcmask 818176  }
   0x5   :  { %v2773_v10 = vld [vmem:[%s5005_s1 + $0x48] sm:$0xff]  ;;  %v2779_v11 = vld [vmem:[%s5005_s1 + $0x70] sm:$0xff]  ;;  %v2792_v14 = vld [vmem:[%s5005_s1 + $0x40] sm:$0xff]  ;;  %vm1114_vm1 = vcmask 130112   ;;  %vm1118_vm2 = vcmask 195712   ;;  %vm1122_vm3 = vcmask 261312  }
   0x6   :  { %v2801_v16 = vld [vmem:[%s5005_s1 + $0x50] sm:$0xff]  ;;  %v2806_v17 = vld [vmem:[%s5005_s1 + $0x58] sm:$0xff]  ;;  %v2816_v19 = vld [vmem:[%s5005_s1 + $0x60] sm:$0xff]  ;;  %vm1126_vm4 = vcmask 326912   ;;  %vm1130_vm5 = vcmask 392512   ;;  %vm1134_vm6 = vcmask 458112  }
   0x7   :  { %v2821_v20 = vld [vmem:[%s5005_s1 + $0x68] sm:$0xff]  ;;  %v2830_v22 = vld [vmem:[%s5005_s1 + $0x78] sm:$0xff]  ;;  %v2856_v32 = vld [vmem:[%s5004_s0] sm:$0xf]  ;;  %vm1138_vm7 = vcmask 523712   ;;  %vm1275_vm8 = vcmask 1041409  }
   0x8   :  { %v2863_v35 = vperm.slane %v2856_v32, 0  ;;  %vm1277_vm9 = vcmask 1042434   ;;  %vm1279_vm10 = vcmask 1043459   ;;  %vm1281_vm11 = vcmask 1044484   ;;  %s2518_s9 = sshll.u32 %s5009_s5, 4  ;;  %s2519_s9 = int_to_ptr.hbm [resolvable:$true] %s2518_s9 }
   0x9   :  { %vm1283_vm12 = vcmask 1045509   ;;  %vm1285_vm13 = vcmask 1046534   ;;  %vm1287_vm14 = vcmask 1047559   ;;  %vm5027_vm15 = vcmask 523264  }
   0xa   :  { %146 = vperm.xlu2 %2552, %v115_v4   ;;  %136 = vperm.xlu1 %2551, %v113_v5  }
   0xc   :  { %126 = vperm.xlu0 %2550, %v2756_v6  }
  0x12   :  { %2553 = vset.pattern.permute.xlu2 %v5014_v8  ;;  %156 = vperm.xlu1 %2551, %v117_v7  }
  0x13   :  { %169 = vperm.xlu2 %2553, %v110_v3  }
  0x14   :  { %151 = vperm.xlu0 %2550, %v2766_v9  }
  0x1a   :  { %2554 = vset.pattern.permute.xlu1 %v5014_v8 }
  0x1b   :  { %177 = vperm.xlu1 %2554, %v112_v1   ;;  %181 = vperm.xlu2 %2553, %v113_v5  }
  0x1c   :  { %331 = vperm.xlu0 %2550, %v2773_v10  }
  0x23   :  { %185 = vperm.xlu1 %2554, %v114_v0   ;;  %189 = vperm.xlu2 %2553, %v115_v4  }
  0x24   :  { %356 = vperm.xlu0 %2550, %v2779_v11  }
  0x2b   :  { %197 = vperm.xlu1 %2554, %v117_v7   ;;  %2555 = vset.pattern.permute.xlu2 %v5012_v12 }
  0x2c   :  { %218 = vperm.xlu2 %2555, %v110_v3   ;;  %2561 = vset.pattern.permute.xlu0 %v5014_v8 }
  0x2d   :  { %173 = vperm.xlu0 %2561, %v2756_v6  }
  0x33   :  { %2556 = vset.pattern.permute.xlu1 %v5012_v12 }
  0x34   :  { %226 = vperm.xlu1 %2556, %v112_v1   ;;  %230 = vperm.xlu2 %2555, %v113_v5  }
  0x35   :  { %193 = vperm.xlu0 %2561, %v2766_v9  }
  0x3c   :  { %234 = vperm.xlu1 %2556, %v114_v0   ;;  %238 = vperm.xlu2 %2555, %v115_v4  }
  0x44   :  { %246 = vperm.xlu1 %2556, %v117_v7   ;;  %2557 = vset.pattern.permute.xlu2 %v5010_v13 }
  0x45   :  { %267 = vperm.xlu2 %2557, %v110_v3  }
  0x4c   :  { %2558 = vset.pattern.permute.xlu1 %v5010_v13 }
  0x4d   :  { %275 = vperm.xlu1 %2558, %v112_v1   ;;  %279 = vperm.xlu2 %2557, %v113_v5  }
  0x55   :  { %283 = vperm.xlu1 %2558, %v114_v0   ;;  %287 = vperm.xlu2 %2557, %v115_v4   ;;  %v2925_v4 = vperm.slane %v2856_v32, 1 }
  0x5c   :  { %v2794_v15 = vpop.permute.xlu2 %141 }
  0x5d   :  { %295 = vperm.xlu1 %2558, %v117_v7   ;;  %2559 = vset.pattern.permute.xlu2 %v5016_v2 }
  0x5e   :  { %326 = vperm.xlu2 %2559, %v2792_v14  }
  0x64   :  { %v2808_v18 = vpop.permute.xlu2 %146 }
  0x65   :  { %2560 = vset.pattern.permute.xlu1 %v5016_v2 }
  0x66   :  { %336 = vperm.xlu1 %2560, %v2801_v16   ;;  %341 = vperm.xlu2 %2559, %v2806_v17  }
  0x6d   :  { %v2823_v21 = vpop.permute.xlu2 %169 }
  0x6e   :  { %346 = vperm.xlu1 %2560, %v2816_v19   ;;  %351 = vperm.xlu2 %2559, %v2821_v20  }
  0x74   :  { %v2832_v23 = vpop.permute.xlu1 %131 }
  0x75   :  { %v2834_v24 = vpop.permute.xlu2 %181 }
  0x76   :  { %361 = vperm.xlu1 %2560, %v2830_v22   ;;  %2563 = vset.pattern.permute.xlu2 %v5014_v8  ;;  %v2838_v25 = vpop.permute.xlu0 %121 }
  0x7c   :  { %v2840_v26 = vpop.permute.xlu1 %136 }
  0x7d   :  { %v2842_v27 = vpop.permute.xlu2 %189 }
  0x7e   :  { %2562 = vset.pattern.permute.xlu1 %v5014_v8  ;;  %v2845_v28 = vpop.permute.xlu0 %126 }
  0x84   :  { %v2847_v29 = vpop.permute.xlu1 %156 }
  0x86   :  { %v2849_v30 = vpop.permute.xlu2 %218  ;;  %v2851_v31 = vpop.permute.xlu0 %151 }
  0x8d   :  { %v2858_v33 = vpop.permute.xlu1 %177 }
  0x8e   :  { %v2860_v34 = vpop.permute.xlu2 %230  ;;  %v332_v36 = vpop.permute.xlu0 %331 }
  0x8f   :  { %v365_v37 = vmul.f32 %v332_v36, %v2863_v35 }
  0x91   :  { %382 = vrot.lane.b32.xlu0 %v365_v37, %s2703_s27 }
  0x95   :  { %v2867_v38 = vpop.permute.xlu1 %185 }
  0x96   :  { %v2869_v39 = vpop.permute.xlu2 %238  ;;  %v357_v52 = vpop.permute.xlu0 %356 }
  0x97   :  { %v370_v53 = vmul.f32 %v357_v52, %v2863_v35 }
  0x9d   :  { %v2871_v40 = vpop.permute.xlu1 %197 }
  0x9f   :  { %v2873_v41 = vpop.permute.xlu2 %267 }
  0xa6   :  { %v2875_v42 = vpop.permute.xlu1 %226 }
  0xa7   :  { %v2877_v43 = vpop.permute.xlu2 %279 }
  0xae   :  { %v2879_v44 = vpop.permute.xlu1 %234 }
  0xaf   :  { %v2881_v45 = vpop.permute.xlu2 %287 }
  0xb6   :  { %v2883_v46 = vpop.permute.xlu1 %246 }
  0xb8   :  { %v327_v47 = vpop.permute.xlu2 %326 }
  0xb9   :  { %v364_v48 = vmul.f32 %v327_v47, %v2863_v35  ;;  %v2931_v47 = vpop.permute.xlu0 %173 }
  0xbb   :  { %380 = vrot.lane.b32.xlu2 %v364_v48, %s2703_s27 }
  0xbf   :  { %v2887_v49 = vpop.permute.xlu1 %275 }
  0xc0   :  { %v342_v50 = vpop.permute.xlu2 %341 }
  0xc1   :  { %v367_v51 = vmul.f32 %v342_v50, %v2863_v35  ;;  %v2933_v48 = vpop.permute.xlu0 %193 }
  0xc3   :  { %386 = vrot.lane.b32.xlu2 %v367_v51, %s2703_s27 }
  0xc7   :  { %v2892_v54 = vpop.permute.xlu1 %283 }
  0xc8   :  { %v352_v58 = vpop.permute.xlu2 %351 }
  0xc9   :  { %v369_v60 = vmul.f32 %v352_v58, %v2863_v35 }
  0xcb   :  { %392 = vrot.lane.b32.xlu2 %v370_v53, %s2703_s27 }
  0xcf   :  { %v2895_v55 = vpop.permute.xlu1 %295 }
  0xd3   :  { %417 = vperm.xlu2 %2563, %v2773_v10  }
  0xd8   :  { %v337_v56 = vpop.permute.xlu1 %336 }
  0xd9   :  { %v366_v57 = vmul.f32 %v337_v56, %v2863_v35 }
  0xdb   :  { %384 = vrot.lane.b32.xlu1 %v366_v57, %s2703_s27  ;;  %429 = vperm.xlu2 %2563, %v2816_v19  }
  0xe0   :  { %v347_v59 = vpop.permute.xlu1 %346 }
  0xe1   :  { %v368_v61 = vmul.f32 %v347_v59, %v2863_v35 }
  0xe3   :  { %390 = vrot.lane.b32.xlu1 %v369_v60, %s2703_s27  ;;  %388 = vrot.lane.b32.xlu0 %v368_v61, %s2703_s27 }
  0xe4   :  { %437 = vperm.xlu2 %2563, %v2779_v11  }
  0xe8   :  { %v362_v62 = vpop.permute.xlu1 %361 }
  0xe9   :  { %v371_v63 = vmul.f32 %v362_v62, %v2863_v35 }
  0xeb   :  { %413 = vperm.xlu1 %2562, %v2792_v14   ;;  %421 = vperm.xlu0 %2561, %v2801_v16  }
  0xec   :  { %2566 = vset.pattern.permute.xlu2 %v5012_v12 }
  0xf3   :  { %425 = vperm.xlu1 %2562, %v2806_v17   ;;  %441 = vperm.xlu0 %2561, %v2830_v22  }
  0xfb   :  { %433 = vperm.xlu1 %2562, %v2821_v20   ;;  %394 = vrot.lane.b32.xlu0 %v371_v63, %s2703_s27 }
  0xfc   :  { %2564 = vset.pattern.permute.xlu0 %v5012_v12 }
 0x103   :  { %222 = vperm.xlu0 %2564, %v2756_v6   ;;  %2565 = vset.pattern.permute.xlu1 %v5012_v12  ;;  %v2935_v50 = vpop.permute.xlu0 %382 }
 0x10b   :  { %242 = vperm.xlu0 %2564, %v2766_v9  }
 0x115   :  { %v2918_v0 = vpop.permute.xlu2 %380 }
 0x11d   :  { %v2920_v1 = vpop.permute.xlu2 %386 }
 0x125   :  { %v2922_v3 = vpop.permute.xlu2 %392 }
 0x12d   :  { %v418_v5 = vpop.permute.xlu2 %417 }
 0x12e   :  { %v445_v7 = vmul.f32 %v418_v5, %v2925_v4 }
 0x130   :  { %462 = vrot.lane.b32.xlu2 %v445_v7, %s2703_s27 }
 0x135   :  { %v430_v36 = vpop.permute.xlu2 %429 }
 0x136   :  { %v448_v37 = vmul.f32 %v430_v36, %v2925_v4 }
 0x138   :  { %468 = vrot.lane.b32.xlu2 %v448_v37, %s2703_s27 }
 0x13e   :  { %v438_v5 = vpop.permute.xlu2 %437 }
 0x13f   :  { %v450_v36 = vmul.f32 %v438_v5, %v2925_v4 }
 0x14d   :  { %v2937_v51 = vpop.permute.xlu1 %384 }
 0x155   :  { %v2939_v52 = vpop.permute.xlu1 %390  ;;  %v2941_v53 = vpop.permute.xlu0 %388 }
 0x156   :  { %5039 = vst [vmem:[#allocation5_spill] sm:$0xff] %v2939_v52 }
 0x15d   :  { %v414_v56 = vpop.permute.xlu1 %413  ;;  %v422_v57 = vpop.permute.xlu0 %421 }
 0x15e   :  { %v444_v58 = vmul.f32 %v414_v56, %v2925_v4  ;;  %v446_v59 = vmul.f32 %v422_v57, %v2925_v4 }
 0x160   :  { %460 = vrot.lane.b32.xlu1 %v444_v58, %s2703_s27  ;;  %464 = vrot.lane.b32.xlu0 %v446_v59, %s2703_s27 }
 0x165   :  { %v426_v60 = vpop.permute.xlu1 %425  ;;  %v442_v61 = vpop.permute.xlu0 %441 }
 0x166   :  { %v447_v62 = vmul.f32 %v426_v60, %v2925_v4  ;;  %v451_v63 = vmul.f32 %v442_v61, %v2925_v4  ;;  %v2979_v61 = vperm.slane %v2856_v32, 2 }
 0x168   :  { %466 = vrot.lane.b32.xlu1 %v447_v62, %s2703_s27  ;;  %474 = vrot.lane.b32.xlu2 %v451_v63, %s2703_s27 }
 0x16d   :  { %v434_v7 = vpop.permute.xlu1 %433  ;;  %v2972_v58 = vpop.permute.xlu0 %394 }
 0x16e   :  { %v449_v37 = vmul.f32 %v434_v7, %v2925_v4  ;;  %5040 = vst [vmem:[#allocation6_spill] sm:$0xff] %v2972_v58 }
 0x170   :  { %472 = vrot.lane.b32.xlu1 %v450_v36, %s2703_s27  ;;  %470 = vrot.lane.b32.xlu0 %v449_v37, %s2703_s27 }
 0x171   :  { %501 = vperm.xlu2 %2566, %v2801_v16  }
 0x175   :  { %v2976_v60 = vpop.permute.xlu0 %222 }
 0x178   :  { %497 = vperm.xlu1 %2565, %v2773_v10   ;;  %493 = vperm.xlu0 %2564, %v2792_v14  }
 0x179   :  { %509 = vperm.xlu2 %2566, %v2816_v19  }
 0x17d   :  { %v2983_v63 = vpop.permute.xlu0 %242 }
 0x180   :  { %505 = vperm.xlu1 %2565, %v2806_v17   ;;  %513 = vperm.xlu0 %2564, %v2821_v20  }
 0x181   :  { %521 = vperm.xlu2 %2566, %v2830_v22  }
 0x188   :  { %517 = vperm.xlu1 %2565, %v2779_v11   ;;  %2567 = vset.pattern.permute.xlu0 %v5010_v13 }
 0x189   :  { %271 = vperm.xlu0 %2567, %v2756_v6   ;;  %2568 = vset.pattern.permute.xlu2 %v5010_v13 }
 0x18a   :  { %v2968_v56 = vpop.permute.xlu2 %462 }
 0x190   :  { %2569 = vset.pattern.permute.xlu1 %v5010_v13 }
 0x191   :  { %291 = vperm.xlu0 %2567, %v2766_v9  }
 0x192   :  { %v2970_v57 = vpop.permute.xlu2 %468 }
 0x1c2   :  { %v2974_v59 = vpop.permute.xlu2 %474 }
 0x1c3   :  { %5041 = vst [vmem:[#allocation7_spill] sm:$0xff] %v2974_v59 }
 0x1cb   :  { %v502_v6 = vpop.permute.xlu2 %501 }
 0x1cc   :  { %v526_v62 = vmul.f32 %v502_v6, %v2979_v61 }
 0x1ce   :  { %544 = vrot.lane.b32.xlu2 %v526_v62, %s2703_s27 }
 0x1d2   :  { %v2985_v9 = vpop.permute.xlu1 %460  ;;  %v2987_v5 = vpop.permute.xlu0 %464 }
 0x1d3   :  { %v510_v62 = vpop.permute.xlu2 %509 }
 0x1d4   :  { %v528_v58 = vmul.f32 %v510_v62, %v2979_v61 }
 0x1da   :  { %v2989_v7 = vpop.permute.xlu1 %466 }
 0x1e2   :  { %v2991_v36 = vpop.permute.xlu1 %472  ;;  %v2993_v37 = vpop.permute.xlu0 %470 }
 0x1e3   :  { %5042 = vst [vmem:[#allocation8_spill] sm:$0xff] %v2991_v36 }
 0x1e4   :  { %5043 = vst [vmem:[#allocation9_spill] sm:$0xff] %v2993_v37 }
 0x1ea   :  { %v498_v13 = vpop.permute.xlu1 %497  ;;  %v494_v12 = vpop.permute.xlu0 %493 }
 0x1eb   :  { %v525_v8 = vmul.f32 %v498_v13, %v2979_v61  ;;  %v524_v6 = vmul.f32 %v494_v12, %v2979_v61  ;;  %v522_v12 = vpop.permute.xlu2 %521 }
 0x1ed   :  { %542 = vrot.lane.b32.xlu1 %v525_v8, %s2703_s27  ;;  %540 = vrot.lane.b32.xlu0 %v524_v6, %s2703_s27  ;;  %v531_v8 = vmul.f32 %v522_v12, %v2979_v61 }
 0x1f2   :  { %v506_v2 = vpop.permute.xlu1 %505  ;;  %v514_v59 = vpop.permute.xlu0 %513 }
 0x1f3   :  { %v527_v52 = vmul.f32 %v506_v2, %v2979_v61  ;;  %v529_v36 = vmul.f32 %v514_v59, %v2979_v61  ;;  %v5044_v2 = vmov 0  }
 0x1f5   :  { %548 = vrot.lane.b32.xlu1 %v528_v58, %s2703_s27  ;;  %546 = vrot.lane.b32.xlu0 %v527_v52, %s2703_s27 }
 0x1f6   :  { %550 = vrot.lane.b32.xlu2 %v529_v36, %s2703_s27 }
 0x1fa   :  { %v518_v13 = vpop.permute.xlu1 %517 }
 0x1fb   :  { %v530_v6 = vmul.f32 %v518_v13, %v2979_v61 }
 0x1fd   :  { %554 = vrot.lane.b32.xlu1 %v531_v8, %s2703_s27  ;;  %552 = vrot.lane.b32.xlu0 %v530_v6, %s2703_s27 }
 0x1fe   :  { %573 = vperm.xlu2 %2568, %v2792_v14  }
 0x205   :  { %581 = vperm.xlu1 %2569, %v2801_v16   ;;  %577 = vperm.xlu0 %2567, %v2773_v10   ;;  %v272_v16 = vpop.permute.xlu0 %271 }
 0x206   :  { %585 = vperm.xlu2 %2568, %v2806_v17   ;;  %v3025_v17 = vperm.slane %v2856_v32, 3 }
 0x20d   :  { %589 = vperm.xlu1 %2569, %v2816_v19   ;;  %597 = vperm.xlu0 %2567, %v2779_v11   ;;  %v3027_v19 = vpop.permute.xlu0 %291 }
 0x20e   :  { %593 = vperm.xlu2 %2568, %v2821_v20  }
 0x215   :  { %601 = vperm.xlu1 %2569, %v2830_v22   ;;  %2572 = vset.pattern.permute.xlu0 %v5044_v2 }
 0x216   :  { %2571 = vset.pattern.permute.xlu2 %v5044_v2 }
 0x21d   :  { %2570 = vset.pattern.permute.xlu1 %v5044_v2 }
 0x228   :  { %v3020_v14 = vpop.permute.xlu2 %544 }
 0x250   :  { %v3022_v10 = vpop.permute.xlu2 %550 }
 0x251   :  { %5045 = vst [vmem:[#allocation10_spill] sm:$0xff] %v3022_v10 }
 0x258   :  { %v574_v11 = vpop.permute.xlu2 %573 }
 0x259   :  { %v604_v20 = vmul.f32 %v574_v11, %v3025_v17 }
 0x25b   :  { %620 = vrot.lane.b32.xlu2 %v604_v20, %s2703_s27 }
 0x25f   :  { %v543_v22 = vpop.permute.xlu1 %542  ;;  %v3031_v52 = vpop.permute.xlu0 %540 }
 0x260   :  { %v586_v58 = vpop.permute.xlu2 %585 }
 0x261   :  { %v607_v59 = vmul.f32 %v586_v58, %v3025_v17 }
 0x263   :  { %626 = vrot.lane.b32.xlu2 %v607_v59, %s2703_s27 }
 0x267   :  { %v3035_v36 = vpop.permute.xlu1 %548  ;;  %v3037_v62 = vpop.permute.xlu0 %546 }
 0x268   :  { %v594_v20 = vpop.permute.xlu2 %593 }
 0x269   :  { %v609_v2 = vmul.f32 %v594_v20, %v3025_v17  ;;  %v109_v20 = vld [vmem:[%s5006_s2 + $0x38] sm:$0xff] }
 0x26f   :  { %v3039_v32 = vpop.permute.xlu1 %554  ;;  %v3041_v12 = vpop.permute.xlu0 %552 }
 0x270   :  { %5046 = vst [vmem:[#allocation11_spill] sm:$0xff] %v3039_v32 }
 0x271   :  { %5047 = vst [vmem:[#allocation12_spill] sm:$0xff] %v3041_v12 }
 0x277   :  { %v582_v13 = vpop.permute.xlu1 %581  ;;  %v578_v8 = vpop.permute.xlu0 %577 }
 0x278   :  { %v606_v6 = vmul.f32 %v582_v13, %v3025_v17  ;;  %v605_v11 = vmul.f32 %v578_v8, %v3025_v17  ;;  %v102_v8 = vld [vmem:[%s5006_s2] sm:$0xff] }
 0x27a   :  { %624 = vrot.lane.b32.xlu1 %v606_v6, %s2703_s27  ;;  %622 = vrot.lane.b32.xlu0 %v605_v11, %s2703_s27  ;;  %v103_v11 = vld [vmem:[%s5006_s2 + $0x8] sm:$0xff] }
 0x27f   :  { %v590_v58 = vpop.permute.xlu1 %589  ;;  %v598_v59 = vpop.permute.xlu0 %597 }
 0x280   :  { %v608_v10 = vmul.f32 %v590_v58, %v3025_v17  ;;  %v610_v32 = vmul.f32 %v598_v59, %v3025_v17  ;;  %v107_v58 = vld [vmem:[%s5006_s2 + $0x28] sm:$0xff]  ;;  %v108_v59 = vld [vmem:[%s5006_s2 + $0x30] sm:$0xff] }
 0x282   :  { %630 = vrot.lane.b32.xlu1 %v609_v2, %s2703_s27  ;;  %628 = vrot.lane.b32.xlu0 %v608_v10, %s2703_s27  ;;  %v104_v2 = vld [vmem:[%s5006_s2 + $0x10] sm:$0xff]  ;;  %v105_v10 = vld [vmem:[%s5006_s2 + $0x18] sm:$0xff] }
 0x283   :  { %632 = vrot.lane.b32.xlu2 %v610_v32, %s2703_s27  ;;  %v106_v32 = vld [vmem:[%s5006_s2 + $0x20] sm:$0xff] }
 0x287   :  { %v602_v13 = vpop.permute.xlu1 %601 }
 0x288   :  { %v611_v6 = vmul.f32 %v602_v13, %v3025_v17 }
 0x28a   :  { %634 = vrot.lane.b32.xlu0 %v611_v6, %s2703_s27  ;;  %654 = vperm.xlu1 %2570, %v102_v8   ;;  %v161_v8 = vmul.f32 %v2863_v35, %v2845_v28  ;;  %v202_v6 = vmul.f32 %v2925_v4, %v2931_v47  ;;  %v201_v28 = vmul.f32 %v2925_v4, %v2823_v21 }
 0x28b   :  { %659 = vperm.xlu2 %2571, %v103_v11   ;;  %v251_v11 = vmul.f32 %v2979_v61, %v2976_v60  ;;  %v160_v47 = vmul.f32 %v2863_v35, %v2838_v25  ;;  %v164_v21 = vmul.f32 %v2863_v35, %v2794_v15  ;;  %v254_v25 = vmul.f32 %v2979_v61, %v2879_v44  ;;  %v22_v15 = vld [vmem:[%s5007_s3 + $0x8] sm:$0xff] }
 0x28c   :  { %v166_v44 = vmul.f32 %v2863_v35, %v2851_v31  ;;  %v162_v31 = vmul.f32 %v2863_v35, %v2832_v23 }
 0x292   :  { %664 = vperm.xlu0 %2572, %v104_v2   ;;  %669 = vperm.xlu1 %2570, %v105_v10   ;;  %v210_v10 = vadd.f32 %v202_v6, %v161_v8  ;;  %v205_v8 = vmul.f32 %v2925_v4, %v2867_v38 }
 0x293   :  { %674 = vperm.xlu2 %2571, %v106_v32   ;;  %v300_v32 = vmul.f32 %v3025_v17, %v272_v16 }
 0x294   :  { %v259_v37 = vadd.f32 %v251_v11, %v210_v10  ;;  %v250_v11 = vmul.f32 %v2979_v61, %v2849_v30  ;;  %v303_v30 = vmul.f32 %v3025_v17, %v2892_v54 }
 0x29a   :  { %689 = vperm.xlu0 %2572, %v109_v20   ;;  %679 = vperm.xlu1 %2570, %v107_v58   ;;  %v308_v20 = vadd.f32 %v300_v32, %v259_v37  ;;  %v209_v37 = vadd.f32 %v201_v28, %v160_v47  ;;  %v256_v47 = vmul.f32 %v2979_v61, %v2983_v63 }
 0x29b   :  { %684 = vperm.xlu2 %2571, %v108_v59   ;;  %v305_v63 = vmul.f32 %v3025_v17, %v3027_v19 }
 0x29c   :  { %v405_v59 = vadd.f32 %v2935_v50, %v308_v20  ;;  %v258_v32 = vadd.f32 %v250_v11, %v209_v37 }
 0x29e   :  { %v485_v12 = vadd.f32 %v2968_v56, %v405_v59  ;;  %v299_v56 = vmul.f32 %v3025_v17, %v2873_v41  ;;  %v207_v41 = vmul.f32 %v2925_v4, %v2933_v48  ;;  %v203_v59 = vmul.f32 %v2925_v4, %v2858_v33 }
 0x29f   :  { %v253_v48 = vmul.f32 %v2979_v61, %v2860_v34  ;;  %v302_v34 = vmul.f32 %v3025_v17, %v2877_v43  ;;  %v208_v43 = vmul.f32 %v2925_v4, %v2871_v40 }
 0x2a0   :  { %v565_v60 = vadd.f32 %v543_v22, %v485_v12  ;;  %v204_v22 = vmul.f32 %v2925_v4, %v2834_v24  ;;  %v213_v12 = vadd.f32 %v205_v8, %v164_v21  ;;  %v163_v24 = vmul.f32 %v2863_v35, %v2840_v26 }
 0x2a1   :  { %v307_v28 = vadd.f32 %v299_v56, %v258_v32  ;;  %v252_v26 = vmul.f32 %v2979_v61, %v2875_v42  ;;  %v215_v37 = vadd.f32 %v207_v41, %v166_v44  ;;  %v211_v23 = vadd.f32 %v203_v59, %v162_v31  ;;  %v5051_v31 = vld [vmem:[#allocation8_spill] sm:$0xff] }
 0x2a2   :  { %v262_v54 = vadd.f32 %v254_v25, %v213_v12  ;;  %v212_v21 = vadd.f32 %v204_v22, %v163_v24  ;;  %v301_v42 = vmul.f32 %v3025_v17, %v2887_v49  ;;  %v255_v41 = vmul.f32 %v2979_v61, %v2869_v39 }
 0x2a3   :  { %v404_v11 = vadd.f32 %v2918_v0, %v307_v28  ;;  %v264_v56 = vadd.f32 %v256_v47, %v215_v37  ;;  %v260_v19 = vadd.f32 %v252_v26, %v211_v23  ;;  %v306_v39 = vmul.f32 %v3025_v17, %v2895_v55  ;;  %v5057_v23 = vld [vmem:[#allocation6_spill] sm:$0xff] }
 0x2a4   :  { %v311_v8 = vadd.f32 %v303_v30, %v262_v54  ;;  %v261_v12 = vadd.f32 %v253_v48, %v212_v21 }
 0x2a5   :  { %v313_v30 = vadd.f32 %v305_v63, %v264_v56  ;;  %v5054_v63 = vld [vmem:[#allocation5_spill] sm:$0xff] }
 0x2a6   :  { %v408_v25 = vadd.f32 %v2941_v53, %v311_v8  ;;  %v206_v53 = vmul.f32 %v2925_v4, %v2842_v27  ;;  %v310_v32 = vadd.f32 %v302_v34, %v261_v12  ;;  %v257_v27 = vmul.f32 %v2979_v61, %v2883_v46  ;;  %v21_v46 = vld [vmem:[%s5007_s3] sm:$0xff]  ;;  %v5058_v56 = vld [vmem:[#allocation9_spill] sm:$0xff]  ;;  %v24_v12 = vld [vmem:[%s5007_s3 + $0x18] sm:$0xff] }
 0x2a7   :  { %v410_v59 = vadd.f32 %v2922_v3, %v313_v30  ;;  %v5052_v8 = vld [vmem:[#allocation12_spill] sm:$0xff] }
 0x2a8   :  { %v488_v0 = vadd.f32 %v2970_v57, %v408_v25  ;;  %v309_v57 = vadd.f32 %v301_v42, %v260_v19  ;;  %v25_v42 = vld [vmem:[%s5007_s3 + $0x20] sm:$0xff] }
 0x2a9   :  { %v490_v55 = vadd.f32 %v5051_v31, %v410_v59  ;;  %v5059_v19 = vld [vmem:[#allocation7_spill] sm:$0xff]  ;;  %v30_v31 = vld [vmem:[%s5007_s3 + $0x48] sm:$0xff] }
 0x2aa   :  { %v568_v49 = vadd.f32 %v3035_v36, %v488_v0  ;;  %v407_v36 = vadd.f32 %v2920_v1, %v310_v32  ;;  %v23_v0 = vld [vmem:[%s5007_s3 + $0x10] sm:$0xff]  ;;  %v5061_v32 = vld [vmem:[#allocation11_spill] sm:$0xff] }
 0x2b5   :  { %v3079_v13 = vpop.permute.xlu2 %620 }
 0x2bd   :  { %v3087_v2 = vpop.permute.xlu2 %626 }
 0x2dd   :  { %v3090_v58 = vpop.permute.xlu2 %632 }
 0x2e5   :  { %v3108_v10 = vpop.permute.xlu2 %659 }
 0x2e6   :  { %5048 = vst [vmem:[#allocation13_spill] sm:$0xff] %v3108_v10 }
 0x2ec   :  { %v3100_v6 = vpop.permute.xlu1 %624  ;;  %v623_v16 = vpop.permute.xlu0 %622 }
 0x2ed   :  { %v645_v50 = vadd.f32 %v623_v16, %v565_v60 }
 0x2ef   :  { %v693_v38 = vadd.f32 %v3108_v10, %v645_v50 }
 0x2f1   :  { %v3124_v20 = vmax.f32 %v693_v38, 0.0  ;;  %v484_v38 = vadd.f32 %v2985_v9, %v404_v11  ;;  %v165_v9 = vmul.f32 %v2863_v35, %v2808_v18  ;;  %v406_v18 = vadd.f32 %v2937_v51, %v309_v57 }
 0x2f2   :  { %v487_v51 = vadd.f32 %v2989_v7, %v407_v36 }
 0x2f3   :  { %v709_v60 = vmul.f32 %v3124_v20, %v22_v15  ;;  %v564_v22 = vadd.f32 %v3031_v52, %v484_v38  ;;  %v3153_v15 = vpop.permute.xlu2 %674  ;;  %v167_v52 = vmul.f32 %v2863_v35, %v2847_v29  ;;  %v214_v54 = vadd.f32 %v206_v53, %v165_v9 }
 0x2f4   :  { %v3139_v16 = vpop.permute.xlu1 %630  ;;  %v629_v33 = vpop.permute.xlu0 %628  ;;  %5049 = vst [vmem:[#allocation14_spill] sm:$0xff] %v3153_v15  ;;  %v304_v35 = vmul.f32 %v3025_v17, %v2881_v45  ;;  %v486_v1 = vadd.f32 %v2987_v5, %v406_v18  ;;  %v567_v45 = vadd.f32 %v3037_v62, %v487_v51  ;;  %v570_v5 = vadd.f32 %v5052_v8, %v490_v55  ;;  %v29_v55 = vld [vmem:[%s5007_s3 + $0x40] sm:$0xff] }
 0x2f5   :  { %v792_v50 = vsel %vm788_vm0, %v709_v60, 0.0  ;;  %v644_v44 = vadd.f32 %v3079_v13, %v564_v22  ;;  %v648_v24 = vadd.f32 %v629_v33, %v568_v49  ;;  %v216_v29 = vadd.f32 %v208_v43, %v167_v52  ;;  %v5060_v43 = vld [vmem:[#allocation10_spill] sm:$0xff] }
 0x2f6   :  { %793 = vadd.xlane.f32.xlu2 %v792_v50  ;;  %v263_v3 = vadd.f32 %v255_v41, %v214_v54  ;;  %v566_v60 = vadd.f32 %v3020_v14, %v486_v1  ;;  %v647_v7 = vadd.f32 %v3087_v2, %v567_v45  ;;  %v650_v34 = vadd.f32 %v3090_v58, %v570_v5 }
 0x2f7   :  { %v265_v28 = vadd.f32 %v257_v27, %v216_v29  ;;  %v696_v47 = vadd.f32 %v3153_v15, %v648_v24  ;;  %v27_v29 = vld [vmem:[%s5007_s3 + $0x30] sm:$0xff] }
 0x2f8   :  { %v312_v48 = vadd.f32 %v304_v35, %v263_v3  ;;  %v646_v33 = vadd.f32 %v3100_v6, %v566_v60  ;;  %v26_v35 = vld [vmem:[%s5007_s3 + $0x28] sm:$0xff] }
 0x2f9   :  { %v314_v26 = vadd.f32 %v306_v39, %v265_v28  ;;  %v3198_v50 = vmax.f32 %v696_v47, 0.0  ;;  %v28_v39 = vld [vmem:[%s5007_s3 + $0x38] sm:$0xff] }
 0x2fa   :  { %v409_v14 = vadd.f32 %v5054_v63, %v312_v48  ;;  %v717_v48 = vmul.f32 %v3124_v20, %v30_v31  ;;  %v32_v63 = vld [vmem:[%s5007_s3 + $0x58] sm:$0xff] }
 0x2fb   :  { %v3194_v37 = vpop.permute.xlu2 %684  ;;  %v411_v25 = vadd.f32 %v5057_v23, %v314_v26  ;;  %v712_v9 = vmul.f32 %v3198_v50, %v25_v42 }
 0x2fc   :  { %v635_v40 = vpop.permute.xlu0 %634  ;;  %v3169_v4 = vpop.permute.xlu1 %654  ;;  %5053 = vst [vmem:[#allocation8_spill] sm:$0xff] %v3194_v37  ;;  %v489_v38 = vadd.f32 %v5058_v56, %v409_v14  ;;  %v698_v30 = vadd.f32 %v3194_v37, %v650_v34  ;;  %v816_v5 = vsel %vm788_vm0, %v717_v48, 0.0  ;;  %v34_v14 = vld [vmem:[%s5007_s3 + $0x68] sm:$0xff]  ;;  %v36_v56 = vld [vmem:[%s5007_s3 + $0x78] sm:$0xff] }
 0x2fd   :  { %5050 = vst [vmem:[#allocation15_spill] sm:$0xff] %v3169_v4  ;;  %v692_v13 = vadd.f32 %v3169_v4, %v644_v44  ;;  %v491_v58 = vadd.f32 %v5059_v19, %v411_v25  ;;  %v801_v54 = vsel %vm788_vm0, %v712_v9, 0.0  ;;  %v39_v9 = vld [vmem:[%s5007_s3 + $0x90] sm:$0xff] }
 0x2fe   :  { %v569_v49 = vadd.f32 %v5060_v43, %v489_v38  ;;  %v3230_v27 = vmax.f32 %v698_v30, 0.0  ;;  %v35_v38 = vld [vmem:[%s5007_s3 + $0x70] sm:$0xff] }
 0x2ff   :  { %v3184_v61 = vmax.f32 %v692_v13, 0.0  ;;  %v571_v57 = vadd.f32 %v5061_v32, %v491_v58  ;;  %v38_v32 = vld [vmem:[%s5007_s3 + $0x88] sm:$0xff] }
 0x300   :  { %v649_v41 = vadd.f32 %v3139_v16, %v569_v49  ;;  %v714_v51 = vmul.f32 %v3230_v27, %v27_v29  ;;  %v722_v19 = vmul.f32 %v3230_v27, %v35_v38  ;;  %v41_v29 = vld [vmem:[%s5007_s3 + $0xa0] sm:$0xff] }
 0x301   :  { %v708_v17 = vmul.f32 %v3184_v61, %v21_v46  ;;  %v651_v24 = vadd.f32 %v635_v40, %v571_v57  ;;  %v716_v26 = vmul.f32 %v3184_v61, %v29_v55  ;;  %v40_v57 = vld [vmem:[%s5007_s3 + $0x98] sm:$0xff] }
 0x302   :  { %v807_v47 = vsel %vm788_vm0, %v714_v51, 0.0  ;;  %v831_v43 = vsel %vm788_vm0, %v722_v19, 0.0 }
 0x303   :  { %v789_v11 = vsel %vm788_vm0, %v708_v17, 0.0  ;;  %v31_v17 = vld [vmem:[%s5007_s3 + $0x50] sm:$0xff] }
 0x304   :  { %v3200_v62 = vpop.permute.xlu0 %664  ;;  %v3202_v21 = vpop.permute.xlu1 %669  ;;  %790 = vadd.xlane.f32.xlu1 %v789_v11  ;;  %v33_v11 = vld [vmem:[%s5007_s3 + $0x60] sm:$0xff] }
 0x305   :  { %5055 = vst [vmem:[#allocation12_spill] sm:$0xff] %v3200_v62  ;;  %v694_v2 = vadd.f32 %v3200_v62, %v646_v33  ;;  %v695_v6 = vadd.f32 %v3202_v21, %v647_v7  ;;  %v813_v7 = vsel %vm788_vm0, %v716_v26, 0.0  ;;  %v720_v23 = vmul.f32 %v3198_v50, %v33_v11 }
 0x306   :  { %5056 = vst [vmem:[#allocation5_spill] sm:$0xff] %v3202_v21 }
 0x307   :  { %v3220_v22 = vmax.f32 %v694_v2, 0.0  ;;  %v3222_v53 = vmax.f32 %v695_v6, 0.0  ;;  %v825_v2 = vsel %vm788_vm0, %v720_v23, 0.0 }
 0x309   :  { %v710_v44 = vmul.f32 %v3220_v22, %v23_v0  ;;  %v711_v52 = vmul.f32 %v3222_v53, %v24_v12  ;;  %v718_v8 = vmul.f32 %v3220_v22, %v31_v17  ;;  %v719_v25 = vmul.f32 %v3222_v53, %v32_v63  ;;  %v37_v0 = vld [vmem:[%s5007_s3 + $0x80] sm:$0xff] }
 0x30a   :  { %v724_v58 = vmul.f32 %v3184_v61, %v37_v0 }
 0x30b   :  { %v795_v36 = vsel %vm788_vm0, %v710_v44, 0.0  ;;  %v798_v18 = vsel %vm788_vm0, %v711_v52, 0.0  ;;  %v819_v33 = vsel %vm788_vm0, %v718_v8, 0.0  ;;  %v822_v6 = vsel %vm788_vm0, %v719_v25, 0.0 }
 0x30c   :  { %v3234_v59 = vpop.permute.xlu0 %689  ;;  %v3236_v13 = vpop.permute.xlu1 %679  ;;  %796 = vadd.xlane.f32.xlu0 %v795_v36  ;;  %799 = vadd.xlane.f32.xlu2 %v798_v18  ;;  %v837_v49 = vsel %vm788_vm0, %v724_v58, 0.0  ;;  %v726_v44 = vmul.f32 %v3220_v22, %v39_v9  ;;  %v725_v52 = vmul.f32 %v3124_v20, %v38_v32 }
 0x30d   :  { %5062 = vst [vmem:[#allocation6_spill] sm:$0xff] %v3234_v59  ;;  %v699_v16 = vadd.f32 %v3234_v59, %v651_v24  ;;  %v697_v40 = vadd.f32 %v3236_v13, %v649_v41  ;;  %802 = vadd.xlane.f32.xlu1 %v801_v54  ;;  %v727_v41 = vmul.f32 %v3222_v53, %v40_v57  ;;  %v42_v54 = vld [vmem:[%s5007_s3 + $0xa8] sm:$0xff] }
 0x30e   :  { %5063 = vst [vmem:[#allocation9_spill] sm:$0xff] %v3236_v13  ;;  %v843_v24 = vsel %vm788_vm0, %v726_v44, 0.0  ;;  %v840_v36 = vsel %vm788_vm0, %v725_v52, 0.0 }
 0x30f   :  { %v3250_v46 = vmax.f32 %v699_v16, 0.0  ;;  %v3252_v1 = vmax.f32 %v697_v40, 0.0  ;;  %v846_v18 = vsel %vm788_vm0, %v727_v41, 0.0  ;;  %v43_v16 = vld [vmem:[%s5007_s3 + $0xb0] sm:$0xff] }
 0x311   :  { %v713_v3 = vmul.f32 %v3252_v1, %v26_v35  ;;  %v715_v28 = vmul.f32 %v3250_v46, %v28_v39  ;;  %v721_v34 = vmul.f32 %v3252_v1, %v34_v14  ;;  %v723_v12 = vmul.f32 %v3250_v46, %v36_v56 }
 0x312   :  { %v729_v40 = vmul.f32 %v3252_v1, %v42_v54  ;;  %v728_v35 = vmul.f32 %v3198_v50, %v41_v29  ;;  %v730_v39 = vmul.f32 %v3230_v27, %v43_v16 }
 0x313   :  { %v804_v60 = vsel %vm788_vm0, %v713_v3, 0.0  ;;  %v810_v45 = vsel %vm788_vm0, %v715_v28, 0.0  ;;  %v828_v42 = vsel %vm788_vm0, %v721_v34, 0.0  ;;  %v834_v30 = vsel %vm788_vm0, %v723_v12, 0.0 }
 0x314   :  { %808 = vadd.xlane.f32.xlu0 %v807_v47  ;;  %805 = vadd.xlane.f32.xlu2 %v804_v60  ;;  %v852_v51 = vsel %vm788_vm0, %v729_v40, 0.0  ;;  %v849_v3 = vsel %vm788_vm0, %v728_v35, 0.0  ;;  %v855_v28 = vsel %vm788_vm0, %v730_v39, 0.0  ;;  %v45_v47 = vld [vmem:[%s5007_s3 + $0xc0] sm:$0xff]  ;;  %v44_v60 = vld [vmem:[%s5007_s3 + $0xb8] sm:$0xff] }
 0x315   :  { %811 = vadd.xlane.f32.xlu1 %v810_v45  ;;  %v46_v45 = vld [vmem:[%s5007_s3 + $0xc8] sm:$0xff]  ;;  %v732_v31 = vmul.f32 %v3184_v61, %v45_v47  ;;  %v731_v55 = vmul.f32 %v3250_v46, %v44_v60 }
 0x316   :  { %v733_v17 = vmul.f32 %v3124_v20, %v46_v45 }
 0x317   :  { %v861_v48 = vsel %vm788_vm0, %v732_v31, 0.0  ;;  %v858_v26 = vsel %vm788_vm0, %v731_v55, 0.0 }
 0x318   :  { %v864_v8 = vsel %vm788_vm0, %v733_v17, 0.0 }
 0x31c   :  { %817 = vadd.xlane.f32.xlu0 %v816_v5  ;;  %814 = vadd.xlane.f32.xlu2 %v813_v7  ;;  %v48_v5 = vld [vmem:[%s5007_s3 + $0xd8] sm:$0xff]  ;;  %v47_v7 = vld [vmem:[%s5007_s3 + $0xd0] sm:$0xff] }
 0x31d   :  { %820 = vadd.xlane.f32.xlu1 %v819_v33  ;;  %v49_v33 = vld [vmem:[%s5007_s3 + $0xe0] sm:$0xff]  ;;  %v735_v11 = vmul.f32 %v3222_v53, %v48_v5  ;;  %v734_v63 = vmul.f32 %v3220_v22, %v47_v7 }
 0x31e   :  { %v736_v14 = vmul.f32 %v3198_v50, %v49_v33 }
 0x31f   :  { %v870_v23 = vsel %vm788_vm0, %v735_v11, 0.0  ;;  %v867_v25 = vsel %vm788_vm0, %v734_v63, 0.0 }
 0x320   :  { %v873_v34 = vsel %vm788_vm0, %v736_v14, 0.0 }
 0x324   :  { %826 = vadd.xlane.f32.xlu0 %v825_v2  ;;  %823 = vadd.xlane.f32.xlu2 %v822_v6  ;;  %v51_v2 = vld [vmem:[%s5007_s3 + $0xf0] sm:$0xff]  ;;  %v50_v6 = vld [vmem:[%s5007_s3 + $0xe8] sm:$0xff] }
 0x325   :  { %829 = vadd.xlane.f32.xlu1 %v828_v42  ;;  %v52_v42 = vld [vmem:[%s5007_s3 + $0xf8] sm:$0xff]  ;;  %v738_v56 = vmul.f32 %v3230_v27, %v51_v2  ;;  %v737_v38 = vmul.f32 %v3252_v1, %v50_v6 }
 0x326   :  { %v739_v0 = vmul.f32 %v3250_v46, %v52_v42 }
 0x327   :  { %v879_v12 = vsel %vm788_vm0, %v738_v56, 0.0  ;;  %v876_v19 = vsel %vm788_vm0, %v737_v38, 0.0 }
 0x328   :  { %v882_v58 = vsel %vm788_vm0, %v739_v0, 0.0 }
 0x32c   :  { %835 = vadd.xlane.f32.xlu0 %v834_v30  ;;  %832 = vadd.xlane.f32.xlu2 %v831_v43  ;;  %v54_v30 = vld [vmem:[%s5007_s3 + $0x108] sm:$0xff]  ;;  %v53_v43 = vld [vmem:[%s5007_s3 + $0x100] sm:$0xff] }
 0x32d   :  { %838 = vadd.xlane.f32.xlu1 %v837_v49  ;;  %v55_v49 = vld [vmem:[%s5007_s3 + $0x110] sm:$0xff]  ;;  %v741_v9 = vmul.f32 %v3124_v20, %v54_v30  ;;  %v740_v32 = vmul.f32 %v3184_v61, %v53_v43  ;;  %v68_v30 = vld [vmem:[%s5007_s3 + $0x178] sm:$0xff]  ;;  %v70_v43 = vld [vmem:[%s5007_s3 + $0x188] sm:$0xff] }
 0x32e   :  { %v742_v57 = vmul.f32 %v3220_v22, %v55_v49 }
 0x32f   :  { %v888_v44 = vsel %vm788_vm0, %v741_v9, 0.0  ;;  %v885_v52 = vsel %vm788_vm0, %v740_v32, 0.0 }
 0x330   :  { %v891_v41 = vsel %vm788_vm0, %v742_v57, 0.0  ;;  %v755_v57 = vmul.f32 %v3250_v46, %v68_v30 }
 0x334   :  { %844 = vadd.xlane.f32.xlu0 %v843_v24  ;;  %841 = vadd.xlane.f32.xlu2 %v840_v36  ;;  %v57_v24 = vld [vmem:[%s5007_s3 + $0x120] sm:$0xff]  ;;  %v56_v36 = vld [vmem:[%s5007_s3 + $0x118] sm:$0xff] }
 0x335   :  { %847 = vadd.xlane.f32.xlu1 %v846_v18  ;;  %v58_v18 = vld [vmem:[%s5007_s3 + $0x128] sm:$0xff]  ;;  %v744_v54 = vmul.f32 %v3198_v50, %v57_v24  ;;  %v743_v29 = vmul.f32 %v3222_v53, %v56_v36  ;;  %v930_v24 = vsel %vm788_vm0, %v755_v57, 0.0 }
 0x336   :  { %v745_v16 = vmul.f32 %v3252_v1, %v58_v18  ;;  %v72_v18 = vld [vmem:[%s5007_s3 + $0x198] sm:$0xff]  ;;  %v82_v57 = vld [vmem:[%s5007_s3 + $0x1e8] sm:$0xff] }
 0x337   :  { %v897_v40 = vsel %vm788_vm0, %v744_v54, 0.0  ;;  %v894_v35 = vsel %vm788_vm0, %v743_v29, 0.0  ;;  %v71_v54 = vld [vmem:[%s5007_s3 + $0x190] sm:$0xff]  ;;  %v73_v29 = vld [vmem:[%s5007_s3 + $0x1a0] sm:$0xff] }
 0x338   :  { %v900_v39 = vsel %vm788_vm0, %v745_v16, 0.0 }
 0x33c   :  { %853 = vadd.xlane.f32.xlu0 %v852_v51  ;;  %850 = vadd.xlane.f32.xlu2 %v849_v3  ;;  %v60_v51 = vld [vmem:[%s5007_s3 + $0x138] sm:$0xff]  ;;  %v59_v3 = vld [vmem:[%s5007_s3 + $0x130] sm:$0xff] }
 0x33d   :  { %856 = vadd.xlane.f32.xlu1 %v855_v28  ;;  %v61_v28 = vld [vmem:[%s5007_s3 + $0x140] sm:$0xff]  ;;  %v747_v47 = vmul.f32 %v3250_v46, %v60_v51  ;;  %v746_v60 = vmul.f32 %v3230_v27, %v59_v3  ;;  %v760_v3 = vmul.f32 %v3198_v50, %v73_v29 }
 0x33e   :  { %v748_v45 = vmul.f32 %v3184_v61, %v61_v28 }
 0x33f   :  { %v906_v31 = vsel %vm788_vm0, %v747_v47, 0.0  ;;  %v903_v55 = vsel %vm788_vm0, %v746_v60, 0.0  ;;  %v945_v60 = vsel %vm788_vm0, %v760_v3, 0.0  ;;  %v84_v3 = vld [vmem:[%s5007_s3 + $0x1f8] sm:$0xff] }
 0x340   :  { %v909_v17 = vsel %vm788_vm0, %v748_v45, 0.0  ;;  %v75_v45 = vld [vmem:[%s5007_s3 + $0x1b0] sm:$0xff] }
 0x344   :  { %862 = vadd.xlane.f32.xlu0 %v861_v48  ;;  %859 = vadd.xlane.f32.xlu2 %v858_v26  ;;  %v63_v48 = vld [vmem:[%s5007_s3 + $0x150] sm:$0xff]  ;;  %v62_v26 = vld [vmem:[%s5007_s3 + $0x148] sm:$0xff] }
 0x345   :  { %865 = vadd.xlane.f32.xlu1 %v864_v8  ;;  %v64_v8 = vld [vmem:[%s5007_s3 + $0x158] sm:$0xff]  ;;  %v750_v5 = vmul.f32 %v3220_v22, %v63_v48  ;;  %v749_v7 = vmul.f32 %v3124_v20, %v62_v26  ;;  %v762_v26 = vmul.f32 %v3230_v27, %v75_v45 }
 0x346   :  { %v751_v33 = vmul.f32 %v3222_v53, %v64_v8 }
 0x347   :  { %v915_v11 = vsel %vm788_vm0, %v750_v5, 0.0  ;;  %v912_v63 = vsel %vm788_vm0, %v749_v7, 0.0 }
 0x348   :  { %v918_v14 = vsel %vm788_vm0, %v751_v33, 0.0  ;;  %v951_v33 = vsel %vm788_vm0, %v762_v26, 0.0 }
 0x34c   :  { %871 = vadd.xlane.f32.xlu0 %v870_v23  ;;  %868 = vadd.xlane.f32.xlu2 %v867_v25  ;;  %v66_v23 = vld [vmem:[%s5007_s3 + $0x168] sm:$0xff]  ;;  %v65_v25 = vld [vmem:[%s5007_s3 + $0x160] sm:$0xff] }
 0x34d   :  { %874 = vadd.xlane.f32.xlu1 %v873_v34  ;;  %v67_v34 = vld [vmem:[%s5007_s3 + $0x170] sm:$0xff]  ;;  %v753_v42 = vmul.f32 %v3252_v1, %v66_v23  ;;  %v752_v56 = vmul.f32 %v3198_v50, %v65_v25  ;;  %v77_v23 = vld [vmem:[%s5007_s3 + $0x1c0] sm:$0xff] }
 0x34e   :  { %v754_v38 = vmul.f32 %v3230_v27, %v67_v34  ;;  %v79_v25 = vld [vmem:[%s5007_s3 + $0x1d0] sm:$0xff] }
 0x34f   :  { %v924_v0 = vsel %vm788_vm0, %v753_v42, 0.0 }
 0x354   :  { %880 = vadd.xlane.f32.xlu0 %v879_v12  ;;  %877 = vadd.xlane.f32.xlu2 %v876_v19  ;;  %v921_v12 = vsel %vm788_vm0, %v752_v56, 0.0  ;;  %v927_v19 = vsel %vm788_vm0, %v754_v38, 0.0  ;;  %v764_v38 = vmul.f32 %v3184_v61, %v77_v23  ;;  %v88_v23 = vld [vmem:[%s5007_s3 + $0x218] sm:$0xff] }
 0x355   :  { %883 = vadd.xlane.f32.xlu1 %v882_v58  ;;  %v69_v58 = vld [vmem:[%s5007_s3 + $0x180] sm:$0xff] }
 0x356   :  { %v756_v32 = vmul.f32 %v3184_v61, %v69_v58  ;;  %v957_v58 = vsel %vm788_vm0, %v764_v38, 0.0 }
 0x35c   :  { %889 = vadd.xlane.f32.xlu0 %v888_v44  ;;  %886 = vadd.xlane.f32.xlu2 %v885_v52  ;;  %v757_v52 = vmul.f32 %v3124_v20, %v70_v43  ;;  %v81_v43 = vld [vmem:[%s5007_s3 + $0x1e0] sm:$0xff] }
 0x35d   :  { %892 = vadd.xlane.f32.xlu1 %v891_v41  ;;  %v933_v41 = vsel %vm788_vm0, %v756_v32, 0.0  ;;  %v80_v32 = vld [vmem:[%s5007_s3 + $0x1d8] sm:$0xff] }
 0x35e   :  { %v936_v36 = vsel %vm788_vm0, %v757_v52, 0.0 }
 0x364   :  { %898 = vadd.xlane.f32.xlu0 %v897_v40  ;;  %895 = vadd.xlane.f32.xlu2 %v894_v35  ;;  %v759_v35 = vmul.f32 %v3222_v53, %v72_v18 }
 0x365   :  { %901 = vadd.xlane.f32.xlu1 %v900_v39  ;;  %v758_v39 = vmul.f32 %v3220_v22, %v71_v54  ;;  %v769_v54 = vmul.f32 %v3252_v1, %v82_v57  ;;  %v90_v57 = vld [vmem:[%s5007_s3 + $0x228] sm:$0xff] }
 0x366   :  { %v942_v28 = vsel %vm788_vm0, %v759_v35, 0.0 }
 0x367   :  { %v939_v47 = vsel %vm788_vm0, %v758_v39, 0.0  ;;  %v972_v39 = vsel %vm788_vm0, %v769_v54, 0.0 }
 0x369   :  { %v3449_v2 = vpop.xlane.xlu2 %793 }
 0x36c   :  { %907 = vadd.xlane.f32.xlu0 %v906_v31  ;;  %904 = vadd.xlane.f32.xlu2 %v903_v55  ;;  %v74_v31 = vld [vmem:[%s5007_s3 + $0x1a8] sm:$0xff]  ;;  %v76_v55 = vld [vmem:[%s5007_s3 + $0x1b8] sm:$0xff] }
 0x36d   :  { %910 = vadd.xlane.f32.xlu1 %v909_v17  ;;  %v761_v8 = vmul.f32 %v3252_v1, %v74_v31  ;;  %v763_v7 = vmul.f32 %v3250_v46, %v76_v55  ;;  %v771_v31 = vmul.f32 %v3250_v46, %v84_v3 }
 0x374   :  { %916 = vadd.xlane.f32.xlu0 %v915_v11  ;;  %913 = vadd.xlane.f32.xlu2 %v912_v63  ;;  %v948_v11 = vsel %vm788_vm0, %v761_v8, 0.0  ;;  %v954_v63 = vsel %vm788_vm0, %v763_v7, 0.0  ;;  %v978_v7 = vsel %vm788_vm0, %v771_v31, 0.0 }
 0x375   :  { %919 = vadd.xlane.f32.xlu1 %v918_v14  ;;  %v78_v14 = vld [vmem:[%s5007_s3 + $0x1c8] sm:$0xff] }
 0x376   :  { %v765_v56 = vmul.f32 %v3124_v20, %v78_v14  ;;  %v86_v14 = vld [vmem:[%s5007_s3 + $0x208] sm:$0xff] }
 0x377   :  { %v3451_v6 = vpop.xlane.xlu1 %790 }
 0x37c   :  { %925 = vadd.xlane.f32.xlu0 %v924_v0  ;;  %922 = vadd.xlane.f32.xlu2 %v921_v12  ;;  %v766_v12 = vmul.f32 %v3220_v22, %v79_v25 }
 0x37d   :  { %928 = vadd.xlane.f32.xlu1 %v927_v19  ;;  %v960_v19 = vsel %vm788_vm0, %v765_v56, 0.0 }
 0x37e   :  { %v963_v30 = vsel %vm788_vm0, %v766_v12, 0.0  ;;  %v773_v12 = vmul.f32 %v3124_v20, %v86_v14 }
 0x37f   :  { %v3468_v49 = vpop.xlane.xlu0 %796  ;;  %v3470_v9 = vpop.xlane.xlu2 %799 }
 0x380   :  { %v3474_v44 = vpop.xlane.xlu1 %802 }
 0x384   :  { %934 = vadd.xlane.f32.xlu0 %v933_v41  ;;  %931 = vadd.xlane.f32.xlu2 %v930_v24  ;;  %v768_v24 = vmul.f32 %v3198_v50, %v81_v43  ;;  %v984_v43 = vsel %vm788_vm0, %v773_v12, 0.0 }
 0x385   :  { %937 = vadd.xlane.f32.xlu1 %v936_v36  ;;  %v767_v36 = vmul.f32 %v3222_v53, %v80_v32 }
 0x386   :  { %v969_v29 = vsel %vm788_vm0, %v768_v24, 0.0  ;;  %v89_v24 = vld [vmem:[%s5007_s3 + $0x220] sm:$0xff] }
 0x387   :  { %v3489_v16 = vpop.xlane.xlu0 %808  ;;  %v3491_v40 = vpop.xlane.xlu2 %805  ;;  %v966_v35 = vsel %vm788_vm0, %v767_v36, 0.0  ;;  %v91_v36 = vld [vmem:[%s5007_s3 + $0x230] sm:$0xff] }
 0x388   :  { %v3495_v51 = vpop.xlane.xlu1 %811 }
 0x38c   :  { %943 = vadd.xlane.f32.xlu0 %v942_v28  ;;  %940 = vadd.xlane.f32.xlu2 %v939_v47  ;;  %v83_v28 = vld [vmem:[%s5007_s3 + $0x1f0] sm:$0xff]  ;;  %v85_v47 = vld [vmem:[%s5007_s3 + $0x200] sm:$0xff] }
 0x38d   :  { %946 = vadd.xlane.f32.xlu1 %v945_v60  ;;  %v770_v55 = vmul.f32 %v3230_v27, %v83_v28  ;;  %v772_v8 = vmul.f32 %v3184_v61, %v85_v47  ;;  %v778_v28 = vmul.f32 %v3230_v27, %v91_v36 }
 0x38f   :  { %v3510_v17 = vpop.xlane.xlu0 %817  ;;  %v3512_v48 = vpop.xlane.xlu2 %814 }
 0x390   :  { %v3516_v5 = vpop.xlane.xlu1 %820 }
 0x394   :  { %952 = vadd.xlane.f32.xlu0 %v951_v33  ;;  %949 = vadd.xlane.f32.xlu2 %v948_v11  ;;  %v975_v33 = vsel %vm788_vm0, %v770_v55, 0.0  ;;  %v981_v11 = vsel %vm788_vm0, %v772_v8, 0.0  ;;  %v999_v55 = vsel %vm788_vm0, %v778_v28, 0.0  ;;  %v93_v8 = vld [vmem:[%s5007_s3 + $0x240] sm:$0xff] }
 0x395   :  { %955 = vadd.xlane.f32.xlu1 %v954_v63  ;;  %v87_v63 = vld [vmem:[%s5007_s3 + $0x210] sm:$0xff]  ;;  %v780_v14 = vmul.f32 %v3184_v61, %v93_v8 }
 0x396   :  { %v774_v38 = vmul.f32 %v3220_v22, %v87_v63  ;;  %v95_v61 = vld [vmem:[%s5007_s3 + $0x250] sm:$0xff] }
 0x397   :  { %v3531_v34 = vpop.xlane.xlu0 %826  ;;  %v3533_v42 = vpop.xlane.xlu2 %823  ;;  %v99_v8 = vld [vmem:[%s5007_s3 + $0x270] sm:$0xff] }
 0x398   :  { %v3537_v0 = vpop.xlane.xlu1 %829 }
 0x39c   :  { %961 = vadd.xlane.f32.xlu0 %v960_v19  ;;  %958 = vadd.xlane.f32.xlu2 %v957_v58  ;;  %v775_v58 = vmul.f32 %v3222_v53, %v88_v23 }
 0x39d   :  { %964 = vadd.xlane.f32.xlu1 %v963_v30  ;;  %v987_v30 = vsel %vm788_vm0, %v774_v38, 0.0 }
 0x39e   :  { %v990_v32 = vsel %vm788_vm0, %v775_v58, 0.0  ;;  %v1005_v58 = vsel %vm788_vm0, %v780_v14, 0.0 }
 0x39f   :  { %v3552_v52 = vpop.xlane.xlu0 %835  ;;  %v3554_v41 = vpop.xlane.xlu2 %832 }
 0x3a0   :  { %v3558_v18 = vpop.xlane.xlu1 %838 }
 0x3a4   :  { %970 = vadd.xlane.f32.xlu0 %v969_v29  ;;  %967 = vadd.xlane.f32.xlu2 %v966_v35  ;;  %v777_v35 = vmul.f32 %v3252_v1, %v90_v57 }
 0x3a5   :  { %973 = vadd.xlane.f32.xlu1 %v972_v39  ;;  %v776_v39 = vmul.f32 %v3198_v50, %v89_v24 }
 0x3a6   :  { %v996_v47 = vsel %vm788_vm0, %v777_v35, 0.0  ;;  %v782_v35 = vmul.f32 %v3220_v22, %v95_v61  ;;  %v98_v22 = vld [vmem:[%s5007_s3 + $0x268] sm:$0xff] }
 0x3a7   :  { %v3573_v60 = vpop.xlane.xlu0 %844  ;;  %v3575_v45 = vpop.xlane.xlu2 %841  ;;  %v993_v31 = vsel %vm788_vm0, %v776_v39, 0.0  ;;  %v785_v14 = vmul.f32 %v3252_v1, %v98_v22 }
 0x3a8   :  { %v3579_v26 = vpop.xlane.xlu1 %847 }
 0x3ac   :  { %979 = vadd.xlane.f32.xlu0 %v978_v7  ;;  %976 = vadd.xlane.f32.xlu2 %v975_v33  ;;  %v92_v7 = vld [vmem:[%s5007_s3 + $0x238] sm:$0xff]  ;;  %v94_v33 = vld [vmem:[%s5007_s3 + $0x248] sm:$0xff] }
 0x3ad   :  { %982 = vadd.xlane.f32.xlu1 %v981_v11  ;;  %v779_v23 = vmul.f32 %v3250_v46, %v92_v7  ;;  %v781_v12 = vmul.f32 %v3124_v20, %v94_v33  ;;  %v97_v20 = vld [vmem:[%s5007_s3 + $0x260] sm:$0xff]  ;;  %v786_v33 = vmul.f32 %v3230_v27, %v99_v8  ;;  %v1109_v8 = vlaneseq }
 0x3ae   :  { %v784_v28 = vmul.f32 %v3198_v50, %v97_v20  ;;  %v100_v50 = vld [vmem:[%s5007_s3 + $0x278] sm:$0xff] }
 0x3af   :  { %v3594_v25 = vpop.xlane.xlu0 %853  ;;  %v3596_v56 = vpop.xlane.xlu2 %850  ;;  %v3714_v22 = vand.u32 127, %v1109_v8 }
 0x3b0   :  { %v3600_v19 = vpop.xlane.xlu1 %856 }
 0x3b1   :  { %v1140_v13 = vperm.slane %v3512_v48, %v3714_v22  ;;  %v3751_v59 = vadd.s32 4294967264, %v3714_v22 }
 0x3b3   :  { %5066 = vst [vmem:[#allocation11_spill] sm:$0xff] %v3751_v59 }
 0x3b4   :  { %988 = vadd.xlane.f32.xlu0 %v987_v30  ;;  %985 = vadd.xlane.f32.xlu2 %v984_v43  ;;  %v1002_v30 = vsel %vm788_vm0, %v779_v23, 0.0  ;;  %v1008_v43 = vsel %vm788_vm0, %v781_v12, 0.0  ;;  %v787_v12 = vmul.f32 %v3250_v46, %v100_v50 }
 0x3b5   :  { %991 = vadd.xlane.f32.xlu1 %v990_v32  ;;  %v96_v32 = vld [vmem:[%s5007_s3 + $0x258] sm:$0xff] }
 0x3b6   :  { %v783_v36 = vmul.f32 %v3222_v53, %v96_v32 }
 0x3b7   :  { %v3615_v54 = vpop.xlane.xlu0 %862  ;;  %v3617_v29 = vpop.xlane.xlu2 %859 }
 0x3b8   :  { %v3621_v3 = vpop.xlane.xlu1 %865 }
 0x3bc   :  { %997 = vadd.xlane.f32.xlu0 %v996_v47  ;;  %994 = vadd.xlane.f32.xlu2 %v993_v31  ;;  %v1014_v47 = vsel %vm788_vm0, %v783_v36, 0.0  ;;  %v1011_v31 = vsel %vm788_vm0, %v782_v35, 0.0 }
 0x3bd   :  { %1000 = vadd.xlane.f32.xlu1 %v999_v55  ;;  %v1017_v55 = vsel %vm788_vm0, %v784_v28, 0.0 }
 0x3bf   :  { %v3636_v11 = vpop.xlane.xlu0 %871  ;;  %v3638_v63 = vpop.xlane.xlu2 %868 }
 0x3c0   :  { %v3642_v38 = vpop.xlane.xlu1 %874 }
 0x3c4   :  { %1006 = vadd.xlane.f32.xlu0 %v1005_v58  ;;  %1003 = vadd.xlane.f32.xlu2 %v1002_v30  ;;  %v1023_v58 = vsel %vm788_vm0, %v786_v33, 0.0  ;;  %v1020_v30 = vsel %vm788_vm0, %v785_v14, 0.0 }
 0x3c5   :  { %1009 = vadd.xlane.f32.xlu1 %v1008_v43  ;;  %v1026_v43 = vsel %vm788_vm0, %v787_v12, 0.0  ;;  %v3723_v12 = vadd.s32 4294967280, %v3714_v22 }
 0x3c7   :  { %v3657_v57 = vpop.xlane.xlu0 %880  ;;  %v3659_v24 = vpop.xlane.xlu2 %877  ;;  %v1117_v8 = vperm.slane %v3468_v49, %v3723_v12 }
 0x3c8   :  { %v3663_v39 = vpop.xlane.xlu1 %883 }
 0x3cc   :  { %1015 = vadd.xlane.f32.xlu0 %v1014_v47  ;;  %1012 = vadd.xlane.f32.xlu2 %v1011_v31 }
 0x3cd   :  { %1018 = vadd.xlane.f32.xlu1 %v1017_v55 }
 0x3cf   :  { %v3678_v53 = vpop.xlane.xlu0 %889  ;;  %v3680_v7 = vpop.xlane.xlu2 %886 }
 0x3d0   :  { %v3684_v23 = vpop.xlane.xlu1 %892 }
 0x3d4   :  { %1024 = vadd.xlane.f32.xlu0 %v1023_v58  ;;  %1021 = vadd.xlane.f32.xlu2 %v1020_v30  ;;  %v3726_v58 = vadd.s32 4294967288, %v3714_v22  ;;  %v1111_v30 = vperm.slane %v3451_v6, %v3714_v22 }
 0x3d5   :  { %1027 = vadd.xlane.f32.xlu1 %v1026_v43  ;;  %v3731_v43 = vadd.s32 4294967272, %v3714_v22 }
 0x3d6   :  { %v1141_v37 = vperm.slane %v3510_v17, %v3726_v58  ;;  %v1113_v21 = vperm.slane %v3449_v2, %v3726_v58  ;;  %v1156_v6 = vperm.slane %v3575_v45, %v3726_v58  ;;  %v1143_v2 = vperm.slane %v3516_v5, %v3723_v12 }
 0x3d7   :  { %v3690_v32 = vpop.xlane.xlu0 %898  ;;  %v3692_v61 = vpop.xlane.xlu2 %895  ;;  %5065 = vst [vmem:[#allocation10_spill] sm:$0xff] %v3731_v43  ;;  %v1121_v17 = vperm.slane %v3470_v9, %v3731_v43  ;;  %v1145_v10 = vperm.slane %v3533_v42, %v3731_v43  ;;  %v1158_v9 = vperm.slane %v3573_v60, %v3723_v12  ;;  %v3776_v42 = vadd.s32 4294967248, %v3714_v22 }
 0x3d8   :  { %v3694_v27 = vpop.xlane.xlu1 %901  ;;  %v1115_v49 = vsel %vm1114_vm1, %v1113_v21, %v1111_v30  ;;  %v1142_v45 = vsel %vm1114_vm1, %v1141_v37, %v1140_v13  ;;  %v1155_v21 = vperm.slane %v3558_v18, %v3714_v22  ;;  %v3766_v30 = vadd.s32 4294967256, %v3714_v22 }
 0x3d9   :  { %v1119_v15 = vsel %vm1118_vm2, %v1117_v8, %v1115_v49  ;;  %v1144_v8 = vsel %vm1118_vm2, %v1143_v2, %v1142_v45  ;;  %v1147_v37 = vperm.slane %v3531_v34, %v3751_v59  ;;  %v1125_v13 = vperm.slane %v3474_v44, %v3751_v59  ;;  %5068 = vst [vmem:[#allocation17_spill] sm:$0xff] %v3776_v42 }
 0x3da   :  { %5067 = vst [vmem:[#allocation16_spill] sm:$0xff] %v3766_v30  ;;  %v1157_v5 = vsel %vm1114_vm1, %v1156_v6, %v1155_v21  ;;  %v1146_v18 = vsel %vm1122_vm3, %v1145_v10, %v1144_v8  ;;  %v3780_v60 = vadd.s32 4294967240, %v3714_v22  ;;  %v1162_v6 = vperm.slane %v3596_v56, %v3751_v59 }
 0x3db   :  { %v1129_v44 = vperm.slane %v3491_v40, %v3766_v30  ;;  %v1160_v49 = vperm.slane %v3579_v26, %v3731_v43  ;;  %v1148_v2 = vsel %vm1126_vm4, %v1147_v37, %v1146_v18  ;;  %v1151_v45 = vperm.slane %v3554_v41, %v3776_v42 }
 0x3dc   :  { %5069 = vst [vmem:[#allocation18_spill] sm:$0xff] %v3780_v60  ;;  %v1170_v56 = vperm.slane %v3615_v54, %v3714_v22  ;;  %v1149_v26 = vperm.slane %v3537_v0, %v3766_v30  ;;  %v1133_v41 = vperm.slane %v3489_v16, %v3776_v42  ;;  %v1185_v8 = vperm.slane %v3680_v7, %v3714_v22 }
 0x3dd   :  { %v1137_v37 = vperm.slane %v3495_v51, %v3780_v60  ;;  %v1175_v7 = vperm.slane %v3636_v11, %v3731_v43 }
 0x3df   :  { %v3696_v1 = vpop.xlane.xlu0 %907  ;;  %v3698_v20 = vpop.xlane.xlu2 %904 }
 0x3e0   :  { %v3700_v46 = vpop.xlane.xlu1 %910 }
 0x3e7   :  { %v3702_v36 = vpop.xlane.xlu0 %916  ;;  %v3704_v35 = vpop.xlane.xlu2 %913 }
 0x3e8   :  { %v3706_v28 = vpop.xlane.xlu1 %919 }
 0x3ef   :  { %v3708_v47 = vpop.xlane.xlu0 %925  ;;  %v3710_v31 = vpop.xlane.xlu2 %922 }
 0x3f0   :  { %v3712_v55 = vpop.xlane.xlu1 %928 }
 0x3f1   :  { %5064 = vst [vmem:[#allocation7_spill] sm:$0xff] %v3712_v55  ;;  %v1123_v55 = vsel %vm1122_vm3, %v1121_v17, %v1119_v15  ;;  %v1159_v15 = vsel %vm1118_vm2, %v1158_v9, %v1157_v5  ;;  %v1164_v9 = vperm.slane %v3594_v25, %v3766_v30  ;;  %v1173_v5 = vperm.slane %v3638_v63, %v3723_v12 }
 0x3f2   :  { %v1127_v34 = vsel %vm1126_vm4, %v1125_v13, %v1123_v55  ;;  %v1171_v55 = vperm.slane %v3621_v3, %v3726_v58  ;;  %v1161_v21 = vsel %vm1122_vm3, %v1160_v49, %v1159_v15  ;;  %v1186_v3 = vperm.slane %v3678_v53, %v3726_v58 }
 0x3f3   :  { %v1163_v54 = vsel %vm1126_vm4, %v1162_v6, %v1161_v21  ;;  %v1131_v0 = vsel %vm1130_vm5, %v1129_v44, %v1127_v34  ;;  %v1150_v25 = vsel %vm1130_vm5, %v1149_v26, %v1148_v2  ;;  %v1153_v63 = vperm.slane %v3552_v52, %v3780_v60 }
 0x3f4   :  { %v1152_v16 = vsel %vm1134_vm6, %v1151_v45, %v1150_v25  ;;  %v1166_v13 = vperm.slane %v3600_v19, %v3776_v42  ;;  %v1172_v53 = vsel %vm1114_vm1, %v1171_v55, %v1170_v56  ;;  %v1165_v18 = vsel %vm1130_vm5, %v1164_v9, %v1163_v54 }
 0x3f5   :  { %v1174_v15 = vsel %vm1118_vm2, %v1173_v5, %v1172_v53  ;;  %v1188_v6 = vperm.slane %v3684_v23, %v3723_v12  ;;  %v1201_v52 = vperm.slane %v3704_v35, %v3726_v58  ;;  %v1187_v34 = vsel %vm1114_vm1, %v1186_v3, %v1185_v8 }
 0x3f6   :  { %v1190_v19 = vperm.slane %v3692_v61, %v3731_v43  ;;  %v1135_v49 = vsel %vm1134_vm6, %v1133_v41, %v1131_v0  ;;  %v1168_v2 = vperm.slane %v3617_v29, %v3780_v60  ;;  %v1200_v23 = vperm.slane %v3700_v46, %v3714_v22 }
 0x3f7   :  { %v3716_v50 = vpop.xlane.xlu0 %934  ;;  %v3718_v33 = vpop.xlane.xlu2 %931  ;;  %v1154_v61 = vsel %vm1138_vm7, %v1153_v63, %v1152_v16  ;;  %v1176_v55 = vsel %vm1122_vm3, %v1175_v7, %v1174_v15  ;;  %v1179_v29 = vperm.slane %v3659_v24, %v3766_v30  ;;  %v1189_v46 = vsel %vm1118_vm2, %v1188_v6, %v1187_v34 }
 0x3f8   :  { %v3720_v14 = vpop.xlane.xlu1 %937  ;;  %v1215_v44 = vperm.slane %v3716_v50, %v3714_v22  ;;  %v1167_v50 = vsel %vm1134_vm6, %v1166_v13, %v1165_v18  ;;  %v1202_v21 = vsel %vm1114_vm1, %v1201_v52, %v1200_v23  ;;  %v1177_v9 = vperm.slane %v3642_v38, %v3751_v59 }
 0x3f9   :  { %v1216_v11 = vperm.slane %v3720_v14, %v3726_v58  ;;  %v1203_v14 = vperm.slane %v3702_v36, %v3723_v12  ;;  %v1191_v5 = vsel %vm1122_vm3, %v1190_v19, %v1189_v46  ;;  %v1169_v24 = vsel %vm1138_vm7, %v1168_v2, %v1167_v50 }
 0x3fa   :  { %v1178_v8 = vsel %vm1126_vm4, %v1177_v9, %v1176_v55  ;;  %v1181_v38 = vperm.slane %v3657_v57, %v3776_v42  ;;  %v1207_v25 = vperm.slane %v3710_v31, %v3751_v59  ;;  %v1194_v16 = vperm.slane %v3694_v27, %v3766_v30 }
 0x3fb   :  { %v1217_v36 = vsel %vm1114_vm1, %v1216_v11, %v1215_v44  ;;  %v1204_v0 = vsel %vm1118_vm2, %v1203_v14, %v1202_v21  ;;  %v1205_v13 = vperm.slane %v3706_v28, %v3731_v43  ;;  %v1196_v53 = vperm.slane %v3698_v20, %v3776_v42 }
 0x3fc   :  { %v1209_v15 = vperm.slane %v3708_v47, %v3766_v30  ;;  %v1183_v34 = vperm.slane %v3663_v39, %v3780_v60  ;;  %v1198_v47 = vperm.slane %v3696_v1, %v3780_v60  ;;  %v1213_v50 = vperm.slane %v3718_v33, %v3780_v60 }
 0x3fd   :  { %v1206_v18 = vsel %vm1122_vm3, %v1205_v13, %v1204_v0 }
 0x3ff   :  { %v3743_v62 = vpop.xlane.xlu0 %943  ;;  %v3745_v4 = vpop.xlane.xlu2 %940 }
 0x400   :  { %v3755_v48 = vpop.xlane.xlu1 %946  ;;  %v1218_v35 = vperm.slane %v3745_v4, %v3723_v12  ;;  %v1192_v4 = vperm.slane %v3690_v32, %v3751_v59  ;;  %v1220_v41 = vperm.slane %v3743_v62, %v3731_v43  ;;  %v1180_v62 = vsel %vm1130_vm5, %v1179_v29, %v1178_v8 }
 0x401   :  { %v1222_v27 = vperm.slane %v3755_v48, %v3751_v59  ;;  %v1182_v20 = vsel %vm1134_vm6, %v1181_v38, %v1180_v62 }
 0x402   :  { %v1219_v54 = vsel %vm1118_vm2, %v1218_v35, %v1217_v36  ;;  %v1193_v63 = vsel %vm1126_vm4, %v1192_v4, %v1191_v5  ;;  %v1184_v14 = vsel %vm1138_vm7, %v1183_v34, %v1182_v20 }
 0x403   :  { %v1221_v57 = vsel %vm1122_vm3, %v1220_v41, %v1219_v54  ;;  %v1195_v11 = vsel %vm1130_vm5, %v1194_v16, %v1193_v63 }
 0x404   :  { %v1223_v48 = vsel %vm1126_vm4, %v1222_v27, %v1221_v57  ;;  %v1197_v23 = vsel %vm1134_vm6, %v1196_v53, %v1195_v11 }
 0x405   :  { %v1199_v51 = vsel %vm1138_vm7, %v1198_v47, %v1197_v23 }
 0x407   :  { %v3790_v17 = vpop.xlane.xlu0 %952  ;;  %v3792_v10 = vpop.xlane.xlu2 %949 }
 0x408   :  { %v3801_v40 = vpop.xlane.xlu1 %955  ;;  %v1224_v7 = vperm.slane %v3792_v10, %v3766_v30  ;;  %v1208_v10 = vsel %vm1126_vm4, %v1207_v25, %v1206_v18  ;;  %v1226_v2 = vperm.slane %v3790_v17, %v3776_v42 }
 0x409   :  { %v1210_v1 = vsel %vm1130_vm5, %v1209_v15, %v1208_v10  ;;  %v1228_v33 = vperm.slane %v3801_v40, %v3780_v60 }
 0x40a   :  { %v1225_v35 = vsel %vm1130_vm5, %v1224_v7, %v1223_v48 }
 0x40f   :  { %v962_v45 = vpop.xlane.xlu0 %961  ;;  %v959_v56 = vpop.xlane.xlu2 %958 }
 0x410   :  { %v965_v26 = vpop.xlane.xlu1 %964  ;;  %v1231_v3 = vperm.slane %v962_v45, %v3726_v58  ;;  %v1230_v32 = vperm.slane %v959_v56, %v3714_v22  ;;  %v1139_v56 = vsel %vm1138_vm7, %v1137_v37, %v1135_v49  ;;  %v1227_v37 = vsel %vm1134_vm6, %v1226_v2, %v1225_v35 }
 0x411   :  { %v1233_v31 = vperm.slane %v965_v26, %v3723_v12  ;;  %v1276_v55 = vsel %vm1275_vm8, %v1154_v61, %v1139_v56  ;;  %v5070_v26 = vld [vmem:[#allocation7_spill] sm:$0xff]  ;;  %v1229_v41 = vsel %vm1138_vm7, %v1228_v33, %v1227_v37 }
 0x412   :  { %v1232_v28 = vsel %vm1114_vm1, %v1231_v3, %v1230_v32  ;;  %v1211_v29 = vperm.slane %v5070_v26, %v3776_v42  ;;  %v1278_v46 = vsel %vm1277_vm9, %v1169_v24, %v1276_v55 }
 0x413   :  { %v1234_v39 = vsel %vm1118_vm2, %v1233_v31, %v1232_v28  ;;  %v1280_v61 = vsel %vm1279_vm10, %v1184_v14, %v1278_v46 }
 0x414   :  { %v1212_v49 = vsel %vm1134_vm6, %v1211_v29, %v1210_v1  ;;  %v1282_v32 = vsel %vm1281_vm11, %v1199_v51, %v1280_v61 }
 0x415   :  { %v1214_v21 = vsel %vm1138_vm7, %v1213_v50, %v1212_v49 }
 0x416   :  { %v1284_v38 = vsel %vm1283_vm12, %v1214_v21, %v1282_v32  ;;  %v3989_v32 = vld [vmem:[%s5005_s1 + $0x28] sm:$0xff] }
 0x417   :  { %v971_v6 = vpop.xlane.xlu0 %970  ;;  %v968_v52 = vpop.xlane.xlu2 %967  ;;  %v1286_v25 = vsel %vm1285_vm13, %v1229_v41, %v1284_v38  ;;  %v4001_v38 = vld [vmem:[%s5005_s1 + $0x68] sm:$0xff] }
 0x418   :  { %v1235_v19 = vperm.slane %v968_v52, %v3731_v43  ;;  %v974_v44 = vpop.xlane.xlu1 %973  ;;  %v1237_v45 = vperm.slane %v971_v6, %v3751_v59 }
 0x419   :  { %v1239_v9 = vperm.slane %v974_v44, %v3766_v30 }
 0x41a   :  { %v1236_v17 = vsel %vm1122_vm3, %v1235_v19, %v1234_v39 }
 0x41b   :  { %v1238_v4 = vsel %vm1126_vm4, %v1237_v45, %v1236_v17 }
 0x41c   :  { %v1240_v40 = vsel %vm1130_vm5, %v1239_v9, %v1238_v4 }
 0x41f   :  { %v980_v5 = vpop.xlane.xlu0 %979  ;;  %v977_v36 = vpop.xlane.xlu2 %976 }
 0x420   :  { %v1243_v24 = vperm.slane %v980_v5, %v3780_v60  ;;  %v1241_v54 = vperm.slane %v977_v36, %v3776_v42  ;;  %v983_v3 = vpop.xlane.xlu1 %982 }
 0x421   :  { %v1245_v6 = vperm.slane %v983_v3, %v3714_v22  ;;  %v3977_v3 = vld [vmem:[%s5005_s1] sm:$0xff] }
 0x422   :  { %v1242_v8 = vsel %vm1134_vm6, %v1241_v54, %v1240_v40  ;;  %v3983_v40 = vld [vmem:[%s5005_s1 + $0x10] sm:$0xff] }
 0x423   :  { %v1244_v0 = vsel %vm1138_vm7, %v1243_v24, %v1242_v8  ;;  %v3995_v8 = vld [vmem:[%s5005_s1 + $0x40] sm:$0xff] }
 0x424   :  { %v1288_v62 = vsel %vm1287_vm14, %v1244_v0, %v1286_v25  ;;  %v5071_v0 = vmov 1  }
 0x425   :  { %v1293_v63 = vsel %vm5027_vm15, %v1288_v62, 0.0  ;;  %vm5028_vm15 = vcmask 517120  }
 0x426   :  { %1294 = vadd.xlane.f32.xlu2 %v1293_v63 }
 0x427   :  { %v989_v16 = vpop.xlane.xlu0 %988  ;;  %v986_v13 = vpop.xlane.xlu2 %985 }
 0x428   :  { %v992_v53 = vpop.xlane.xlu1 %991  ;;  %v1246_v28 = vperm.slane %v986_v13, %v3726_v58  ;;  %v1248_v52 = vperm.slane %v989_v16, %v3723_v12 }
 0x429   :  { %v1250_v23 = vperm.slane %v992_v53, %v3731_v43 }
 0x42a   :  { %v1247_v20 = vsel %vm1114_vm1, %v1246_v28, %v1245_v6  ;;  %v1351_v28 = vld [vmem:[%s5005_s1 + $0x38] sm:$0xff] }
 0x42b   :  { %v1249_v48 = vsel %vm1118_vm2, %v1248_v52, %v1247_v20 }
 0x42c   :  { %v1251_v56 = vsel %vm1122_vm3, %v1250_v23, %v1249_v48 }
 0x42f   :  { %v998_v57 = vpop.xlane.xlu0 %997  ;;  %v995_v7 = vpop.xlane.xlu2 %994 }
 0x430   :  { %v1001_v31 = vpop.xlane.xlu1 %1000  ;;  %v1252_v2 = vperm.slane %v995_v7, %v3751_v59  ;;  %v1254_v1 = vperm.slane %v998_v57, %v3766_v30 }
 0x431   :  { %v1256_v33 = vperm.slane %v1001_v31, %v3776_v42 }
 0x432   :  { %v1253_v50 = vsel %vm1126_vm4, %v1252_v2, %v1251_v56  ;;  %v4036_v2 = vld [vmem:[%s5004_s0 + $0x4] sm:$0xf]  ;;  %v4049_v56 = vld [vmem:[%s5005_s1 + $0x50] sm:$0xff] }
 0x433   :  { %v1255_v29 = vsel %vm1130_vm5, %v1254_v1, %v1253_v50  ;;  %v4039_v23 = vperm.slane %v4036_v2, 0  ;;  %v5074_v1 = vmov 0   ;;  %v4057_v50 = vld [vmem:[%s5005_s1 + $0x60] sm:$0xff] }
 0x434   :  { %v1257_v9 = vsel %vm1134_vm6, %v1256_v33, %v1255_v29 }
 0x437   :  { %v1007_v18 = vpop.xlane.xlu0 %1006  ;;  %v1004_v15 = vpop.xlane.xlu2 %1003 }
 0x438   :  { %v1010_v27 = vpop.xlane.xlu1 %1009  ;;  %v1260_v34 = vperm.slane %v1007_v18, %v3714_v22  ;;  %v1258_v46 = vperm.slane %v1004_v15, %v3780_v60  ;;  %v1345_v15 = vld [vmem:[%s5005_s1 + $0x8] sm:$0xff] }
 0x439   :  { %v1261_v10 = vperm.slane %v1010_v27, %v3726_v58  ;;  %v1348_v27 = vld [vmem:[%s5005_s1 + $0x20] sm:$0xff] }
 0x43a   :  { %v1259_v36 = vsel %vm1138_vm7, %v1258_v46, %v1257_v9  ;;  %v4092_v9 = vld [vmem:[%s5005_s1 + $0x58] sm:$0xff] }
 0x43b   :  { %v1262_v35 = vsel %vm1114_vm1, %v1261_v10, %v1260_v34  ;;  %v1347_v10 = vld [vmem:[%s5005_s1 + $0x18] sm:$0xff] }
 0x43f   :  { %v1016_v19 = vpop.xlane.xlu0 %1015  ;;  %v1013_v44 = vpop.xlane.xlu2 %1012 }
 0x440   :  { %v1263_v11 = vperm.slane %v1013_v44, %v3723_v12  ;;  %v1019_v47 = vpop.xlane.xlu1 %1018  ;;  %v1265_v39 = vperm.slane %v1016_v19, %v3731_v43  ;;  %v1350_v44 = vld [vmem:[%s5005_s1 + $0x30] sm:$0xff] }
 0x441   :  { %v1267_v55 = vperm.slane %v1019_v47, %v3751_v59  ;;  %v5072_v47 = vmov 2  }
 0x442   :  { %v1264_v45 = vsel %vm1118_vm2, %v1263_v11, %v1262_v35 }
 0x443   :  { %v1266_v17 = vsel %vm1122_vm3, %v1265_v39, %v1264_v45  ;;  %v5073_v45 = vmov 3  }
 0x444   :  { %v1268_v4 = vsel %vm1126_vm4, %v1267_v55, %v1266_v17  ;;  %v4063_v55 = vld [vmem:[%s5005_s1 + $0x78] sm:$0xff] }
 0x447   :  { %v1025_v14 = vpop.xlane.xlu0 %1024  ;;  %v1022_v26 = vpop.xlane.xlu2 %1021 }
 0x448   :  { %v1271_v51 = vperm.slane %v1025_v14, %v3776_v42  ;;  %v1269_v37 = vperm.slane %v1022_v26, %v3766_v30  ;;  %v1028_v49 = vpop.xlane.xlu1 %1027 }
 0x449   :  { %v1273_v21 = vperm.slane %v1028_v49, %v3780_v60  ;;  %v4076_v49 = vld [vmem:[%s5005_s1 + $0x48] sm:$0xff] }
 0x44a   :  { %v1270_v61 = vsel %vm1130_vm5, %v1269_v37, %v1268_v4  ;;  %v101_v4 = vld [vmem:[%s5008_s4] sm:$0x1] }
 0x44b   :  { %v1272_v5 = vsel %vm1134_vm6, %v1271_v51, %v1270_v61 }
 0x44c   :  { %v1274_v41 = vsel %vm1138_vm7, %v1273_v21, %v1272_v5 }
 0x44d   :  { %v1289_v24 = vsel %vm1275_vm8, %v1274_v41, %v1259_v36  ;;  %v4102_v41 = vld [vmem:[%s5005_s1 + $0x70] sm:$0xff] }
 0x44e   :  { %v1297_v54 = vsel %vm5028_vm15, %v1289_v24, 0.0  ;;  %vm1342_vm15 = vcmask 73728  }
 0x44f   :  { %1298 = vadd.xlane.f32.xlu0 %v1297_v54 }
 0x463   :  { %1356 = vperm.xlu0 %2572, %v3977_v3  }
 0x46b   :  { %1366 = vperm.xlu0 %2572, %v3983_v40  }
 0x473   :  { %1381 = vperm.xlu0 %2572, %v3989_v32  }
 0x47b   :  { %1560 = vperm.xlu0 %2572, %v3995_v8  }
 0x483   :  { %1585 = vperm.xlu0 %2572, %v4001_v38  }
 0x48b   :  { %2581 = vset.pattern.permute.xlu0 %v5071_v0 }
 0x48c   :  { %1404 = vperm.xlu0 %2581, %v3977_v3  }
 0x494   :  { %1424 = vperm.xlu0 %2581, %v3989_v32  }
 0x499   :  { %v1295_v25 = vpop.xlane.xlu2 %1294 }
 0x49a   :  { %v1302_v62 = vperm.slane %v1295_v25, 0  ;;  %v1303_v63 = vperm.slane %v1295_v25, 1  ;;  %v1304_v16 = vperm.slane %v1295_v25, 2  ;;  %v1305_v13 = vperm.slane %v1295_v25, 3 }
 0x49b   :  { %v1306_v53 = vperm.slane %v1295_v25, 4  ;;  %v1307_v57 = vperm.slane %v1295_v25, 5  ;;  %v1308_v7 = vperm.slane %v1295_v25, 6  ;;  %v1309_v31 = vperm.slane %v1295_v25, 7 }
 0x49c   :  { %1312 = vst [vmem:[#allocation1] ss:$9 sm:$0xff] %v1302_v62 }
 0x49d   :  { %1314 = vst [vmem:[#allocation1 + $0x1] ss:$9 sm:$0xff] %v1303_v63 }
 0x49e   :  { %1316 = vst [vmem:[#allocation1 + $0x2] ss:$9 sm:$0xff] %v1304_v16 }
 0x49f   :  { %1318 = vst [vmem:[#allocation1 + $0x3] ss:$9 sm:$0xff] %v1305_v13 }
 0x4a0   :  { %1320 = vst [vmem:[#allocation1 + $0x4] ss:$9 sm:$0xff] %v1306_v53 }
 0x4a1   :  { %1322 = vst [vmem:[#allocation1 + $0x5] ss:$9 sm:$0xff] %v1307_v57 }
 0x4a2   :  { %1324 = vst [vmem:[#allocation1 + $0x6] ss:$9 sm:$0xff] %v1308_v7 }
 0x4a3   :  { %1326 = vst [vmem:[#allocation1 + $0x7] ss:$9 sm:$0xff] %v1309_v31 }
 0x4aa   :  { %v1327_v18 = vld [vmem:[#allocation1] sm:$0xff] }
 0x4ab   :  { %1332 = vperm.xlu1 %2570, %v1327_v18  }
 0x4b3   :  { %1361 = vperm.xlu1 %2570, %v1345_v15  }
 0x4bb   :  { %1376 = vperm.xlu1 %2570, %v1348_v27  }
 0x4c2   :  { %v1299_v6 = vpop.xlane.xlu0 %1298 }
 0x4c3   :  { %1391 = vperm.xlu1 %2570, %v1351_v28   ;;  %v1310_v52 = vperm.slane %v1299_v6, 0  ;;  %v1311_v20 = vperm.slane %v1299_v6, 1 }
 0x4c5   :  { %1328 = vst [vmem:[#allocation1] ss:$9 sm:$0xff] %v1310_v52 }
 0x4c6   :  { %1329 = vst [vmem:[#allocation1 + $0x1] ss:$9 sm:$0xff] %v1311_v20 }
 0x4cb   :  { %2574 = vset.pattern.permute.xlu1 %v5071_v0 }
 0x4cc   :  { %1412 = vperm.xlu1 %2574, %v3983_v40  }
 0x4cd   :  { %v1330_v34 = vld [vmem:[#allocation1] sm:$0xff] }
 0x4ce   :  { %1335 = vperm.xlu2 %2571, %v1330_v34  }
 0x4d4   :  { %1420 = vperm.xlu1 %2574, %v1348_v27  }
 0x4d5   :  { %v4021_v19 = vpop.permute.xlu0 %1356 }
 0x4d6   :  { %1371 = vperm.xlu2 %2571, %v1347_v10  }
 0x4dc   :  { %1432 = vperm.xlu1 %2574, %v1351_v28  }
 0x4dd   :  { %v4026_v11 = vpop.permute.xlu0 %1366 }
 0x4de   :  { %1386 = vperm.xlu2 %2571, %v1350_v44  }
 0x4e4   :  { %2576 = vset.pattern.permute.xlu1 %v5072_v47 }
 0x4e5   :  { %1461 = vperm.xlu1 %2576, %v3983_v40   ;;  %v4030_v48 = vpop.permute.xlu0 %1381 }
 0x4e6   :  { %2573 = vset.pattern.permute.xlu2 %v5071_v0 }
 0x4e7   :  { %1408 = vperm.xlu2 %2573, %v1345_v15  }
 0x4ed   :  { %1469 = vperm.xlu1 %2576, %v1348_v27   ;;  %v1561_v35 = vpop.permute.xlu0 %1560 }
 0x4ee   :  { %v1598_v39 = vmul.f32 %v1561_v35, %v4039_v23 }
 0x4ef   :  { %1416 = vperm.xlu2 %2573, %v1347_v10  }
 0x4f0   :  { %1614 = vrot.lane.b32.xlu0 %v1598_v39, %s2703_s27 }
 0x4f5   :  { %1481 = vperm.xlu1 %2576, %v1351_v28  }
 0x4f7   :  { %1428 = vperm.xlu2 %2573, %v1350_v44  }
 0x4fd   :  { %2578 = vset.pattern.permute.xlu1 %v5073_v45 }
 0x4fe   :  { %1510 = vperm.xlu1 %2578, %v3983_v40  }
 0x4ff   :  { %2575 = vset.pattern.permute.xlu2 %v5072_v47 }
 0x500   :  { %1457 = vperm.xlu2 %2575, %v1345_v15  }
 0x506   :  { %1518 = vperm.xlu1 %2578, %v1348_v27  }
 0x508   :  { %1465 = vperm.xlu2 %2575, %v1347_v10  }
 0x50e   :  { %1530 = vperm.xlu1 %2578, %v1351_v28  }
 0x510   :  { %1477 = vperm.xlu2 %2575, %v1350_v44  }
 0x516   :  { %2580 = vset.pattern.permute.xlu1 %v5074_v1 }
 0x517   :  { %1570 = vperm.xlu1 %2580, %v4049_v56  }
 0x518   :  { %2577 = vset.pattern.permute.xlu2 %v5073_v45 }
 0x519   :  { %1506 = vperm.xlu2 %2577, %v1345_v15  }
 0x51d   :  { %v1333_v17 = vpop.permute.xlu1 %1332 }
 0x51e   :  { %v1337_v46 = vperm.slane %v1333_v17, %v3714_v22 }
 0x51f   :  { %1580 = vperm.xlu1 %2580, %v4057_v50  }
 0x521   :  { %1514 = vperm.xlu2 %2577, %v1347_v10   ;;  %v1586_v10 = vpop.permute.xlu0 %1585 }
 0x522   :  { %v1603_v35 = vmul.f32 %v1586_v10, %v4039_v23 }
 0x525   :  { %v4065_v14 = vpop.permute.xlu1 %1361 }
 0x527   :  { %1595 = vperm.xlu1 %2580, %v4063_v55  }
 0x528   :  { %v1336_v26 = vpop.permute.xlu2 %1335 }
 0x529   :  { %1526 = vperm.xlu2 %2577, %v1350_v44   ;;  %v1338_v29 = vperm.slane %v1336_v26, %v3726_v58 }
 0x52b   :  { %v1339_v37 = vsel %vm1114_vm1, %v1338_v29, %v1337_v46 }
 0x52c   :  { %v1341_v61 = vadd.f32 %v1339_v37, %v101_v4 }
 0x52d   :  { %v4070_v51 = vpop.permute.xlu1 %1376 }
 0x52e   :  { %1343 = vst.msk [vmem:[#allocation2] sm:$0x1] %vm1342_vm15, %v1341_v61 }
 0x52f   :  { %2582 = vset.pattern.permute.xlu1 %v5071_v0 }
 0x530   :  { %v4079_v33 = vpop.permute.xlu2 %1371 }
 0x531   :  { %2579 = vset.pattern.permute.xlu2 %v5074_v1 }
 0x532   :  { %1565 = vperm.xlu2 %2579, %v4076_v49  }
 0x535   :  { %v4087_v21 = vpop.permute.xlu1 %1391 }
 0x538   :  { %v4094_v5 = vpop.permute.xlu2 %1386 }
 0x53a   :  { %1575 = vperm.xlu2 %2579, %v4092_v9  }
 0x53e   :  { %v4097_v36 = vpop.permute.xlu1 %1412 }
 0x541   :  { %v4104_v24 = vpop.permute.xlu2 %1408 }
 0x542   :  { %1590 = vperm.xlu2 %2579, %v4102_v41  }
 0x546   :  { %v4107_v54 = vpop.permute.xlu1 %1420 }
 0x549   :  { %v4109_v40 = vpop.permute.xlu2 %1416 }
 0x54a   :  { %2583 = vset.pattern.permute.xlu2 %v5071_v0 }
 0x54e   :  { %v4112_v25 = vpop.permute.xlu1 %1432 }
 0x551   :  { %v4114_v62 = vpop.permute.xlu2 %1428 }
 0x557   :  { %v4116_v63 = vpop.permute.xlu1 %1461 }
 0x55a   :  { %v4118_v16 = vpop.permute.xlu2 %1457 }
 0x55f   :  { %v4120_v13 = vpop.permute.xlu1 %1469 }
 0x562   :  { %v4122_v53 = vpop.permute.xlu2 %1465 }
 0x567   :  { %v4124_v57 = vpop.permute.xlu1 %1481 }
 0x56a   :  { %v4126_v7 = vpop.permute.xlu2 %1477 }
 0x570   :  { %v4128_v31 = vpop.permute.xlu1 %1510 }
 0x573   :  { %v4130_v18 = vpop.permute.xlu2 %1506 }
 0x578   :  { %v4132_v0 = vpop.permute.xlu1 %1518 }
 0x57b   :  { %v4134_v15 = vpop.permute.xlu2 %1514 }
 0x580   :  { %v4136_v27 = vpop.permute.xlu1 %1530 }
 0x583   :  { %v4138_v28 = vpop.permute.xlu2 %1526 }
 0x589   :  { %v1571_v6 = vpop.permute.xlu1 %1570 }
 0x58a   :  { %v1600_v52 = vmul.f32 %v1571_v6, %v4039_v23  ;;  %v4169_v6 = vpop.permute.xlu0 %1404 }
 0x58c   :  { %1618 = vrot.lane.b32.xlu1 %v1600_v52, %s2703_s27  ;;  %v1566_v20 = vpop.permute.xlu2 %1565 }
 0x58d   :  { %v1599_v34 = vmul.f32 %v1566_v20, %v4039_v23 }
 0x58f   :  { %1616 = vrot.lane.b32.xlu2 %v1599_v34, %s2703_s27 }
 0x591   :  { %v1581_v44 = vpop.permute.xlu1 %1580 }
 0x592   :  { %v1602_v39 = vmul.f32 %v1581_v44, %v4039_v23  ;;  %v4173_v20 = vpop.permute.xlu0 %1424  ;;  %v4178_v44 = vperm.slane %v4036_v2, 1 }
 0x594   :  { %1624 = vrot.lane.b32.xlu1 %v1603_v35, %s2703_s27  ;;  %v1576_v17 = vpop.permute.xlu2 %1575 }
 0x595   :  { %v1601_v26 = vmul.f32 %v1576_v17, %v4039_v23 }
 0x597   :  { %1620 = vrot.lane.b32.xlu0 %v1601_v26, %s2703_s27  ;;  %1622 = vrot.lane.b32.xlu2 %v1602_v39, %s2703_s27 }
 0x599   :  { %v1596_v29 = vpop.permute.xlu1 %1595 }
 0x59a   :  { %v1605_v37 = vmul.f32 %v1596_v29, %v4039_v23  ;;  %v4180_v35 = vpop.permute.xlu0 %1614 }
 0x59c   :  { %1647 = vperm.xlu1 %2582, %v3995_v8   ;;  %v1591_v46 = vpop.permute.xlu2 %1590 }
 0x59d   :  { %v1604_v4 = vmul.f32 %v1591_v46, %v4039_v23 }
 0x59f   :  { %1626 = vrot.lane.b32.xlu0 %v1604_v4, %s2703_s27  ;;  %1628 = vrot.lane.b32.xlu2 %v1605_v37, %s2703_s27 }
 0x5a4   :  { %1659 = vperm.xlu1 %2582, %v4092_v9  }
 0x5a7   :  { %1651 = vperm.xlu0 %2581, %v4076_v49   ;;  %1655 = vperm.xlu2 %2583, %v4049_v56  }
 0x5ac   :  { %1667 = vperm.xlu1 %2582, %v4001_v38  }
 0x5af   :  { %1671 = vperm.xlu0 %2581, %v4102_v41   ;;  %1663 = vperm.xlu2 %2583, %v4057_v50  }
 0x5b4   :  { %2586 = vset.pattern.permute.xlu1 %v5072_v47 }
 0x5b7   :  { %2584 = vset.pattern.permute.xlu0 %v5072_v47  ;;  %1675 = vperm.xlu2 %2583, %v4063_v55  }
 0x5b8   :  { %1453 = vperm.xlu0 %2584, %v3977_v3  }
 0x5bf   :  { %2585 = vset.pattern.permute.xlu2 %v5072_v47 }
 0x5c0   :  { %1473 = vperm.xlu0 %2584, %v3989_v32  }
 0x5e9   :  { %v4167_v61 = vpop.permute.xlu2 %1616 }
 0x5f1   :  { %v4171_v52 = vpop.permute.xlu2 %1622 }
 0x5f9   :  { %v4175_v34 = vpop.permute.xlu2 %1628 }
 0x5fe   :  { %v1619_v10 = vpop.permute.xlu1 %1618 }
 0x601   :  { %v1656_v39 = vpop.permute.xlu2 %1655 }
 0x602   :  { %v1680_v47 = vmul.f32 %v1656_v39, %v4178_v44 }
 0x604   :  { %1698 = vrot.lane.b32.xlu2 %v1680_v47, %s2703_s27 }
 0x606   :  { %v4184_v17 = vpop.permute.xlu1 %1624 }
 0x609   :  { %v4186_v26 = vpop.permute.xlu0 %1620  ;;  %v1664_v47 = vpop.permute.xlu2 %1663 }
 0x60e   :  { %v1648_v29 = vpop.permute.xlu1 %1647 }
 0x60f   :  { %v1678_v46 = vmul.f32 %v1648_v29, %v4178_v44 }
 0x611   :  { %1694 = vrot.lane.b32.xlu1 %v1678_v46, %s2703_s27  ;;  %v4190_v37 = vpop.permute.xlu0 %1626  ;;  %v1682_v46 = vmul.f32 %v1664_v47, %v4178_v44 }
 0x616   :  { %v1660_v4 = vpop.permute.xlu1 %1659 }
 0x617   :  { %v1681_v60 = vmul.f32 %v1660_v4, %v4178_v44  ;;  %v1397_v4 = vmul.f32 %v4039_v23, %v4026_v11  ;;  %v1439_v11 = vmul.f32 %v4178_v44, %v4109_v40  ;;  %v1396_v40 = vmul.f32 %v4039_v23, %v4065_v14 }
 0x618   :  { %v1442_v14 = vmul.f32 %v4178_v44, %v4114_v62 }
 0x619   :  { %1700 = vrot.lane.b32.xlu1 %v1681_v60, %s2703_s27  ;;  %v1652_v42 = vpop.permute.xlu0 %1651  ;;  %v1676_v60 = vpop.permute.xlu2 %1675 }
 0x61a   :  { %v1679_v39 = vmul.f32 %v1652_v42, %v4178_v44  ;;  %v1685_v42 = vmul.f32 %v1676_v60, %v4178_v44 }
 0x61c   :  { %1696 = vrot.lane.b32.xlu0 %v1679_v39, %s2703_s27 }
 0x61e   :  { %v1668_v30 = vpop.permute.xlu1 %1667 }
 0x61f   :  { %v1683_v59 = vmul.f32 %v1668_v30, %v4178_v44  ;;  %v4223_v30 = vperm.slane %v4036_v2, 3 }
 0x621   :  { %1704 = vrot.lane.b32.xlu2 %v1683_v59, %s2703_s27  ;;  %v1672_v29 = vpop.permute.xlu0 %1671  ;;  %v4218_v59 = vperm.slane %v4036_v2, 2 }
 0x622   :  { %v1684_v43 = vmul.f32 %v1672_v29, %v4178_v44 }
 0x623   :  { %v1487_v39 = vmul.f32 %v4218_v59, %v4116_v63  ;;  %v1398_v63 = vmul.f32 %v4039_v23, %v4079_v33  ;;  %v1486_v33 = vmul.f32 %v4218_v59, %v4118_v16 }
 0x624   :  { %1702 = vrot.lane.b32.xlu0 %v1682_v46, %s2703_s27  ;;  %1706 = vrot.lane.b32.xlu1 %v1684_v43, %s2703_s27  ;;  %v1438_v43 = vmul.f32 %v4178_v44, %v4097_v36 }
 0x629   :  { %1727 = vperm.xlu2 %2585, %v3995_v8  }
 0x62a   :  { %v4235_v2 = vpop.permute.xlu0 %1453 }
 0x62c   :  { %1708 = vrot.lane.b32.xlu0 %v1685_v42, %s2703_s27  ;;  %1731 = vperm.xlu1 %2586, %v4076_v49   ;;  %v1488_v42 = vmul.f32 %v4218_v59, %v4122_v53 }
 0x631   :  { %1739 = vperm.xlu2 %2585, %v4092_v9  }
 0x632   :  { %v4254_v53 = vpop.permute.xlu0 %1473 }
 0x634   :  { %1735 = vperm.xlu0 %2584, %v4049_v56   ;;  %1743 = vperm.xlu1 %2586, %v4057_v50  }
 0x639   :  { %1747 = vperm.xlu2 %2585, %v4001_v38  }
 0x63c   :  { %1755 = vperm.xlu0 %2584, %v4063_v55   ;;  %1751 = vperm.xlu1 %2586, %v4102_v41  }
 0x641   :  { %2588 = vset.pattern.permute.xlu2 %v5073_v45 }
 0x644   :  { %2587 = vset.pattern.permute.xlu0 %v5073_v45  ;;  %2589 = vset.pattern.permute.xlu1 %v5073_v45  ;;  %v1446_v45 = vadd.f32 %v1438_v43, %v1397_v4  ;;  %v1447_v4 = vadd.f32 %v1439_v11, %v1398_v63 }
 0x645   :  { %1502 = vperm.xlu0 %2587, %v3977_v3   ;;  %v1536_v3 = vmul.f32 %v4223_v30, %v4128_v31  ;;  %v1437_v31 = vmul.f32 %v4178_v44, %v4104_v24 }
 0x647   :  { %v1445_v24 = vadd.f32 %v1437_v31, %v1396_v40  ;;  %v1540_v40 = vmul.f32 %v4223_v30, %v4138_v28 }
 0x64d   :  { %1522 = vperm.xlu0 %2587, %v3989_v32   ;;  %v1495_v32 = vadd.f32 %v1487_v39, %v1446_v45  ;;  %v1537_v39 = vmul.f32 %v4223_v30, %v4134_v15  ;;  %v1440_v15 = vmul.f32 %v4178_v44, %v4107_v54  ;;  %v1489_v54 = vmul.f32 %v4218_v59, %v4120_v13 }
 0x64f   :  { %v1544_v47 = vadd.f32 %v1536_v3, %v1495_v32  ;;  %v1496_v3 = vadd.f32 %v1488_v42, %v1447_v4  ;;  %v1535_v32 = vmul.f32 %v4223_v30, %v4130_v18  ;;  %v1399_v42 = vmul.f32 %v4039_v23, %v4070_v51 }
 0x650   :  { %v1401_v18 = vmul.f32 %v4039_v23, %v4094_v5 }
 0x651   :  { %v1640_v29 = vadd.f32 %v1619_v10, %v1544_v47  ;;  %v1545_v47 = vadd.f32 %v1537_v39, %v1496_v3  ;;  %v1448_v4 = vadd.f32 %v1440_v15, %v1399_v42 }
 0x652   :  { %v1450_v51 = vadd.f32 %v1442_v14, %v1401_v18 }
 0x65e   :  { %v1699_v46 = vpop.permute.xlu2 %1698 }
 0x65f   :  { %v4231_v60 = vadd.f32 %v1699_v46, %v1640_v29  ;;  %v1494_v29 = vadd.f32 %v1486_v33, %v1445_v24  ;;  %v1641_v46 = vadd.f32 %v4186_v26, %v1545_v47  ;;  %v1491_v26 = vmul.f32 %v4218_v59, %v4126_v7 }
 0x660   :  { %v1497_v33 = vadd.f32 %v1489_v54, %v1448_v4  ;;  %v1443_v7 = vmul.f32 %v4178_v44, %v4112_v25  ;;  %v1402_v24 = vmul.f32 %v4039_v23, %v4087_v21 }
 0x661   :  { %v1543_v16 = vadd.f32 %v1535_v32, %v1494_v29  ;;  %v1499_v13 = vadd.f32 %v1491_v26, %v1450_v51  ;;  %v1492_v32 = vmul.f32 %v4218_v59, %v4124_v57  ;;  %v1436_v51 = vmul.f32 %v4178_v44, %v4169_v6 }
 0x662   :  { %v1451_v15 = vadd.f32 %v1443_v7, %v1402_v24 }
 0x663   :  { %v1639_v62 = vadd.f32 %v4167_v61, %v1543_v16  ;;  %v1548_v61 = vadd.f32 %v1540_v40, %v1499_v13  ;;  %v1485_v40 = vmul.f32 %v4218_v59, %v4235_v2 }
 0x664   :  { %v1500_v16 = vadd.f32 %v1492_v32, %v1451_v15 }
 0x665   :  { %v1644_v47 = vadd.f32 %v4190_v37, %v1548_v61 }
 0x67b   :  { %v4233_v36 = vpop.permute.xlu2 %1704 }
 0x683   :  { %v1728_v10 = vpop.permute.xlu2 %1727  ;;  %v4245_v43 = vpop.permute.xlu1 %1694 }
 0x684   :  { %v1758_v45 = vmul.f32 %v1728_v10, %v4218_v59 }
 0x686   :  { %1774 = vrot.lane.b32.xlu2 %v1758_v45, %s2703_s27  ;;  %v1538_v45 = vmul.f32 %v4223_v30, %v4132_v0 }
 0x688   :  { %v1546_v3 = vadd.f32 %v1538_v45, %v1497_v33  ;;  %v1395_v45 = vmul.f32 %v4039_v23, %v4021_v19 }
 0x68a   :  { %v1642_v0 = vadd.f32 %v4171_v52, %v1546_v3  ;;  %v1444_v33 = vadd.f32 %v1436_v51, %v1395_v45  ;;  %v5076_v51 = vld [vmem:[#allocation14_spill] sm:$0xff] }
 0x68b   :  { %v1740_v11 = vpop.permute.xlu2 %1739  ;;  %v1701_v63 = vpop.permute.xlu1 %1700 }
 0x68c   :  { %v1761_v31 = vmul.f32 %v1740_v11, %v4218_v59  ;;  %v4267_v10 = vadd.f32 %v1701_v63, %v1641_v46  ;;  %v1541_v46 = vmul.f32 %v4223_v30, %v4136_v27  ;;  %v1493_v7 = vadd.f32 %v1485_v40, %v1444_v33 }
 0x68d   :  { %v1441_v40 = vmul.f32 %v4178_v44, %v4173_v20 }
 0x68e   :  { %1780 = vrot.lane.b32.xlu2 %v1761_v31, %s2703_s27  ;;  %v1697_v39 = vpop.permute.xlu0 %1696  ;;  %v1549_v11 = vadd.f32 %v1541_v46, %v1500_v16 }
 0x68f   :  { %v4281_v5 = vadd.f32 %v1697_v39, %v1639_v62 }
 0x690   :  { %v1645_v63 = vadd.f32 %v4175_v34, %v1549_v11 }
 0x693   :  { %v1748_v27 = vpop.permute.xlu2 %1747 }
 0x694   :  { %v1763_v62 = vmul.f32 %v1748_v27, %v4218_v59 }
 0x696   :  { %v1703_v28 = vpop.permute.xlu0 %1702  ;;  %v1707_v29 = vpop.permute.xlu1 %1706 }
 0x697   :  { %v1722_v14 = vadd.f32 %v1703_v28, %v1642_v0  ;;  %v1724_v25 = vadd.f32 %v1707_v29, %v1644_v47 }
 0x69e   :  { %v1709_v21 = vpop.permute.xlu0 %1708  ;;  %v1732_v42 = vpop.permute.xlu1 %1731 }
 0x69f   :  { %v1725_v31 = vadd.f32 %v1709_v21, %v1645_v63  ;;  %v1759_v57 = vmul.f32 %v1732_v42, %v4218_v59 }
 0x6a1   :  { %1776 = vrot.lane.b32.xlu1 %v1759_v57, %s2703_s27 }
 0x6a6   :  { %v1736_v52 = vpop.permute.xlu0 %1735  ;;  %v1744_v37 = vpop.permute.xlu1 %1743 }
 0x6a7   :  { %v1760_v18 = vmul.f32 %v1736_v52, %v4218_v59  ;;  %v1762_v54 = vmul.f32 %v1744_v37, %v4218_v59 }
 0x6a9   :  { %1778 = vrot.lane.b32.xlu0 %v1760_v18, %s2703_s27  ;;  %1782 = vrot.lane.b32.xlu1 %v1762_v54, %s2703_s27  ;;  %v5075_v18 = vld [vmem:[#allocation13_spill] sm:$0xff] }
 0x6ae   :  { %v1756_v26 = vpop.permute.xlu0 %1755  ;;  %v1752_v34 = vpop.permute.xlu1 %1751 }
 0x6af   :  { %v1765_v4 = vmul.f32 %v1756_v26, %v4218_v59  ;;  %v1764_v39 = vmul.f32 %v1752_v34, %v4218_v59  ;;  %v2592_v26 = vld [vmem:[%s5007_s3 + $0x8] sm:$0xff] }
 0x6b1   :  { %1784 = vrot.lane.b32.xlu0 %v1763_v62, %s2703_s27  ;;  %1788 = vrot.lane.b32.xlu1 %v1765_v4, %s2703_s27 }
 0x6b2   :  { %1786 = vrot.lane.b32.xlu2 %v1764_v39, %s2703_s27 }
 0x6b7   :  { %v1503_v13 = vpop.permute.xlu0 %1502 }
 0x6b8   :  { %v1534_v3 = vmul.f32 %v4223_v30, %v1503_v13  ;;  %v1400_v13 = vmul.f32 %v4039_v23, %v4030_v48 }
 0x6b9   :  { %1807 = vperm.xlu0 %2587, %v3995_v8   ;;  %1815 = vperm.xlu1 %2589, %v4049_v56  }
 0x6ba   :  { %v1542_v61 = vadd.f32 %v1534_v3, %v1493_v7  ;;  %1811 = vperm.xlu2 %2588, %v4076_v49   ;;  %v1490_v7 = vmul.f32 %v4218_v59, %v4254_v53  ;;  %v2593_v3 = vld [vmem:[%s5007_s3 + $0x20] sm:$0xff] }
 0x6bc   :  { %v1638_v6 = vadd.f32 %v4180_v35, %v1542_v61 }
 0x6be   :  { %v1718_v24 = vadd.f32 %v4245_v43, %v1638_v6  ;;  %v1449_v6 = vadd.f32 %v1441_v40, %v1400_v13 }
 0x6c0   :  { %v1498_v44 = vadd.f32 %v1490_v7, %v1449_v6 }
 0x6c1   :  { %1827 = vperm.xlu0 %2587, %v4001_v38   ;;  %1823 = vperm.xlu1 %2589, %v4057_v50   ;;  %v1523_v50 = vpop.permute.xlu0 %1522 }
 0x6c2   :  { %1819 = vperm.xlu2 %2588, %v4092_v9  }
 0x6c9   :  { %1835 = vperm.xlu1 %2589, %v4063_v55   ;;  %2590 = vset.pattern.permute.xlu0 %v5074_v1 }
 0x6ca   :  { %1831 = vperm.xlu2 %2588, %v4102_v41  }
 0x6d2   :  { %2591 = vset.pattern.permute.xlu2 %v5074_v1 }
 0x6e0   :  { %v1775_v8 = vpop.permute.xlu2 %1774 }
 0x6e1   :  { %v4325_v19 = vadd.f32 %v1775_v8, %v1718_v24  ;;  %v1539_v24 = vmul.f32 %v4223_v30, %v1523_v50 }
 0x6e3   :  { %v1547_v23 = vadd.f32 %v1539_v24, %v1498_v44  ;;  %v2601_v24 = vld [vmem:[%s5007_s3 + $0x80] sm:$0xff] }
 0x6e8   :  { %v1781_v56 = vpop.permute.xlu2 %1780 }
 0x6e9   :  { %v4328_v49 = vadd.f32 %v1781_v56, %v4267_v10 }
 0x70c   :  { %v1787_v38 = vpop.permute.xlu2 %1786 }
 0x70d   :  { %v4330_v35 = vadd.f32 %v1787_v38, %v1724_v25  ;;  %v5077_v38 = vld [vmem:[#allocation6_spill] sm:$0xff] }
 0x713   :  { %v1777_v9 = vpop.permute.xlu1 %1776 }
 0x714   :  { %v1812_v2 = vpop.permute.xlu2 %1811  ;;  %v1799_v55 = vadd.f32 %v1777_v9, %v4281_v5 }
 0x715   :  { %v1839_v43 = vmul.f32 %v1812_v2, %v4223_v30  ;;  %v2594_v2 = vld [vmem:[%s5007_s3 + $0x38] sm:$0xff] }
 0x717   :  { %1856 = vrot.lane.b32.xlu2 %v1839_v43, %s2703_s27 }
 0x71b   :  { %v1779_v1 = vpop.permute.xlu0 %1778  ;;  %v1783_v41 = vpop.permute.xlu1 %1782 }
 0x71c   :  { %v1800_v32 = vadd.f32 %v1779_v1, %v4231_v60  ;;  %v1802_v0 = vadd.f32 %v1783_v41, %v1722_v14  ;;  %v1820_v5 = vpop.permute.xlu2 %1819  ;;  %v5078_v41 = vld [vmem:[#allocation15_spill] sm:$0xff] }
 0x71d   :  { %v1841_v60 = vmul.f32 %v1820_v5, %v4223_v30 }
 0x723   :  { %v4336_v47 = vpop.permute.xlu0 %1784  ;;  %v1789_v10 = vpop.permute.xlu1 %1788 }
 0x724   :  { %v1805_v28 = vadd.f32 %v1789_v10, %v1725_v31  ;;  %v1832_v21 = vpop.permute.xlu2 %1831  ;;  %v5079_v10 = vld [vmem:[#allocation12_spill] sm:$0xff] }
 0x725   :  { %v1844_v31 = vmul.f32 %v1832_v21, %v4223_v30 }
 0x72b   :  { %v1808_v29 = vpop.permute.xlu0 %1807  ;;  %v1816_v15 = vpop.permute.xlu1 %1815 }
 0x72c   :  { %v1838_v46 = vmul.f32 %v1808_v29, %v4223_v30  ;;  %v1840_v25 = vmul.f32 %v1816_v15, %v4223_v30 }
 0x72e   :  { %1854 = vrot.lane.b32.xlu0 %v1838_v46, %s2703_s27  ;;  %1858 = vrot.lane.b32.xlu1 %v1840_v25, %s2703_s27 }
 0x733   :  { %v1828_v16 = vpop.permute.xlu0 %1827  ;;  %v1824_v11 = vpop.permute.xlu1 %1823 }
 0x734   :  { %v1843_v14 = vmul.f32 %v1828_v16, %v4223_v30  ;;  %v1842_v63 = vmul.f32 %v1824_v11, %v4223_v30 }
 0x736   :  { %1860 = vrot.lane.b32.xlu0 %v1841_v60, %s2703_s27  ;;  %1864 = vrot.lane.b32.xlu1 %v1843_v14, %s2703_s27 }
 0x737   :  { %1862 = vrot.lane.b32.xlu2 %v1842_v63, %s2703_s27 }
 0x73b   :  { %v1836_v42 = vpop.permute.xlu1 %1835 }
 0x73c   :  { %v1845_v57 = vmul.f32 %v1836_v42, %v4223_v30  ;;  %v1643_v30 = vadd.f32 %v4184_v17, %v1547_v23  ;;  %v2595_v17 = vld [vmem:[%s5007_s3] sm:$0xff] }
 0x73e   :  { %1866 = vrot.lane.b32.xlu0 %v1844_v31, %s2703_s27  ;;  %v1723_v29 = vadd.f32 %v4233_v36, %v1643_v30  ;;  %v2597_v36 = vld [vmem:[%s5007_s3 + $0x10] sm:$0xff]  ;;  %v2606_v30 = vld [vmem:[%s5007_s3 + $0x58] sm:$0xff] }
 0x73f   :  { %1868 = vrot.lane.b32.xlu2 %v1845_v57, %s2703_s27  ;;  %v5080_v31 = vld [vmem:[#allocation5_spill] sm:$0xff] }
 0x740   :  { %v1803_v25 = vadd.f32 %v4336_v47, %v1723_v29 }
 0x771   :  { %v1857_v52 = vpop.permute.xlu2 %1856 }
 0x772   :  { %v1879_v37 = vadd.f32 %v1857_v52, %v1799_v55  ;;  %v5081_v52 = vld [vmem:[#allocation9_spill] sm:$0xff] }
 0x774   :  { %v1887_v54 = vadd.f32 %v1879_v37, %v5075_v18 }
 0x776   :  { %v4353_v27 = vmax.f32 %v1887_v54, 0.0 }
 0x778   :  { %v1903_v34 = vmul.f32 %v2592_v26, %v4353_v27 }
 0x77a   :  { %v1985_v62 = vsel %vm788_vm0, %v1903_v34, 0.0  ;;  %v2599_v34 = vld [vmem:[%s5007_s3 + $0x68] sm:$0xff] }
 0x77b   :  { %1986 = vadd.xlane.f32.xlu0 %v1985_v62 }
 0x791   :  { %v1863_v4 = vpop.permute.xlu2 %1862 }
 0x792   :  { %v1882_v39 = vadd.f32 %v1863_v4, %v1802_v0  ;;  %v2600_v4 = vld [vmem:[%s5007_s3 + $0x28] sm:$0xff] }
 0x794   :  { %v1890_v45 = vadd.f32 %v1882_v39, %v5076_v51 }
 0x796   :  { %v4363_v33 = vmax.f32 %v1890_v45, 0.0 }
 0x798   :  { %v1906_v61 = vmul.f32 %v2593_v3, %v4363_v33  ;;  %v5082_v3 = vld [vmem:[#allocation8_spill] sm:$0xff] }
 0x799   :  { %v1869_v8 = vpop.permute.xlu2 %1868 }
 0x79a   :  { %v1885_v56 = vadd.f32 %v1869_v8, %v1805_v28  ;;  %v1994_v20 = vsel %vm788_vm0, %v1906_v61, 0.0 }
 0x79b   :  { %1995 = vadd.xlane.f32.xlu0 %v1994_v20  ;;  %v2603_v20 = vld [vmem:[%s5007_s3 + $0x30] sm:$0xff] }
 0x79c   :  { %v1893_v48 = vadd.f32 %v1885_v56, %v5077_v38 }
 0x79e   :  { %v4376_v9 = vmax.f32 %v1893_v48, 0.0 }
 0x7a0   :  { %v1855_v59 = vpop.permute.xlu0 %1854  ;;  %v1859_v53 = vpop.permute.xlu1 %1858  ;;  %v1909_v55 = vmul.f32 %v2594_v2, %v4376_v9  ;;  %v2605_v2 = vld [vmem:[%s5007_s3 + $0x98] sm:$0xff] }
 0x7a1   :  { %v1878_v50 = vadd.f32 %v1855_v59, %v4325_v19  ;;  %v1880_v43 = vadd.f32 %v1859_v53, %v1800_v32  ;;  %v2596_v32 = vld [vmem:[%s5007_s3 + $0x50] sm:$0xff]  ;;  %v2604_v59 = vld [vmem:[%s5007_s3 + $0x48] sm:$0xff] }
 0x7a2   :  { %v2003_v1 = vsel %vm788_vm0, %v1909_v55, 0.0  ;;  %v1911_v53 = vmul.f32 %v2604_v59, %v4353_v27 }
 0x7a3   :  { %v1886_v0 = vadd.f32 %v1878_v50, %v5078_v41  ;;  %v1888_v28 = vadd.f32 %v1880_v43, %v5079_v10  ;;  %2004 = vadd.xlane.f32.xlu0 %v2003_v1 }
 0x7a4   :  { %v2009_v43 = vsel %vm788_vm0, %v1911_v53, 0.0  ;;  %v2622_v53 = vld [vmem:[%s5007_s3 + $0xd8] sm:$0xff] }
 0x7a5   :  { %v4388_v15 = vmax.f32 %v1886_v0, 0.0  ;;  %v4390_v46 = vmax.f32 %v1888_v28, 0.0  ;;  %v2607_v0 = vld [vmem:[%s5007_s3 + $0x60] sm:$0xff]  ;;  %v2608_v28 = vld [vmem:[%s5007_s3 + $0xb0] sm:$0xff] }
 0x7a6   :  { %v1914_v10 = vmul.f32 %v2607_v0, %v4363_v33 }
 0x7a7   :  { %v1902_v19 = vmul.f32 %v2595_v17, %v4388_v15  ;;  %v1912_v5 = vmul.f32 %v2596_v32, %v4390_v46  ;;  %v1904_v16 = vmul.f32 %v2597_v36, %v4390_v46  ;;  %v1918_v8 = vmul.f32 %v2601_v24, %v4388_v15  ;;  %v2610_v36 = vld [vmem:[%s5007_s3 + $0x78] sm:$0xff] }
 0x7a8   :  { %v1861_v11 = vpop.permute.xlu0 %1860  ;;  %v1865_v47 = vpop.permute.xlu1 %1864 }
 0x7a9   :  { %v1881_v60 = vadd.f32 %v1861_v11, %v4328_v49  ;;  %v1883_v14 = vadd.f32 %v1865_v47, %v1803_v25  ;;  %v1982_v63 = vsel %vm788_vm0, %v1902_v19, 0.0  ;;  %v2012_v21 = vsel %vm788_vm0, %v1912_v5, 0.0  ;;  %v2598_v49 = vld [vmem:[%s5007_s3 + $0x18] sm:$0xff]  ;;  %v2609_v25 = vld [vmem:[%s5007_s3 + $0x70] sm:$0xff]  ;;  %v2611_v11 = vld [vmem:[%s5007_s3 + $0xc8] sm:$0xff] }
 0x7aa   :  { %1983 = vadd.xlane.f32.xlu1 %v1982_v63  ;;  %v1988_v42 = vsel %vm788_vm0, %v1904_v16, 0.0  ;;  %v2030_v48 = vsel %vm788_vm0, %v1918_v8, 0.0  ;;  %v2018_v19 = vsel %vm788_vm0, %v1914_v10, 0.0  ;;  %v1917_v16 = vmul.f32 %v2610_v36, %v4376_v9  ;;  %v2619_v8 = vld [vmem:[%s5007_s3 + $0xc0] sm:$0xff]  ;;  %v2625_v10 = vld [vmem:[%s5007_s3 + $0xf0] sm:$0xff] }
 0x7ab   :  { %v1889_v57 = vadd.f32 %v1881_v60, %v5080_v31  ;;  %v1891_v37 = vadd.f32 %v1883_v14, %v5081_v52  ;;  %2013 = vadd.xlane.f32.xlu0 %v2012_v21  ;;  %1989 = vadd.xlane.f32.xlu2 %v1988_v42  ;;  %v1927_v47 = vmul.f32 %v2611_v11, %v4353_v27  ;;  %v2612_v60 = vld [vmem:[%s5007_s3 + $0x88] sm:$0xff]  ;;  %v2613_v31 = vld [vmem:[%s5007_s3 + $0x90] sm:$0xff]  ;;  %v2614_v52 = vld [vmem:[%s5007_s3 + $0xe0] sm:$0xff] }
 0x7ac   :  { %v1919_v14 = vmul.f32 %v2612_v60, %v4353_v27  ;;  %v2027_v63 = vsel %vm788_vm0, %v1917_v16, 0.0  ;;  %v2628_v16 = vld [vmem:[%s5007_s3 + $0x108] sm:$0xff] }
 0x7ad   :  { %v4411_v18 = vmax.f32 %v1889_v57, 0.0  ;;  %v4413_v54 = vmax.f32 %v1891_v37, 0.0  ;;  %v2057_v21 = vsel %vm788_vm0, %v1927_v47, 0.0  ;;  %v1920_v57 = vmul.f32 %v2613_v31, %v4390_v46  ;;  %v2629_v47 = vld [vmem:[%s5007_s3 + $0x190] sm:$0xff] }
 0x7ae   :  { %v2033_v42 = vsel %vm788_vm0, %v1919_v14, 0.0  ;;  %v1930_v37 = vmul.f32 %v2614_v52, %v4363_v33  ;;  %v1935_v11 = vmul.f32 %v2628_v16, %v4353_v27  ;;  %v1952_v60 = vmul.f32 %v2629_v47, %v4390_v46  ;;  %v2630_v14 = vld [vmem:[%s5007_s3 + $0x118] sm:$0xff] }
 0x7af   :  { %v1905_v26 = vmul.f32 %v2598_v49, %v4411_v18  ;;  %v1915_v62 = vmul.f32 %v2599_v34, %v4413_v54  ;;  %v1907_v39 = vmul.f32 %v2600_v4, %v4413_v54  ;;  %v1921_v55 = vmul.f32 %v2605_v2, %v4411_v18  ;;  %v2615_v49 = vld [vmem:[%s5007_s3 + $0xa0] sm:$0xff] }
 0x7b0   :  { %v1867_v51 = vpop.permute.xlu0 %1866  ;;  %v1913_v50 = vmul.f32 %v2606_v30, %v4411_v18  ;;  %v2036_v34 = vsel %vm788_vm0, %v1920_v57, 0.0  ;;  %v1929_v2 = vmul.f32 %v2622_v53, %v4411_v18  ;;  %v2631_v57 = vld [vmem:[%s5007_s3 + $0x120] sm:$0xff] }
 0x7b1   :  { %v1884_v45 = vadd.f32 %v1867_v51, %v4330_v35  ;;  %v1991_v40 = vsel %vm788_vm0, %v1905_v26, 0.0  ;;  %v2021_v13 = vsel %vm788_vm0, %v1915_v62, 0.0  ;;  %v1997_v7 = vsel %vm788_vm0, %v1907_v39, 0.0  ;;  %v2602_v35 = vld [vmem:[%s5007_s3 + $0x40] sm:$0xff]  ;;  %v2616_v39 = vld [vmem:[%s5007_s3 + $0xa8] sm:$0xff] }
 0x7b2   :  { %1992 = vadd.xlane.f32.xlu1 %v1991_v40  ;;  %v1910_v56 = vmul.f32 %v2602_v35, %v4388_v15  ;;  %v2039_v1 = vsel %vm788_vm0, %v1921_v55, 0.0  ;;  %v2015_v41 = vsel %vm788_vm0, %v1913_v50, 0.0  ;;  %v1922_v26 = vmul.f32 %v2615_v49, %v4363_v33  ;;  %v2623_v55 = vld [vmem:[%s5007_s3 + $0x140] sm:$0xff]  ;;  %v2624_v50 = vld [vmem:[%s5007_s3 + $0xe8] sm:$0xff] }
 0x7b3   :  { %v1892_v61 = vadd.f32 %v1884_v45, %v5082_v3  ;;  %2022 = vadd.xlane.f32.xlu0 %v2021_v13  ;;  %1998 = vadd.xlane.f32.xlu2 %v1997_v7  ;;  %v2066_v62 = vsel %vm788_vm0, %v1930_v37, 0.0  ;;  %v1923_v51 = vmul.f32 %v2616_v39, %v4413_v54  ;;  %v2617_v45 = vld [vmem:[%s5007_s3 + $0xf8] sm:$0xff]  ;;  %v1926_v35 = vmul.f32 %v2619_v8, %v4388_v15  ;;  %v2632_v49 = vld [vmem:[%s5007_s3 + $0x128] sm:$0xff] }
 0x7b4   :  { %v2006_v23 = vsel %vm788_vm0, %v1910_v56, 0.0  ;;  %v2042_v4 = vsel %vm788_vm0, %v1922_v26, 0.0  ;;  %v1933_v40 = vmul.f32 %v2617_v45, %v4376_v9  ;;  %v2618_v13 = vld [vmem:[%s5007_s3 + $0xb8] sm:$0xff]  ;;  %v2620_v56 = vld [vmem:[%s5007_s3 + $0x110] sm:$0xff]  ;;  %v1942_v30 = vmul.f32 %v2623_v55, %v4388_v15 }
 0x7b5   :  { %v4432_v6 = vmax.f32 %v1892_v61, 0.0  ;;  %v1925_v7 = vmul.f32 %v2618_v13, %v4376_v9  ;;  %v2045_v3 = vsel %vm788_vm0, %v1923_v51, 0.0  ;;  %v1938_v52 = vmul.f32 %v2631_v57, %v4363_v33  ;;  %v2634_v45 = vld [vmem:[%s5007_s3 + $0x150] sm:$0xff] }
 0x7b6   :  { %v2075_v61 = vsel %vm788_vm0, %v1933_v40, 0.0  ;;  %v1939_v26 = vmul.f32 %v2632_v49, %v4413_v54  ;;  %v1944_v40 = vmul.f32 %v2634_v45, %v4390_v46  ;;  %v2645_v49 = vld [vmem:[%s5007_s3 + $0x130] sm:$0xff] }
 0x7b7   :  { %v1908_v44 = vmul.f32 %v2603_v20, %v4432_v6  ;;  %v1924_v29 = vmul.f32 %v2608_v28, %v4432_v6  ;;  %v1916_v17 = vmul.f32 %v2609_v25, %v4432_v6  ;;  %v2051_v24 = vsel %vm788_vm0, %v1925_v7, 0.0  ;;  %v2635_v7 = vld [vmem:[%s5007_s3 + $0x1d0] sm:$0xff] }
 0x7b8   :  { %v1936_v20 = vmul.f32 %v2620_v56, %v4390_v46  ;;  %v1932_v28 = vmul.f32 %v2625_v10, %v4432_v6  ;;  %v2093_v39 = vsel %vm788_vm0, %v1939_v26, 0.0  ;;  %v2108_v8 = vsel %vm788_vm0, %v1944_v40, 0.0 }
 0x7b9   :  { %v2000_v38 = vsel %vm788_vm0, %v1908_v44, 0.0  ;;  %v2048_v32 = vsel %vm788_vm0, %v1924_v29, 0.0  ;;  %v2024_v5 = vsel %vm788_vm0, %v1916_v17, 0.0  ;;  %v2621_v44 = vld [vmem:[%s5007_s3 + $0xd0] sm:$0xff]  ;;  %v2626_v29 = vld [vmem:[%s5007_s3 + $0x180] sm:$0xff]  ;;  %v1940_v26 = vmul.f32 %v2645_v49, %v4432_v6 }
 0x7ba   :  { %2001 = vadd.xlane.f32.xlu1 %v2000_v38  ;;  %v1928_v38 = vmul.f32 %v2621_v44, %v4390_v46  ;;  %v1950_v25 = vmul.f32 %v2626_v29, %v4388_v15  ;;  %v2627_v17 = vld [vmem:[%s5007_s3 + $0x100] sm:$0xff]  ;;  %v2641_v29 = vld [vmem:[%s5007_s3 + $0x170] sm:$0xff] }
 0x7bb   :  { %2031 = vadd.xlane.f32.xlu0 %v2030_v48  ;;  %2007 = vadd.xlane.f32.xlu2 %v2006_v23  ;;  %v2054_v48 = vsel %vm788_vm0, %v1926_v35, 0.0  ;;  %v2084_v23 = vsel %vm788_vm0, %v1936_v20, 0.0  ;;  %v2637_v20 = vld [vmem:[%s5007_s3 + $0x158] sm:$0xff] }
 0x7bc   :  { %v2060_v59 = vsel %vm788_vm0, %v1928_v38, 0.0  ;;  %v1945_v44 = vmul.f32 %v2637_v20, %v4411_v18  ;;  %v5086_v20 = vld [vmem:[#allocation17_spill] sm:$0xff] }
 0x7c2   :  { %2010 = vadd.xlane.f32.xlu1 %v2009_v43  ;;  %v1931_v43 = vmul.f32 %v2624_v50, %v4413_v54 }
 0x7c3   :  { %2040 = vadd.xlane.f32.xlu0 %v2039_v1  ;;  %2016 = vadd.xlane.f32.xlu2 %v2015_v41  ;;  %v2063_v1 = vsel %vm788_vm0, %v1929_v2, 0.0  ;;  %v2102_v41 = vsel %vm788_vm0, %v1942_v30, 0.0  ;;  %v2111_v2 = vsel %vm788_vm0, %v1945_v44, 0.0 }
 0x7c4   :  { %v2069_v0 = vsel %vm788_vm0, %v1931_v43, 0.0  ;;  %v2640_v43 = vld [vmem:[%s5007_s3 + $0x1c8] sm:$0xff] }
 0x7ca   :  { %2019 = vadd.xlane.f32.xlu1 %v2018_v19  ;;  %v1934_v19 = vmul.f32 %v2627_v17, %v4388_v15  ;;  %v2642_v17 = vld [vmem:[%s5007_s3 + $0x160] sm:$0xff] }
 0x7cb   :  { %2049 = vadd.xlane.f32.xlu0 %v2048_v32  ;;  %2025 = vadd.xlane.f32.xlu2 %v2024_v5  ;;  %v2072_v32 = vsel %vm788_vm0, %v1932_v28, 0.0  ;;  %v2126_v5 = vsel %vm788_vm0, %v1950_v25, 0.0  ;;  %v1948_v25 = vmul.f32 %v2641_v29, %v4432_v6 }
 0x7cc   :  { %v2078_v36 = vsel %vm788_vm0, %v1934_v19, 0.0  ;;  %v1946_v19 = vmul.f32 %v2642_v17, %v4363_v33 }
 0x7ce   :  { %v2114_v47 = vsel %vm788_vm0, %v1946_v19, 0.0 }
 0x7d2   :  { %2028 = vadd.xlane.f32.xlu1 %v2027_v63  ;;  %v1937_v63 = vmul.f32 %v2630_v14, %v4411_v18  ;;  %v2643_v14 = vld [vmem:[%s5007_s3 + $0x198] sm:$0xff] }
 0x7d3   :  { %2058 = vadd.xlane.f32.xlu0 %v2057_v21  ;;  %2034 = vadd.xlane.f32.xlu2 %v2033_v42  ;;  %v2081_v21 = vsel %vm788_vm0, %v1935_v11, 0.0  ;;  %v2132_v42 = vsel %vm788_vm0, %v1952_v60, 0.0  ;;  %v2120_v11 = vsel %vm788_vm0, %v1948_v25, 0.0 }
 0x7d4   :  { %v2087_v31 = vsel %vm788_vm0, %v1937_v63, 0.0  ;;  %v1953_v63 = vmul.f32 %v2643_v14, %v4411_v18 }
 0x7d6   :  { %v2135_v40 = vsel %vm788_vm0, %v1953_v63, 0.0 }
 0x7da   :  { %2037 = vadd.xlane.f32.xlu1 %v2036_v34  ;;  %v2633_v34 = vld [vmem:[%s5007_s3 + $0x148] sm:$0xff] }
 0x7db   :  { %2067 = vadd.xlane.f32.xlu0 %v2066_v62  ;;  %2043 = vadd.xlane.f32.xlu2 %v2042_v4  ;;  %v1943_v62 = vmul.f32 %v2633_v34, %v4353_v27  ;;  %v2090_v4 = vsel %vm788_vm0, %v1938_v52, 0.0  ;;  %v2644_v52 = vld [vmem:[%s5007_s3 + $0x178] sm:$0xff] }
 0x7dc   :  { %v5084_v34 = vld [vmem:[#allocation11_spill] sm:$0xff] }
 0x7dd   :  { %v2105_v51 = vsel %vm788_vm0, %v1943_v62, 0.0 }
 0x7e2   :  { %2046 = vadd.xlane.f32.xlu1 %v2045_v3  ;;  %v1960_v3 = vmul.f32 %v2635_v7, %v4390_v46 }
 0x7e3   :  { %2076 = vadd.xlane.f32.xlu0 %v2075_v61  ;;  %2052 = vadd.xlane.f32.xlu2 %v2051_v24  ;;  %v2636_v61 = vld [vmem:[%s5007_s3 + $0x188] sm:$0xff] }
 0x7e4   :  { %v1951_v24 = vmul.f32 %v2636_v61, %v4353_v27  ;;  %v2156_v35 = vsel %vm788_vm0, %v1960_v3, 0.0  ;;  %v2096_v3 = vsel %vm788_vm0, %v1940_v26, 0.0 }
 0x7e6   :  { %v2129_v56 = vsel %vm788_vm0, %v1951_v24, 0.0 }
 0x7ea   :  { %2055 = vadd.xlane.f32.xlu1 %v2054_v48  ;;  %v2638_v48 = vld [vmem:[%s5007_s3 + $0x1a0] sm:$0xff] }
 0x7eb   :  { %2085 = vadd.xlane.f32.xlu0 %v2084_v23  ;;  %2061 = vadd.xlane.f32.xlu2 %v2060_v59  ;;  %v1954_v23 = vmul.f32 %v2638_v48, %v4363_v33  ;;  %v2639_v59 = vld [vmem:[%s5007_s3 + $0x1c0] sm:$0xff]  ;;  %v2647_v48 = vld [vmem:[%s5007_s3 + $0x1b8] sm:$0xff] }
 0x7ec   :  { %v1958_v53 = vmul.f32 %v2639_v59, %v4388_v15  ;;  %v2648_v59 = vld [vmem:[%s5007_s3 + $0x1d8] sm:$0xff] }
 0x7ed   :  { %v2138_v55 = vsel %vm788_vm0, %v1954_v23, 0.0  ;;  %v1957_v23 = vmul.f32 %v2647_v48, %v4376_v9 }
 0x7ee   :  { %v1987_v37 = vpop.xlane.xlu0 %1986  ;;  %v2150_v30 = vsel %vm788_vm0, %v1958_v53, 0.0  ;;  %v1961_v53 = vmul.f32 %v2648_v59, %v4411_v18 }
 0x7f2   :  { %2064 = vadd.xlane.f32.xlu1 %v2063_v1  ;;  %v1959_v1 = vmul.f32 %v2640_v43, %v4353_v27 }
 0x7f3   :  { %2103 = vadd.xlane.f32.xlu0 %v2102_v41  ;;  %2070 = vadd.xlane.f32.xlu2 %v2069_v0  ;;  %v2303_v41 = vperm.slane %v1987_v37, %v3726_v58  ;;  %v1949_v37 = vmul.f32 %v2644_v52, %v4376_v9 }
 0x7f5   :  { %v2123_v7 = vsel %vm788_vm0, %v1949_v37, 0.0 }
 0x7fa   :  { %2073 = vadd.xlane.f32.xlu1 %v2072_v32 }
 0x7fb   :  { %2127 = vadd.xlane.f32.xlu0 %v2126_v5  ;;  %2079 = vadd.xlane.f32.xlu2 %v2078_v36  ;;  %v2153_v36 = vsel %vm788_vm0, %v1959_v1, 0.0  ;;  %v2147_v1 = vsel %vm788_vm0, %v1957_v23, 0.0 }
 0x802   :  { %2082 = vadd.xlane.f32.xlu1 %v2081_v21 }
 0x803   :  { %2133 = vadd.xlane.f32.xlu0 %v2132_v42  ;;  %2088 = vadd.xlane.f32.xlu2 %v2087_v31  ;;  %v5083_v31 = vld [vmem:[#allocation10_spill] sm:$0xff] }
 0x80a   :  { %2091 = vadd.xlane.f32.xlu1 %v2090_v4  ;;  %v5085_v4 = vld [vmem:[#allocation16_spill] sm:$0xff] }
 0x80b   :  { %2094 = vadd.xlane.f32.xlu0 %v2093_v39  ;;  %2106 = vadd.xlane.f32.xlu2 %v2105_v51 }
 0x80e   :  { %v1996_v13 = vpop.xlane.xlu0 %1995 }
 0x80f   :  { %v2309_v62 = vperm.slane %v1996_v13, %v5084_v34  ;;  %v2646_v13 = vld [vmem:[%s5007_s3 + $0x168] sm:$0xff] }
 0x812   :  { %2109 = vadd.xlane.f32.xlu1 %v2108_v8  ;;  %v1947_v8 = vmul.f32 %v2646_v13, %v4413_v54 }
 0x813   :  { %2157 = vadd.xlane.f32.xlu0 %v2156_v35  ;;  %2130 = vadd.xlane.f32.xlu2 %v2129_v56 }
 0x814   :  { %v2117_v43 = vsel %vm788_vm0, %v1947_v8, 0.0 }
 0x816   :  { %v4618_v38 = vpop.xlane.xlu0 %2004 }
 0x81a   :  { %2112 = vadd.xlane.f32.xlu1 %v2111_v2  ;;  %v5087_v2 = vld [vmem:[#allocation18_spill] sm:$0xff] }
 0x81b   :  { %2139 = vadd.xlane.f32.xlu0 %v2138_v55  ;;  %2151 = vadd.xlane.f32.xlu2 %v2150_v30  ;;  %v2315_v55 = vperm.slane %v4618_v38, %v5087_v2 }
 0x81d   :  { %v1984_v50 = vpop.xlane.xlu1 %1983 }
 0x81e   :  { %v4636_v0 = vpop.xlane.xlu0 %2013  ;;  %v1990_v10 = vpop.xlane.xlu2 %1989  ;;  %v2302_v28 = vperm.slane %v1984_v50, %v3714_v22 }
 0x81f   :  { %v2305_v32 = vperm.slane %v1990_v10, %v3723_v12 }
 0x820   :  { %v2304_v5 = vsel %vm1114_vm1, %v2303_v41, %v2302_v28  ;;  %v2159_v41 = vsel %vm788_vm0, %v1961_v53, 0.0  ;;  %v2649_v28 = vld [vmem:[%s5007_s3 + $0x138] sm:$0xff] }
 0x821   :  { %v2306_v16 = vsel %vm1118_vm2, %v2305_v32, %v2304_v5  ;;  %v1941_v38 = vmul.f32 %v2649_v28, %v4376_v9  ;;  %v2650_v32 = vld [vmem:[%s5007_s3 + $0x200] sm:$0xff] }
 0x822   :  { %2154 = vadd.xlane.f32.xlu1 %v2153_v36  ;;  %v1966_v5 = vmul.f32 %v2650_v32, %v4388_v15  ;;  %v2651_v36 = vld [vmem:[%s5007_s3 + $0x1a8] sm:$0xff] }
 0x823   :  { %2121 = vadd.xlane.f32.xlu0 %v2120_v11  ;;  %2115 = vadd.xlane.f32.xlu2 %v2114_v47  ;;  %v2320_v11 = vperm.slane %v4636_v0, %v3723_v12  ;;  %v2099_v63 = vsel %vm788_vm0, %v1941_v38, 0.0  ;;  %v2652_v0 = vld [vmem:[%s5007_s3 + $0x1e0] sm:$0xff] }
 0x824   :  { %v1962_v49 = vmul.f32 %v2652_v0, %v4363_v33 }
 0x825   :  { %v1993_v60 = vpop.xlane.xlu1 %1992 }
 0x826   :  { %v4657_v21 = vpop.xlane.xlu0 %2022  ;;  %v1999_v42 = vpop.xlane.xlu2 %1998  ;;  %v2307_v57 = vperm.slane %v1993_v60, %v5083_v31  ;;  %v2162_v8 = vsel %vm788_vm0, %v1962_v49, 0.0 }
 0x827   :  { %v2311_v39 = vperm.slane %v1999_v42, %v5085_v4  ;;  %v2174_v42 = vsel %vm788_vm0, %v1966_v5, 0.0 }
 0x828   :  { %v2308_v51 = vsel %vm1122_vm3, %v2307_v57, %v2306_v16  ;;  %v1955_v16 = vmul.f32 %v2651_v36, %v4413_v54 }
 0x829   :  { %v2310_v45 = vsel %vm1126_vm4, %v2309_v62, %v2308_v51  ;;  %v2653_v51 = vld [vmem:[%s5007_s3 + $0x248] sm:$0xff] }
 0x82a   :  { %2136 = vadd.xlane.f32.xlu1 %v2135_v40  ;;  %v2312_v61 = vsel %vm1130_vm5, %v2311_v39, %v2310_v45  ;;  %v2141_v57 = vsel %vm788_vm0, %v1955_v16, 0.0  ;;  %v1975_v45 = vmul.f32 %v2653_v51, %v4353_v27  ;;  %v2654_v40 = vld [vmem:[%s5007_s3 + $0x1b0] sm:$0xff]  ;;  %v2658_v16 = vld [vmem:[%s5007_s3 + $0x1f8] sm:$0xff] }
 0x82b   :  { %2124 = vadd.xlane.f32.xlu0 %v2123_v7  ;;  %2097 = vadd.xlane.f32.xlu2 %v2096_v3  ;;  %v1956_v7 = vmul.f32 %v2654_v40, %v4432_v6  ;;  %v2326_v3 = vperm.slane %v4657_v21, %v5085_v4  ;;  %v2655_v21 = vld [vmem:[%s5007_s3 + $0x1e8] sm:$0xff] }
 0x82c   :  { %v1963_v59 = vmul.f32 %v2655_v21, %v4413_v54 }
 0x82d   :  { %v2002_v24 = vpop.xlane.xlu1 %2001 }
 0x82e   :  { %v4680_v35 = vpop.xlane.xlu0 %2031  ;;  %v2008_v56 = vpop.xlane.xlu2 %2007  ;;  %v2313_v44 = vperm.slane %v2002_v24, %v5086_v20  ;;  %v2165_v32 = vsel %vm788_vm0, %v1963_v59, 0.0 }
 0x82f   :  { %v2317_v29 = vperm.slane %v2008_v56, %v3714_v22  ;;  %v2201_v56 = vsel %vm788_vm0, %v1975_v45, 0.0  ;;  %v2332_v28 = vperm.slane %v4680_v35, %v3714_v22 }
 0x830   :  { %v2314_v30 = vsel %vm1134_vm6, %v2313_v44, %v2312_v61  ;;  %v2144_v44 = vsel %vm788_vm0, %v1956_v7, 0.0 }
 0x831   :  { %v4695_v50 = vsel %vm1138_vm7, %v2315_v55, %v2314_v30 }
 0x832   :  { %2118 = vadd.xlane.f32.xlu1 %v2117_v43  ;;  %v2656_v43 = vld [vmem:[%s5007_s3 + $0x218] sm:$0xff] }
 0x833   :  { %2148 = vadd.xlane.f32.xlu0 %v2147_v1  ;;  %2160 = vadd.xlane.f32.xlu2 %v2159_v41  ;;  %v1969_v1 = vmul.f32 %v2656_v43, %v4411_v18  ;;  %v2657_v41 = vld [vmem:[%s5007_s3 + $0x1f0] sm:$0xff] }
 0x835   :  { %v2011_v10 = vpop.xlane.xlu1 %2010  ;;  %v2183_v5 = vsel %vm788_vm0, %v1969_v1, 0.0 }
 0x836   :  { %v4705_v25 = vpop.xlane.xlu0 %2040  ;;  %v2017_v17 = vpop.xlane.xlu2 %2016  ;;  %v2318_v19 = vperm.slane %v2011_v10, %v3726_v58  ;;  %v1964_v10 = vmul.f32 %v2657_v41, %v4432_v6 }
 0x837   :  { %v2322_v47 = vperm.slane %v2017_v17, %v5083_v31 }
 0x838   :  { %v2319_v60 = vsel %vm1114_vm1, %v2318_v19, %v2317_v29  ;;  %v2168_v36 = vsel %vm788_vm0, %v1964_v10, 0.0 }
 0x839   :  { %v2321_v14 = vsel %vm1118_vm2, %v2320_v11, %v2319_v60  ;;  %v1965_v11 = vmul.f32 %v2658_v16, %v4376_v9 }
 0x83a   :  { %2100 = vadd.xlane.f32.xlu1 %v2099_v63  ;;  %v2323_v52 = vsel %vm1122_vm3, %v2322_v47, %v2321_v14  ;;  %v2659_v14 = vld [vmem:[%s5007_s3 + $0x260] sm:$0xff] }
 0x83b   :  { %2175 = vadd.xlane.f32.xlu0 %v2174_v42  ;;  %2142 = vadd.xlane.f32.xlu2 %v2141_v57  ;;  %v1978_v63 = vmul.f32 %v2659_v14, %v4363_v33  ;;  %v2660_v42 = vld [vmem:[%s5007_s3 + $0x208] sm:$0xff] }
 0x83c   :  { %v1967_v57 = vmul.f32 %v2660_v42, %v4353_v27 }
 0x83d   :  { %v2020_v37 = vpop.xlane.xlu1 %2019 }
 0x83e   :  { %v4729_v26 = vpop.xlane.xlu0 %2049  ;;  %v2026_v62 = vpop.xlane.xlu2 %2025  ;;  %v2324_v39 = vperm.slane %v2020_v37, %v5084_v34  ;;  %v2177_v51 = vsel %vm788_vm0, %v1967_v57, 0.0 }
 0x83f   :  { %v2328_v61 = vperm.slane %v2026_v62, %v5086_v20  ;;  %v2171_v62 = vsel %vm788_vm0, %v1965_v11, 0.0 }
 0x840   :  { %v2325_v24 = vsel %vm1126_vm4, %v2324_v39, %v2323_v52  ;;  %v2337_v52 = vperm.slane %v4705_v25, %v5083_v31  ;;  %v2210_v39 = vsel %vm788_vm0, %v1978_v63, 0.0  ;;  %v2661_v25 = vld [vmem:[%s5007_s3 + $0x240] sm:$0xff] }
 0x841   :  { %v2327_v13 = vsel %vm1130_vm5, %v2326_v3, %v2325_v24  ;;  %v1974_v40 = vmul.f32 %v2661_v25, %v4388_v15  ;;  %v2662_v24 = vld [vmem:[%s5007_s3 + $0x230] sm:$0xff]  ;;  %v2343_v15 = vperm.slane %v4729_v26, %v5086_v20 }
 0x842   :  { %2163 = vadd.xlane.f32.xlu1 %v2162_v8  ;;  %v2329_v48 = vsel %vm1134_vm6, %v2328_v61, %v2327_v13  ;;  %v1972_v13 = vmul.f32 %v2662_v24, %v4432_v6  ;;  %v2663_v8 = vld [vmem:[%s5007_s3 + $0x210] sm:$0xff] }
 0x843   :  { %2202 = vadd.xlane.f32.xlu0 %v2201_v56  ;;  %2145 = vadd.xlane.f32.xlu2 %v2144_v44  ;;  %v1968_v56 = vmul.f32 %v2663_v8, %v4390_v46  ;;  %v2198_v21 = vsel %vm788_vm0, %v1974_v40, 0.0  ;;  %v2664_v26 = vld [vmem:[%s5007_s3 + $0x250] sm:$0xff] }
 0x844   :  { %v1976_v1 = vmul.f32 %v2664_v26, %v4390_v46 }
 0x845   :  { %v2029_v23 = vpop.xlane.xlu1 %2028 }
 0x846   :  { %v4753_v53 = vpop.xlane.xlu0 %2058  ;;  %v2035_v55 = vpop.xlane.xlu2 %2034  ;;  %v2330_v30 = vperm.slane %v2029_v23, %v5087_v2 }
 0x847   :  { %v2333_v38 = vperm.slane %v2035_v55, %v3726_v58  ;;  %v2192_v55 = vsel %vm788_vm0, %v1972_v13, 0.0  ;;  %v2348_v41 = vperm.slane %v4753_v53, %v3726_v58 }
 0x848   :  { %v2331_v29 = vsel %vm1138_vm7, %v2330_v30, %v2329_v48  ;;  %v2180_v30 = vsel %vm788_vm0, %v1968_v56, 0.0 }
 0x849   :  { %v2334_v17 = vsel %vm1114_vm1, %v2333_v38, %v2332_v28  ;;  %v4771_v19 = vsel %vm1275_vm8, %v2331_v29, %v4695_v50  ;;  %v2665_v29 = vld [vmem:[%s5007_s3 + $0x278] sm:$0xff] }
 0x84a   :  { %2166 = vadd.xlane.f32.xlu1 %v2165_v32  ;;  %v2666_v32 = vld [vmem:[%s5007_s3 + $0x258] sm:$0xff] }
 0x84b   :  { %2184 = vadd.xlane.f32.xlu0 %v2183_v5  ;;  %2169 = vadd.xlane.f32.xlu2 %v2168_v36  ;;  %v1977_v5 = vmul.f32 %v2666_v32, %v4411_v18  ;;  %v2204_v36 = vsel %vm788_vm0, %v1976_v1, 0.0  ;;  %v2667_v18 = vld [vmem:[%s5007_s3 + $0x220] sm:$0xff] }
 0x84c   :  { %v1970_v14 = vmul.f32 %v2667_v18, %v4363_v33 }
 0x84d   :  { %v2038_v35 = vpop.xlane.xlu1 %2037 }
 0x84e   :  { %v4780_v47 = vpop.xlane.xlu0 %2067  ;;  %v2044_v50 = vpop.xlane.xlu2 %2043  ;;  %v2335_v60 = vperm.slane %v2038_v35, %v3723_v12 }
 0x84f   :  { %v2339_v37 = vperm.slane %v2044_v50, %v5084_v34  ;;  %v2207_v50 = vsel %vm788_vm0, %v1977_v5, 0.0 }
 0x850   :  { %v2336_v0 = vsel %vm1118_vm2, %v2335_v60, %v2334_v17  ;;  %v1981_v17 = vmul.f32 %v2665_v29, %v4376_v9 }
 0x851   :  { %v2338_v49 = vsel %vm1122_vm3, %v2337_v52, %v2336_v0 }
 0x852   :  { %2172 = vadd.xlane.f32.xlu1 %v2171_v62  ;;  %v2340_v45 = vsel %vm1126_vm4, %v2339_v37, %v2338_v49  ;;  %v2219_v11 = vsel %vm788_vm0, %v1981_v17, 0.0  ;;  %v2354_v37 = vperm.slane %v4780_v47, %v5084_v34  ;;  %v2186_v62 = vsel %vm788_vm0, %v1970_v14, 0.0 }
 0x853   :  { %2211 = vadd.xlane.f32.xlu0 %v2210_v39  ;;  %2178 = vadd.xlane.f32.xlu2 %v2177_v51 }
 0x855   :  { %v2047_v27 = vpop.xlane.xlu1 %2046 }
 0x856   :  { %v4804_v7 = vpop.xlane.xlu0 %2076  ;;  %v2053_v3 = vpop.xlane.xlu2 %2052  ;;  %v2341_v61 = vperm.slane %v2047_v27, %v5085_v4  ;;  %v2669_v27 = vld [vmem:[%s5007_s3 + $0x268] sm:$0xff] }
 0x857   :  { %v2345_v44 = vperm.slane %v2053_v3, %v5087_v2  ;;  %v1979_v47 = vmul.f32 %v2669_v27, %v4413_v54  ;;  %v2360_v13 = vperm.slane %v4804_v7, %v5087_v2 }
 0x858   :  { %v2342_v48 = vsel %vm1130_vm5, %v2341_v61, %v2340_v45  ;;  %v2670_v61 = vld [vmem:[%s5007_s3 + $0x270] sm:$0xff] }
 0x859   :  { %v2344_v23 = vsel %vm1134_vm6, %v2343_v15, %v2342_v48  ;;  %v1980_v24 = vmul.f32 %v2670_v61, %v4432_v6  ;;  %v2671_v48 = vld [vmem:[%s5007_s3 + $0x238] sm:$0xff] }
 0x85a   :  { %v2346_v59 = vsel %vm1138_vm7, %v2345_v44, %v2344_v23  ;;  %2199 = vadd.xlane.f32.xlu1 %v2198_v21  ;;  %v1973_v6 = vmul.f32 %v2671_v48, %v4376_v9 }
 0x85b   :  { %2193 = vadd.xlane.f32.xlu0 %v2192_v55  ;;  %2181 = vadd.xlane.f32.xlu2 %v2180_v30  ;;  %v2453_v16 = vsel %vm1277_vm9, %v2346_v59, %v4771_v19  ;;  %v2668_v19 = vld [vmem:[%s5007_s3 + $0x228] sm:$0xff]  ;;  %v2216_v15 = vsel %vm788_vm0, %v1980_v24, 0.0  ;;  %s2704_s3 = smov [#allocation2]  }
 0x85c   :  { %v1971_v52 = vmul.f32 %v2668_v19, %v4413_v54  ;;  %v2213_v54 = vsel %vm788_vm0, %v1979_v47, 0.0  ;;  %s2516_s6 = sshll.u32 %s2704_s3, 4  ;;  %s2517_s6 = int_to_ptr.vmem [resolvable:$true] %s2516_s6 }
 0x85d   :  { %v2056_v43 = vpop.xlane.xlu1 %2055 }
 0x85e   :  { %v2086_v10 = vpop.xlane.xlu0 %2085  ;;  %v2062_v28 = vpop.xlane.xlu2 %2061  ;;  %v2347_v38 = vperm.slane %v2056_v43, %v3714_v22  ;;  %v2189_v39 = vsel %vm788_vm0, %v1971_v52, 0.0 }
 0x85f   :  { %v2350_v46 = vperm.slane %v2062_v28, %v3723_v12  ;;  %v2365_v55 = vperm.slane %v2086_v10, %v3723_v12 }
 0x860   :  { %v2349_v53 = vsel %vm1114_vm1, %v2348_v41, %v2347_v38  ;;  %v2195_v41 = vsel %vm788_vm0, %v1973_v6, 0.0  ;;  %vm5088_vm0 = vcmask 523264  }
 0x861   :  { %v2351_v35 = vsel %vm1118_vm2, %v2350_v46, %v2349_v53 }
 0x862   :  { %2205 = vadd.xlane.f32.xlu1 %v2204_v36 }
 0x863   :  { %2220 = vadd.xlane.f32.xlu0 %v2219_v11  ;;  %2208 = vadd.xlane.f32.xlu2 %v2207_v50 }
 0x865   :  { %v2065_v60 = vpop.xlane.xlu1 %2064 }
 0x866   :  { %v4851_v63 = vpop.xlane.xlu0 %2103  ;;  %v2071_v42 = vpop.xlane.xlu2 %2070  ;;  %v2352_v57 = vperm.slane %v2065_v60, %v5083_v31 }
 0x867   :  { %v2356_v0 = vperm.slane %v2071_v42, %v5085_v4 }
 0x868   :  { %v2353_v49 = vsel %vm1122_vm3, %v2352_v57, %v2351_v35  ;;  %v2377_v57 = vperm.slane %v4851_v63, %v3714_v22 }
 0x869   :  { %v2355_v33 = vsel %vm1126_vm4, %v2354_v37, %v2353_v49 }
 0x86a   :  { %2187 = vadd.xlane.f32.xlu1 %v2186_v62  ;;  %v2357_v51 = vsel %vm1130_vm5, %v2356_v0, %v2355_v33 }
 0x86b   :  { %2190 = vadd.xlane.f32.xlu2 %v2189_v39 }
 0x86d   :  { %v2074_v45 = vpop.xlane.xlu1 %2073 }
 0x86e   :  { %v4870_v25 = vpop.xlane.xlu0 %2127  ;;  %v2080_v40 = vpop.xlane.xlu2 %2079  ;;  %v2358_v3 = vperm.slane %v2074_v45, %v5086_v20 }
 0x86f   :  { %v2362_v23 = vperm.slane %v2080_v40, %v3714_v22 }
 0x870   :  { %v2359_v8 = vsel %vm1134_vm6, %v2358_v3, %v2357_v51 }
 0x871   :  { %v2361_v56 = vsel %vm1138_vm7, %v2360_v13, %v2359_v8 }
 0x872   :  { %2214 = vadd.xlane.f32.xlu1 %v2213_v54  ;;  %v2454_v26 = vsel %vm1279_vm10, %v2361_v56, %v2453_v16 }
 0x873   :  { %2217 = vadd.xlane.f32.xlu2 %v2216_v15 }
 0x875   :  { %v2083_v44 = vpop.xlane.xlu1 %2082 }
 0x876   :  { %v4888_v7 = vpop.xlane.xlu0 %2133  ;;  %v2089_v21 = vpop.xlane.xlu2 %2088  ;;  %v2363_v59 = vperm.slane %v2083_v44, %v3726_v58 }
 0x877   :  { %v2367_v30 = vperm.slane %v2089_v21, %v5083_v31 }
 0x878   :  { %v2364_v43 = vsel %vm1114_vm1, %v2363_v59, %v2362_v23 }
 0x879   :  { %v2366_v1 = vsel %vm1118_vm2, %v2365_v55, %v2364_v43 }
 0x87a   :  { %2196 = vadd.xlane.f32.xlu1 %v2195_v41  ;;  %v2368_v9 = vsel %vm1122_vm3, %v2367_v30, %v2366_v1  ;;  %v2392_v30 = vperm.slane %v4870_v25, %v3714_v22 }
 0x87d   :  { %v2092_v28 = vpop.xlane.xlu1 %2091 }
 0x87e   :  { %v2095_v38 = vpop.xlane.xlu0 %2094  ;;  %v2107_v29 = vpop.xlane.xlu2 %2106  ;;  %v2369_v17 = vperm.slane %v2092_v28, %v5084_v34 }
 0x87f   :  { %v2378_v14 = vperm.slane %v2107_v29, %v3726_v58  ;;  %v2371_v45 = vperm.slane %v2095_v38, %v5085_v4 }
 0x880   :  { %v2370_v10 = vsel %vm1126_vm4, %v2369_v17, %v2368_v9  ;;  %v2395_v9 = vperm.slane %v4888_v7, %v3723_v12 }
 0x881   :  { %v2379_v33 = vsel %vm1114_vm1, %v2378_v14, %v2377_v57  ;;  %v2372_v61 = vsel %vm1130_vm5, %v2371_v45, %v2370_v10 }
 0x885   :  { %v2110_v32 = vpop.xlane.xlu1 %2109 }
 0x886   :  { %v2131_v5 = vpop.xlane.xlu2 %2130  ;;  %v4900_v46 = vpop.xlane.xlu0 %2157  ;;  %v2380_v42 = vperm.slane %v2110_v32, %v3723_v12 }
 0x887   :  { %v2393_v21 = vperm.slane %v2131_v5, %v3726_v58 }
 0x888   :  { %v2381_v39 = vsel %vm1118_vm2, %v2380_v42, %v2379_v33 }
 0x889   :  { %v2394_v43 = vsel %vm1114_vm1, %v2393_v21, %v2392_v30 }
 0x88a   :  { %v2396_v38 = vsel %vm1118_vm2, %v2395_v9, %v2394_v43 }
 0x88d   :  { %v2113_v53 = vpop.xlane.xlu1 %2112 }
 0x88e   :  { %v2152_v36 = vpop.xlane.xlu2 %2151  ;;  %v2140_v35 = vpop.xlane.xlu0 %2139  ;;  %v2382_v19 = vperm.slane %v2113_v53, %v5083_v31 }
 0x88f   :  { %v2407_v28 = vperm.slane %v2152_v36, %v3714_v22  ;;  %v2399_v25 = vperm.slane %v2140_v35, %v5084_v34 }
 0x890   :  { %v2383_v51 = vsel %vm1122_vm3, %v2382_v19, %v2381_v39 }
 0x895   :  { %v2155_v16 = vpop.xlane.xlu1 %2154 }
 0x896   :  { %v2116_v11 = vpop.xlane.xlu2 %2115  ;;  %v2122_v50 = vpop.xlane.xlu0 %2121 }
 0x897   :  { %v2384_v0 = vperm.slane %v2116_v11, %v5084_v34  ;;  %v2388_v40 = vperm.slane %v2122_v50, %v5086_v20 }
 0x899   :  { %v2385_v27 = vsel %vm1126_vm4, %v2384_v0, %v2383_v51 }
 0x89d   :  { %v2137_v60 = vpop.xlane.xlu1 %2136 }
 0x89e   :  { %v2098_v18 = vpop.xlane.xlu2 %2097  ;;  %v2125_v52 = vpop.xlane.xlu0 %2124  ;;  %v2397_v1 = vperm.slane %v2137_v60, %v5083_v31 }
 0x89f   :  { %v2373_v63 = vperm.slane %v2098_v18, %v5086_v20  ;;  %v2390_v56 = vperm.slane %v2125_v52, %v5087_v2 }
 0x8a0   :  { %v2398_v29 = vsel %vm1122_vm3, %v2397_v1, %v2396_v38 }
 0x8a1   :  { %v2374_v54 = vsel %vm1134_vm6, %v2373_v63, %v2372_v61  ;;  %v2400_v11 = vsel %vm1126_vm4, %v2399_v25, %v2398_v29 }
 0x8a5   :  { %v2119_v37 = vpop.xlane.xlu1 %2118 }
 0x8a6   :  { %v2161_v49 = vpop.xlane.xlu2 %2160  ;;  %v2386_v62 = vperm.slane %v2119_v37, %v5085_v4  ;;  %v2149_v15 = vpop.xlane.xlu0 %2148 }
 0x8a7   :  { %v2412_v5 = vperm.slane %v2161_v49, %v5083_v31  ;;  %v2405_v42 = vperm.slane %v2149_v15, %v5087_v2 }
 0x8a8   :  { %v2387_v47 = vsel %vm1130_vm5, %v2386_v62, %v2385_v27 }
 0x8a9   :  { %v2389_v24 = vsel %vm1134_vm6, %v2388_v40, %v2387_v47 }
 0x8aa   :  { %v2391_v6 = vsel %vm1138_vm7, %v2390_v56, %v2389_v24 }
 0x8ad   :  { %v2101_v3 = vpop.xlane.xlu1 %2100 }
 0x8ae   :  { %v2143_v13 = vpop.xlane.xlu2 %2142  ;;  %v2375_v8 = vperm.slane %v2101_v3, %v5087_v2  ;;  %v2176_v41 = vpop.xlane.xlu0 %2175 }
 0x8af   :  { %v2401_v17 = vperm.slane %v2143_v13, %v5085_v4 }
 0x8b0   :  { %v2376_v44 = vsel %vm1138_vm7, %v2375_v8, %v2374_v54 }
 0x8b1   :  { %v2455_v48 = vsel %vm1281_vm11, %v2376_v44, %v2454_v26  ;;  %v2408_v26 = vperm.slane %v2155_v16, %v3726_v58  ;;  %v2410_v16 = vperm.slane %v4900_v46, %v3723_v12  ;;  %v2402_v35 = vsel %vm1130_vm5, %v2401_v17, %v2400_v11 }
 0x8b2   :  { %v2456_v23 = vsel %vm1283_vm12, %v2391_v6, %v2455_v48 }
 0x8b3   :  { %v2409_v32 = vsel %vm1114_vm1, %v2408_v26, %v2407_v28 }
 0x8b4   :  { %v2411_v60 = vsel %vm1118_vm2, %v2410_v16, %v2409_v32 }
 0x8b5   :  { %v2164_v59 = vpop.xlane.xlu1 %2163  ;;  %v2413_v18 = vsel %vm1122_vm3, %v2412_v5, %v2411_v60 }
 0x8b6   :  { %v2146_v55 = vpop.xlane.xlu2 %2145  ;;  %v2414_v36 = vperm.slane %v2164_v59, %v5084_v34  ;;  %v2203_v57 = vpop.xlane.xlu0 %2202 }
 0x8b7   :  { %v2403_v53 = vperm.slane %v2146_v55, %v5086_v20  ;;  %v2438_v15 = vperm.slane %v2203_v57, %v3726_v58 }
 0x8b8   :  { %v2415_v19 = vsel %vm1126_vm4, %v2414_v36, %v2413_v18 }
 0x8b9   :  { %v2404_v14 = vsel %vm1134_vm6, %v2403_v53, %v2402_v35 }
 0x8ba   :  { %v2406_v0 = vsel %vm1138_vm7, %v2405_v42, %v2404_v14 }
 0x8bb   :  { %v2457_v51 = vsel %vm1285_vm13, %v2406_v0, %v2456_v23  ;;  %v2422_v23 = vperm.slane %v2176_v41, %v3714_v22 }
 0x8bd   :  { %v2167_v10 = vpop.xlane.xlu1 %2166 }
 0x8be   :  { %v2170_v7 = vpop.xlane.xlu2 %2169  ;;  %v2416_v50 = vperm.slane %v2167_v10, %v5085_v4  ;;  %v2185_v63 = vpop.xlane.xlu0 %2184 }
 0x8bf   :  { %v2418_v46 = vperm.slane %v2170_v7, %v5086_v20  ;;  %v2427_v26 = vperm.slane %v2185_v63, %v5083_v31 }
 0x8c0   :  { %v2417_v52 = vsel %vm1130_vm5, %v2416_v50, %v2415_v19 }
 0x8c1   :  { %v2419_v62 = vsel %vm1134_vm6, %v2418_v46, %v2417_v52 }
 0x8c5   :  { %v2173_v37 = vpop.xlane.xlu1 %2172 }
 0x8c6   :  { %v2179_v49 = vpop.xlane.xlu2 %2178  ;;  %v2420_v33 = vperm.slane %v2173_v37, %v5087_v2  ;;  %v2212_v24 = vpop.xlane.xlu0 %2211 }
 0x8c7   :  { %v2423_v44 = vperm.slane %v2179_v49, %v3726_v58  ;;  %v2444_v38 = vperm.slane %v2212_v24, %v5084_v34 }
 0x8c8   :  { %v2421_v39 = vsel %vm1138_vm7, %v2420_v33, %v2419_v62 }
 0x8c9   :  { %v2458_v45 = vsel %vm1287_vm14, %v2421_v39, %v2457_v51  ;;  %v2424_v30 = vsel %vm1114_vm1, %v2423_v44, %v2422_v23 }
 0x8ca   :  { %v2462_v27 = vsel %vm5088_vm0, %v2458_v45, 0.0 }
 0x8cb   :  { %2463 = vadd.xlane.f32.xlu2 %v2462_v27 }
 0x8cd   :  { %v2200_v47 = vpop.xlane.xlu1 %2199 }
 0x8ce   :  { %v2182_v40 = vpop.xlane.xlu2 %2181  ;;  %v2437_v8 = vperm.slane %v2200_v47, %v3714_v22  ;;  %v2194_v48 = vpop.xlane.xlu0 %2193 }
 0x8cf   :  { %v2425_v6 = vperm.slane %v2182_v40, %v3723_v12  ;;  %v2433_v7 = vperm.slane %v2194_v48, %v5086_v20  ;;  %v2672_v40 = vld [vmem:[%s5008_s4] sm:$0x1] }
 0x8d0   :  { %v2439_v21 = vsel %vm1114_vm1, %v2438_v15, %v2437_v8 }
 0x8d1   :  { %v2426_v43 = vsel %vm1118_vm2, %v2425_v6, %v2424_v30 }
 0x8d2   :  { %v2428_v17 = vsel %vm1122_vm3, %v2427_v26, %v2426_v43 }
 0x8d5   :  { %v2206_v3 = vpop.xlane.xlu1 %2205 }
 0x8d6   :  { %v2209_v61 = vpop.xlane.xlu2 %2208  ;;  %v2440_v54 = vperm.slane %v2206_v3, %v3723_v12 }
 0x8d7   :  { %v2442_v59 = vperm.slane %v2209_v61, %v5083_v31  ;;  %v2221_v31 = vpop.xlane.xlu0 %2220 }
 0x8d8   :  { %v2441_v55 = vsel %vm1118_vm2, %v2440_v54, %v2439_v21  ;;  %vm5089_vm2 = vcmask 517120  }
 0x8d9   :  { %v2443_v28 = vsel %vm1122_vm3, %v2442_v59, %v2441_v55 }
 0x8da   :  { %v2445_v32 = vsel %vm1126_vm4, %v2444_v38, %v2443_v28 }
 0x8dd   :  { %v2188_v13 = vpop.xlane.xlu1 %2187 }
 0x8de   :  { %v2191_v56 = vpop.xlane.xlu2 %2190  ;;  %v2429_v1 = vperm.slane %v2188_v13, %v5084_v34 }
 0x8df   :  { %v2431_v29 = vperm.slane %v2191_v56, %v5085_v4 }
 0x8e0   :  { %v2430_v10 = vsel %vm1126_vm4, %v2429_v1, %v2428_v17 }
 0x8e1   :  { %v2432_v53 = vsel %vm1130_vm5, %v2431_v29, %v2430_v10 }
 0x8e2   :  { %v2434_v11 = vsel %vm1134_vm6, %v2433_v7, %v2432_v53 }
 0x8e5   :  { %v2215_v9 = vpop.xlane.xlu1 %2214 }
 0x8e6   :  { %v2218_v12 = vpop.xlane.xlu2 %2217  ;;  %v2446_v41 = vperm.slane %v2215_v9, %v5085_v4  ;;  %v2450_v4 = vperm.slane %v2221_v31, %v5087_v2 }
 0x8e7   :  { %v2448_v25 = vperm.slane %v2218_v12, %v5086_v20 }
 0x8e8   :  { %v2447_v5 = vsel %vm1130_vm5, %v2446_v41, %v2445_v32 }
 0x8e9   :  { %v2449_v34 = vsel %vm1134_vm6, %v2448_v25, %v2447_v5 }
 0x8ea   :  { %v2451_v60 = vsel %vm1138_vm7, %v2450_v4, %v2449_v34 }
 0x8ed   :  { %v2197_v16 = vpop.xlane.xlu1 %2196 }
 0x8ee   :  { %v2435_v36 = vperm.slane %v2197_v16, %v5087_v2 }
 0x8f0   :  { %v2436_v50 = vsel %vm1138_vm7, %v2435_v36, %v2434_v11 }
 0x8f1   :  { %v2459_v35 = vsel %vm1275_vm8, %v2451_v60, %v2436_v50 }
 0x8f2   :  { %v2465_v18 = vsel %vm5089_vm2, %v2459_v35, 0.0 }
 0x8f3   :  { %2466 = vadd.xlane.f32.xlu1 %v2465_v18 }
 0x93e   :  { %v2464_v14 = vpop.xlane.xlu2 %2463 }
 0x93f   :  { %v2470_v20 = vperm.slane %v2464_v14, 0  ;;  %v2471_v42 = vperm.slane %v2464_v14, 1  ;;  %v2472_v57 = vperm.slane %v2464_v14, 2  ;;  %v2473_v19 = vperm.slane %v2464_v14, 3 }
 0x940   :  { %v2474_v46 = vperm.slane %v2464_v14, 4  ;;  %v2475_v52 = vperm.slane %v2464_v14, 5  ;;  %v2476_v2 = vperm.slane %v2464_v14, 6  ;;  %v2477_v37 = vperm.slane %v2464_v14, 7 }
 0x941   :  { %2480 = vst [vmem:[#allocation1] ss:$9 sm:$0xff] %v2470_v20 }
 0x942   :  { %2482 = vst [vmem:[#allocation1 + $0x1] ss:$9 sm:$0xff] %v2471_v42 }
 0x943   :  { %2484 = vst [vmem:[#allocation1 + $0x2] ss:$9 sm:$0xff] %v2472_v57 }
 0x944   :  { %2486 = vst [vmem:[#allocation1 + $0x3] ss:$9 sm:$0xff] %v2473_v19 }
 0x945   :  { %2488 = vst [vmem:[#allocation1 + $0x4] ss:$9 sm:$0xff] %v2474_v46 }
 0x946   :  { %2490 = vst [vmem:[#allocation1 + $0x5] ss:$9 sm:$0xff] %v2475_v52 }
 0x947   :  { %2492 = vst [vmem:[#allocation1 + $0x6] ss:$9 sm:$0xff] %v2476_v2 }
 0x948   :  { %2494 = vst [vmem:[#allocation1 + $0x7] ss:$9 sm:$0xff] %v2477_v37 }
 0x94f   :  { %v2495_v0 = vld [vmem:[#allocation1] sm:$0xff] }
 0x950   :  { %2500 = vperm.xlu0 %2590, %v2495_v0  }
 0x966   :  { %v2467_v49 = vpop.xlane.xlu1 %2466 }
 0x967   :  { %v2478_v33 = vperm.slane %v2467_v49, 0  ;;  %v2479_v62 = vperm.slane %v2467_v49, 1 }
 0x969   :  { %2496 = vst [vmem:[#allocation1] ss:$9 sm:$0xff] %v2478_v33 }
 0x96a   :  { %2497 = vst [vmem:[#allocation1 + $0x1] ss:$9 sm:$0xff] %v2479_v62 }
 0x971   :  { %v2498_v39 = vld [vmem:[#allocation1] sm:$0xff] }
 0x972   :  { %2503 = vperm.xlu2 %2591, %v2498_v39  }
 0x9c2   :  { %v2501_v51 = vpop.permute.xlu0 %2500 }
 0x9c3   :  { %v2505_v27 = vperm.slane %v2501_v51, %v3714_v22 }
 0x9cc   :  { %v2504_v45 = vpop.permute.xlu2 %2503 }
 0x9cd   :  { %v2506_v63 = vperm.slane %v2504_v45, %v3726_v58 }
 0x9cf   :  { %v2507_v47 = vsel %vm1114_vm1, %v2506_v63, %v2505_v27 }
 0x9d0   :  { %v2509_v3 = vadd.f32 %v2672_v40, %v2507_v47 }
 0x9d2   :  { %2510 = vst.msk [vmem:[#allocation2 + $0x1] sm:$0x1] %vm1342_vm15, %v2509_v3 }
 0x9d3   :  { %2521 = dma.vmem_to_hbm [thread:$0]  %s2517_s6, 32, %s2519_s9, [#allocation3]  }
 0x9d4   :  { %2697 = dma.done.wait [#allocation3], 32  }
 0x9d5   :  { %2698 = vsyncadd [#allocation3], 4294967264 }
 0x9d6   :  { %2526 = vsyncpa [#allocation3], 1 }

</bundles_post_ra>
